<compile_context>
chip_gen: v7x
topology: tpu7x:2x2x1
jax: 0.10.0
libtpu: 0.0.40
codegen_flags: <defaults>
</compile_context>

<pallas_src>
import functools

import jax
import jax.numpy as jnp
from jax import lax
from jax.experimental import pallas as pl
from jax.experimental.pallas import tpu as pltpu

EPS = 1e-5  # torch.nn.LayerNorm default


def _layernorm(x, w, b):
    mu = jnp.mean(x, axis=-1, keepdims=True)
    var = jnp.mean((x - mu) ** 2, axis=-1, keepdims=True)
    return (x - mu) * lax.rsqrt(var + EPS) * w + b


def _gelu_exact(x):
    # exact erf-based GELU (torch.nn.GELU default)
    return 0.5 * x * (1.0 + lax.erf(x * 0.7071067811865476))


def fused_encoder_kernel(x_ref,
                         wqkv_ref,      # (1, H, C, 3*dh) bf16, Q cols pre-scaled
                         wproj_ref,     # (1, C, C)       bf16
                         w1_ref,        # (1, C, hidden)  bf16
                         w2_ref,        # (1, hidden, C)  bf16
                         vec_ref,       # (1, 6, C) f32: ln1_w, ln1_b, bproj, ln2_w, ln2_b, b2
                         b1_ref,        # (1, 1, hidden) f32
                         lnf_ref,       # (2, C) f32: final LayerNorm w, b
                         o_ref,
                         acc_ref,       # (Bt, N, C) f32  — activation carried across layers
                         head_out_ref,  # (H, Bt*N, dh) bf16 — per-head attention outputs
                         *, num_heads):
    """grid = (batch_tile, layer); layer axis innermost & sequential ("arbitrary")."""
    layer = pl.program_id(1)
    n_layers = pl.num_programs(1)

    Bt, N, C = acc_ref.shape
    dh = C // num_heads
    rows = Bt * N

    @pl.when(layer == 0)
    def _():
        acc_ref[...] = x_ref[...].astype(jnp.float32)

    x = acc_ref[...].reshape(rows, C)                         # (rows, C) f32

    vecs = vec_ref[0]                                         # (6, C) f32
    ln1_w, ln1_b, bproj = vecs[0:1], vecs[1:2], vecs[2:3]
    ln2_w, ln2_b, b2 = vecs[3:4], vecs[4:5], vecs[5:6]

    # ---------------- attention branch ----------------
    h_bf = _layernorm(x, ln1_w, ln1_b).astype(jnp.bfloat16)   # (rows, C) bf16

    def head_body(hh, carry):
        # Per-head QKV: full-C contraction on the MXU, no (rows, 3C) f32 temporary.
        w_h = wqkv_ref[0, hh]                                 # (C, 3*dh) bf16
        qkv = jnp.dot(h_bf, w_h, preferred_element_type=jnp.float32)
        qkv = qkv.astype(jnp.bfloat16)                        # cast once
        q = qkv[:, 0 * dh:1 * dh].reshape(Bt, N, dh)
        k = qkv[:, 1 * dh:2 * dh].reshape(Bt, N, dh)
        v = qkv[:, 2 * dh:3 * dh].reshape(Bt, N, dh)
        # Q @ K^T without an explicit transpose (contract last dims, batch over Bt).
        s = jnp.einsum("bqd,bkd->bqk", q, k,
                       preferred_element_type=jnp.float32)    # (Bt, N, N) f32
        s = s - jnp.max(s, axis=-1, keepdims=True)
        p = jnp.exp(s)
        p = p * pl.reciprocal(jnp.sum(p, axis=-1, keepdims=True), approx=True)
        oh = jnp.einsum("bqk,bkd->bqd", p.astype(jnp.bfloat16), v,
                        preferred_element_type=jnp.float32)   # (Bt, N, dh)
        head_out_ref[hh] = oh.reshape(rows, dh).astype(jnp.bfloat16)
        return carry

    lax.fori_loop(0, num_heads, head_body, 0)

    # Assemble heads (static lane placement) and do ONE full-C projection matmul.
    attn_cat = jnp.concatenate(
        [head_out_ref[i] for i in range(num_heads)], axis=-1)  # (rows, C) bf16
    attn = jnp.dot(attn_cat, wproj_ref[0],
                   preferred_element_type=jnp.float32)          # (rows, C) f32
    x = x + attn + bproj

    # ---------------- MLP branch ----------------
    hm = _layernorm(x, ln2_w, ln2_b).astype(jnp.bfloat16)
    g = jnp.dot(hm, w1_ref[0], preferred_element_type=jnp.float32) + b1_ref[0]
    g = _gelu_exact(g)
    g = jnp.dot(g.astype(jnp.bfloat16), w2_ref[0],
                preferred_element_type=jnp.float32) + b2
    x = x + g

    acc_ref[...] = x.reshape(Bt, N, C)

    @pl.when(layer == n_layers - 1)
    def _():
        lnf = lnf_ref[...]                                     # (2, C)
        y = _layernorm(x, lnf[0:1], lnf[1:2])
        o_ref[...] = y.reshape(Bt, N, C).astype(o_ref.dtype)


def _vmem_limit_bytes():
    """Per-generation VMEM budget: ~3/4 of physical, capped (v7x: 48 MiB, v5e/v6e: 96 MiB)."""
    try:
        cap = pltpu.get_tpu_info().vmem_capacity_bytes
    except Exception:
        cap = 64 * 1024 * 1024          # conservative fallback (v7x-sized)
    return int(min(cap * 3 // 4, 96 * 1024 * 1024))


def _pick_batch_tile(B, N, C, hidden, vmem_limit):
    """Largest divisor of B whose per-step activation working set fits a VMEM budget."""
    budget = vmem_limit // 3            # leave room for double-buffered weights + compiler scratch
    best = 1
    for bt in range(1, B + 1):
        if B % bt != 0:
            continue
        per_step = bt * N * (3 * C * 4      # acc + in + out blocks (f32)
                             + N * 4        # one head's f32 score matrix
                             + hidden * 4   # f32 MLP intermediate
                             + 3 * C * 2)   # bf16 temporaries
        if per_step <= budget:
            best = bt
    return best


def transformer_forward(x, packed, num_heads):
    B, N, C = x.shape
    L = packed["wqkv"].shape[0]
    H = num_heads
    dh = C // H
    hidden = packed["w1"].shape[-1]

    vmem_limit = _vmem_limit_bytes()
    Bt = _pick_batch_tile(B, N, C, hidden, vmem_limit)

    in_specs = [
        pl.BlockSpec((Bt, N, C), lambda b, l: (b, 0, 0)),            # x (per batch tile)
        pl.BlockSpec((1, H, C, 3 * dh), lambda b, l: (l, 0, 0, 0)),  # wqkv (head-major, bf16)
        pl.BlockSpec((1, C, C), lambda b, l: (l, 0, 0)),             # wproj
        pl.BlockSpec((1, C, hidden), lambda b, l: (l, 0, 0)),        # fc1 w
        pl.BlockSpec((1, hidden, C), lambda b, l: (l, 0, 0)),        # fc2 w
        pl.BlockSpec((1, 6, C), lambda b, l: (l, 0, 0)),             # packed per-layer vectors
        pl.BlockSpec((1, 1, hidden), lambda b, l: (l, 0, 0)),        # fc1 bias
        pl.BlockSpec((2, C), lambda b, l: (0, 0)),                   # final LayerNorm w/b
    ]

    kernel = functools.partial(fused_encoder_kernel, num_heads=num_heads)
    return pl.pallas_call(
        kernel,
        out_shape=jax.ShapeDtypeStruct((B, N, C), x.dtype),
        grid=(B // Bt, L),
        in_specs=in_specs,
        out_specs=pl.BlockSpec((Bt, N, C), lambda b, l: (b, 0, 0)),
        scratch_shapes=[
            pltpu.VMEM((Bt, N, C), jnp.float32),            # activation across layers
            pltpu.VMEM((H, Bt * N, dh), jnp.bfloat16),      # per-head attention outputs
        ],
        compiler_params=pltpu.CompilerParams(
            dimension_semantics=("parallel", "arbitrary"),
            vmem_limit_bytes=vmem_limit,
        ),
    )(x, packed["wqkv"], packed["wproj"], packed["w1"], packed["w2"],
      packed["vecs"], packed["b1"], packed["lnf"])


def init_transformer_params(key, embed_dim, numbers, num_heads, mlp_ratio):
    """Per-block params in torch-like (f32) layout."""
    hidden = int(embed_dim * mlp_ratio)
    block_params = []
    for i in range(numbers):
        ks = jax.random.split(jax.random.fold_in(key, i), 4)
        p = {
            "ln1_w": jnp.ones((1, embed_dim), jnp.float32),
            "ln1_b": jnp.zeros((1, embed_dim), jnp.float32),
            "wqkv": 0.05 * jax.random.normal(ks[0], (embed_dim, 3 * embed_dim), jnp.float32),
            "wproj": 0.05 * jax.random.normal(ks[1], (embed_dim, embed_dim), jnp.float32),
            "bproj": jnp.zeros((1, embed_dim), jnp.float32),
            "ln2_w": jnp.ones((1, embed_dim), jnp.float32),
            "ln2_b": jnp.zeros((1, embed_dim), jnp.float32),
            "w1": 0.05 * jax.random.normal(ks[2], (embed_dim, hidden), jnp.float32),
            "b1": jnp.zeros((1, hidden), jnp.float32),
            "w2": 0.05 * jax.random.normal(ks[3], (hidden, embed_dim), jnp.float32),
            "b2": jnp.zeros((1, embed_dim), jnp.float32),
        }
        block_params.append(p)
    final_w = jnp.ones((1, embed_dim), jnp.float32)
    final_b = jnp.zeros((1, embed_dim), jnp.float32)
    return block_params, final_w, final_b


def pack_params(block_params, final_w, final_b, num_heads):
    """Stack per-layer params in the layout the fused kernel expects:
       bf16 matmul weights, softmax scale folded into the Q columns, qkv weight
       restructured head-major as (L, H, C, 3*dh), small vectors packed as (L, 6, C)."""
    L = len(block_params)
    C = block_params[0]["wqkv"].shape[0]
    dh = C // num_heads
    scale = jnp.float32(dh ** -0.5)

    def stack(name):
        return jnp.stack([p[name] for p in block_params], axis=0)

    wqkv = stack("wqkv")                                          # (L, C, 3C) f32
    wq = (wqkv[:, :, :C] * scale).reshape(L, C, num_heads, dh)    # fold dh**-0.5 into Q
    wk = wqkv[:, :, C:2 * C].reshape(L, C, num_heads, dh)
    wv = wqkv[:, :, 2 * C:].reshape(L, C, num_heads, dh)
    wqkv_h = jnp.concatenate([wq, wk, wv], axis=-1)               # (L, C, H, 3dh)
    wqkv_h = jnp.transpose(wqkv_h, (0, 2, 1, 3))                  # (L, H, C, 3dh)

    vecs = jnp.stack([
        jnp.concatenate([p["ln1_w"], p["ln1_b"], p["bproj"],
                         p["ln2_w"], p["ln2_b"], p["b2"]], axis=0)
        for p in block_params], axis=0)                           # (L, 6, C) f32

    return {
        "wqkv": wqkv_h.astype(jnp.bfloat16),                      # (L, H, C, 3dh)
        "wproj": stack("wproj").astype(jnp.bfloat16),             # (L, C, C)
        "w1": stack("w1").astype(jnp.bfloat16),                   # (L, C, hidden)
        "w2": stack("w2").astype(jnp.bfloat16),                   # (L, hidden, C)
        "vecs": vecs,                                             # (L, 6, C) f32
        "b1": stack("b1"),                                        # (L, 1, hidden) f32
        "lnf": jnp.concatenate([final_w, final_b], axis=0),       # (2, C) f32
    }


def reference_forward(x, block_params, final_w, final_b, num_heads):
    """Pure-JAX f32 reference mirroring the PyTorch module."""
    B, N, C = x.shape
    H, dh = num_heads, C // num_heads
    scale = dh ** -0.5
    for p in block_params:
        h = _layernorm(x, p["ln1_w"], p["ln1_b"])
        qkv = h @ p["wqkv"]
        q, k, v = qkv[..., :C], qkv[..., C:2 * C], qkv[..., 2 * C:]
        q = q.reshape(B, N, H, dh).transpose(0, 2, 1, 3) * scale
        k = k.reshape(B, N, H, dh).transpose(0, 2, 1, 3)
        v = v.reshape(B, N, H, dh).transpose(0, 2, 1, 3)
        a = jax.nn.softmax(jnp.einsum("bhnd,bhmd->bhnm", q, k), axis=-1)
        o = jnp.einsum("bhnm,bhmd->bhnd", a, v).transpose(0, 2, 1, 3).reshape(B, N, C)
        x = x + o @ p["wproj"] + p["bproj"]
        h = _layernorm(x, p["ln2_w"], p["ln2_b"])
        x = x + _gelu_exact(h @ p["w1"] + p["b1"]) @ p["w2"] + p["b2"]
    return _layernorm(x, final_w, final_b)


if __name__ == "__main__":
    # Small, lane-aligned demo shapes (real model: embed_dim=384, numbers=14, heads=6, mlp=3.0).
    B, N = 2, 64
    embed_dim, numbers, num_heads, mlp_ratio = 128, 3, 4, 3.0

    key = jax.random.PRNGKey(0)
    k_x, k_p = jax.random.split(key)
    x = jax.random.normal(k_x, (B, N, embed_dim), jnp.float32)
    block_params, final_w, final_b = init_transformer_params(
        k_p, embed_dim, numbers, num_heads, mlp_ratio)
    packed = pack_params(block_params, final_w, final_b, num_heads)

    out = transformer_forward(x, packed, num_heads)
    out = jax.block_until_ready(out)
    assert out.shape == (B, N, embed_dim)

    # Sanity check vs. pure-JAX f32 reference (loose tolerance: weights are bf16 in-kernel).
    with jax.default_matmul_precision("highest"):
        ref = reference_forward(x, block_params, final_w, final_b, num_heads)
    max_err = float(jnp.max(jnp.abs(out.astype(jnp.float32) - ref)))
    assert max_err < 3e-2, f"kernel/reference mismatch: {max_err}"

    print("KERNEL_OK")
</pallas_src>

<mosaic_0001>
module attributes {stable_mosaic.version = 11 : i64} {
  func.func @fused_encoder_kernel(%arg0: i32, %arg1: i32, %arg2: memref<2x64x128xf32, #tpu.memory_space<vmem>>, %arg3: memref<1x4x128x96xbf16, #tpu.memory_space<vmem>>, %arg4: memref<1x128x128xbf16, #tpu.memory_space<vmem>>, %arg5: memref<1x128x384xbf16, #tpu.memory_space<vmem>>, %arg6: memref<1x384x128xbf16, #tpu.memory_space<vmem>>, %arg7: memref<1x6x128xf32, #tpu.memory_space<vmem>>, %arg8: memref<1x1x384xf32, #tpu.memory_space<vmem>>, %arg9: memref<2x128xf32, #tpu.memory_space<vmem>>, %arg10: memref<2x64x128xf32, #tpu.memory_space<vmem>>, %arg11: memref<2x64x128xf32, #tpu.memory_space<vmem>>, %arg12: memref<4x128x32xbf16, #tpu.memory_space<vmem>>) attributes {dimension_semantics = [#tpu.dimension_semantics<parallel>, #tpu.dimension_semantics<arbitrary>], iteration_bounds = array<i64: 1, 3>, scalar_prefetch = 0 : i64, scratch_operands = 2 : i64, tpu.core_type = #tpu.core_type<tc>, window_params = [{transform_indices = @transform_0, window_bounds = array<i64: 2, 64, 128>}, {transform_indices = @transform_1, window_bounds = array<i64: 1, 4, 128, 96>}, {transform_indices = @transform_2, window_bounds = array<i64: 1, 128, 128>}, {transform_indices = @transform_3, window_bounds = array<i64: 1, 128, 384>}, {transform_indices = @transform_4, window_bounds = array<i64: 1, 384, 128>}, {transform_indices = @transform_5, window_bounds = array<i64: 1, 6, 128>}, {transform_indices = @transform_6, window_bounds = array<i64: 1, 1, 384>}, {pipeline_mode = #tpu.pipeline_mode<synchronous>, transform_indices = @transform_7, window_bounds = array<i64: 2, 128>}, {transform_indices = @transform_8, window_bounds = array<i64: 2, 64, 128>}]} {
    %c0_i32 = arith.constant 0 : i32
    %0 = arith.cmpi eq, %arg1, %c0_i32 : i32
    %1 = arith.extui %0 : i1 to i32
    %c0_i32_0 = arith.constant 0 : i32
    %2 = arith.cmpi ne, %1, %c0_i32_0 : i32
    scf.if %2 {
      %c0_48 = arith.constant 0 : index
      %c0_49 = arith.constant 0 : index
      %c0_50 = arith.constant 0 : index
      %102 = vector.load %arg2[%c0_48, %c0_49, %c0_50] : memref<2x64x128xf32, #tpu.memory_space<vmem>>, vector<2x64x128xf32>
      %c0_51 = arith.constant 0 : index
      %c0_52 = arith.constant 0 : index
      %c0_53 = arith.constant 0 : index
      %103 = vector.load %arg11[%c0_51, %c0_52, %c0_53] : memref<2x64x128xf32, #tpu.memory_space<vmem>>, vector<2x64x128xf32>
      tpu.vector_store %arg11[%c0_51, %c0_52, %c0_53], %102 {strides = array<i32>} : memref<2x64x128xf32, #tpu.memory_space<vmem>>, vector<2x64x128xf32>,
    } else {
    }
    %c0 = arith.constant 0 : index
    %c0_1 = arith.constant 0 : index
    %c0_2 = arith.constant 0 : index
    %3 = vector.load %arg11[%c0, %c0_1, %c0_2] : memref<2x64x128xf32, #tpu.memory_space<vmem>>, vector<2x64x128xf32>
    %4 = vector.shape_cast %3 : vector<2x64x128xf32> to vector<128x128xf32>
    %c0_3 = arith.constant 0 : index
    %c0_4 = arith.constant 0 : index
    %c0_5 = arith.constant 0 : index
    %5 = vector.load %arg7[%c0_3, %c0_4, %c0_5] : memref<1x6x128xf32, #tpu.memory_space<vmem>>, vector<1x6x128xf32>
    %6 = vector.shape_cast %5 : vector<1x6x128xf32> to vector<6x128xf32>
    %7 = vector.extract_strided_slice %6 {offsets = [0, 0], sizes = [1, 128], strides = [1, 1]} : vector<6x128xf32> to vector<1x128xf32>
    %8 = vector.extract_strided_slice %6 {offsets = [1, 0], sizes = [1, 128], strides = [1, 1]} : vector<6x128xf32> to vector<1x128xf32>
    %9 = vector.extract_strided_slice %6 {offsets = [2, 0], sizes = [1, 128], strides = [1, 1]} : vector<6x128xf32> to vector<1x128xf32>
    %10 = vector.extract_strided_slice %6 {offsets = [3, 0], sizes = [1, 128], strides = [1, 1]} : vector<6x128xf32> to vector<1x128xf32>
    %11 = vector.extract_strided_slice %6 {offsets = [4, 0], sizes = [1, 128], strides = [1, 1]} : vector<6x128xf32> to vector<1x128xf32>
    %12 = vector.extract_strided_slice %6 {offsets = [5, 0], sizes = [1, 128], strides = [1, 1]} : vector<6x128xf32> to vector<1x128xf32>
    %cst = arith.constant dense<0.000000e+00> : vector<128xf32>
    %13 = vector.multi_reduction <add>, %4, %cst [1] : vector<128x128xf32> to vector<128xf32>
    %14 = vector.shape_cast %13 : vector<128xf32> to vector<128x1xf32>
    %cst_6 = arith.constant 1.280000e+02 : f32
    %15 = vector.broadcast %cst_6 : f32 to vector<128x1xf32>
    %16 = arith.divf %14, %15 : vector<128x1xf32>
    %17 = vector.broadcast %16 : vector<128x1xf32> to vector<128x128xf32>
    %18 = arith.subf %4, %17 : vector<128x128xf32>
    %19 = arith.mulf %18, %18 : vector<128x128xf32>
    %cst_7 = arith.constant dense<0.000000e+00> : vector<128xf32>
    %20 = vector.multi_reduction <add>, %19, %cst_7 [1] : vector<128x128xf32> to vector<128xf32>
    %21 = vector.shape_cast %20 : vector<128xf32> to vector<128x1xf32>
    %cst_8 = arith.constant 1.280000e+02 : f32
    %22 = vector.broadcast %cst_8 : f32 to vector<128x1xf32>
    %23 = arith.divf %21, %22 : vector<128x1xf32>
    %24 = vector.broadcast %16 : vector<128x1xf32> to vector<128x128xf32>
    %25 = arith.subf %4, %24 : vector<128x128xf32>
    %cst_9 = arith.constant 9.99999974E-6 : f32
    %26 = vector.broadcast %cst_9 : f32 to vector<128x1xf32>
    %27 = arith.addf %23, %26 : vector<128x1xf32>
    %28 = math.rsqrt %27 : vector<128x1xf32>
    %29 = vector.broadcast %28 : vector<128x1xf32> to vector<128x128xf32>
    %30 = arith.mulf %25, %29 : vector<128x128xf32>
    %31 = vector.broadcast %7 : vector<1x128xf32> to vector<128x128xf32>
    %32 = arith.mulf %30, %31 : vector<128x128xf32>
    %33 = vector.broadcast %8 : vector<1x128xf32> to vector<128x128xf32>
    %34 = arith.addf %32, %33 : vector<128x128xf32>
    %35 = arith.truncf %34 : vector<128x128xf32> to vector<128x128xbf16>
    %c0_i32_10 = arith.constant 0 : i32
    %c4_i32 = arith.constant 4 : i32
    %36 = arith.addi %c0_i32_10, %c4_i32 : i32
    %c1_i32 = arith.constant 1 : i32
    scf.for %arg13 = %c0_i32_10 to %36 step %c1_i32  : i32 {
      %c0_48 = arith.constant 0 : index
      %102 = arith.index_cast %arg13 : i32 to index
      %c0_49 = arith.constant 0 : index
      %c0_50 = arith.constant 0 : index
      %103 = vector.load %arg3[%c0_48, %102, %c0_49, %c0_50] : memref<1x4x128x96xbf16, #tpu.memory_space<vmem>>, vector<1x1x128x96xbf16>
      %104 = vector.shape_cast %103 : vector<1x1x128x96xbf16> to vector<128x96xbf16>
      %cst_51 = arith.constant dense<0.000000e+00> : vector<128x96xf32>
      %105 = tpu.matmul %35, %104, %cst_51 {dimension_numbers = #tpu.dot_dimension_numbers<[1], [0], [0], [1], [0, 0, 1, 1], [], []>} : vector<128x128xbf16>, vector<128x96xbf16>, vector<128x96xf32> -> vector<128x96xf32>
      %106 = arith.truncf %105 : vector<128x96xf32> to vector<128x96xbf16>
      %107 = vector.extract_strided_slice %106 {offsets = [0, 0], sizes = [128, 32], strides = [1, 1]} : vector<128x96xbf16> to vector<128x32xbf16>
      %108 = vector.shape_cast %107 : vector<128x32xbf16> to vector<2x64x32xbf16>
      %109 = vector.extract_strided_slice %106 {offsets = [0, 32], sizes = [128, 32], strides = [1, 1]} : vector<128x96xbf16> to vector<128x32xbf16>
      %110 = vector.shape_cast %109 : vector<128x32xbf16> to vector<2x64x32xbf16>
      %111 = vector.extract_strided_slice %106 {offsets = [0, 64], sizes = [128, 32], strides = [1, 1]} : vector<128x96xbf16> to vector<128x32xbf16>
      %112 = vector.shape_cast %111 : vector<128x32xbf16> to vector<2x64x32xbf16>
      "tpu.trace_start"() <{level = 10 : i32, message = "bqd,bkd->bqk"}> : () -> ()
      %cst_52 = arith.constant dense<0.000000e+00> : vector<2x64x64xf32>
      %113 = tpu.matmul %108, %110, %cst_52 {dimension_numbers = #tpu.dot_dimension_numbers<[2], [2], [1], [1], [0, 0, 0, 1, 1, 1], [0], [0]>} : vector<2x64x32xbf16>, vector<2x64x32xbf16>, vector<2x64x64xf32> -> vector<2x64x64xf32>
      "tpu.trace_stop"() : () -> ()
      %cst_53 = arith.constant dense<0xFF800000> : vector<2x64xf32>
      %114 = vector.multi_reduction <maximumf>, %113, %cst_53 [2] : vector<2x64x64xf32> to vector<2x64xf32>
      %115 = vector.shape_cast %114 : vector<2x64xf32> to vector<2x64x1xf32>
      %116 = vector.broadcast %115 : vector<2x64x1xf32> to vector<2x64x64xf32>
      %117 = arith.subf %113, %116 : vector<2x64x64xf32>
      %118 = math.exp %117 : vector<2x64x64xf32>
      %cst_54 = arith.constant dense<0.000000e+00> : vector<2x64xf32>
      %119 = vector.multi_reduction <add>, %118, %cst_54 [2] : vector<2x64x64xf32> to vector<2x64xf32>
      %120 = vector.shape_cast %119 : vector<2x64xf32> to vector<2x64x1xf32>
      %121 = tpu.reciprocal %120 {approx = true} : vector<2x64x1xf32> -> vector<2x64x1xf32>
      %122 = vector.broadcast %121 : vector<2x64x1xf32> to vector<2x64x64xf32>
      %123 = arith.mulf %118, %122 : vector<2x64x64xf32>
      %124 = arith.truncf %123 : vector<2x64x64xf32> to vector<2x64x64xbf16>
      "tpu.trace_start"() <{level = 10 : i32, message = "bqk,bkd->bqd"}> : () -> ()
      %cst_55 = arith.constant dense<0.000000e+00> : vector<2x64x32xf32>
      %125 = tpu.matmul %124, %112, %cst_55 {dimension_numbers = #tpu.dot_dimension_numbers<[2], [1], [1], [2], [0, 0, 0, 1, 1, 2], [0], [0]>} : vector<2x64x64xbf16>, vector<2x64x32xbf16>, vector<2x64x32xf32> -> vector<2x64x32xf32>
      "tpu.trace_stop"() : () -> ()
      %126 = vector.shape_cast %125 : vector<2x64x32xf32> to vector<128x32xf32>
      %127 = arith.truncf %126 : vector<128x32xf32> to vector<128x32xbf16>
      %128 = arith.index_cast %arg13 : i32 to index
      %c0_56 = arith.constant 0 : index
      %c0_57 = arith.constant 0 : index
      %129 = vector.load %arg12[%128, %c0_56, %c0_57] : memref<4x128x32xbf16, #tpu.memory_space<vmem>>, vector<1x128x32xbf16>
      %130 = vector.shape_cast %129 : vector<1x128x32xbf16> to vector<128x32xbf16>
      %131 = vector.shape_cast %127 : vector<128x32xbf16> to vector<1x128x32xbf16>
      tpu.vector_store %arg12[%128, %c0_56, %c0_57], %131 {strides = array<i32>} : memref<4x128x32xbf16, #tpu.memory_space<vmem>>, vector<1x128x32xbf16>,
    }
    %c4_i32_11 = arith.constant 4 : i32
    %c0_12 = arith.constant 0 : index
    %c0_13 = arith.constant 0 : index
    %c0_14 = arith.constant 0 : index
    %37 = vector.load %arg12[%c0_12, %c0_13, %c0_14] : memref<4x128x32xbf16, #tpu.memory_space<vmem>>, vector<1x128x32xbf16>
    %38 = vector.shape_cast %37 : vector<1x128x32xbf16> to vector<128x32xbf16>
    %c1 = arith.constant 1 : index
    %c0_15 = arith.constant 0 : index
    %c0_16 = arith.constant 0 : index
    %39 = vector.load %arg12[%c1, %c0_15, %c0_16] : memref<4x128x32xbf16, #tpu.memory_space<vmem>>, vector<1x128x32xbf16>
    %40 = vector.shape_cast %39 : vector<1x128x32xbf16> to vector<128x32xbf16>
    %c2 = arith.constant 2 : index
    %c0_17 = arith.constant 0 : index
    %c0_18 = arith.constant 0 : index
    %41 = vector.load %arg12[%c2, %c0_17, %c0_18] : memref<4x128x32xbf16, #tpu.memory_space<vmem>>, vector<1x128x32xbf16>
    %42 = vector.shape_cast %41 : vector<1x128x32xbf16> to vector<128x32xbf16>
    %c3 = arith.constant 3 : index
    %c0_19 = arith.constant 0 : index
    %c0_20 = arith.constant 0 : index
    %43 = vector.load %arg12[%c3, %c0_19, %c0_20] : memref<4x128x32xbf16, #tpu.memory_space<vmem>>, vector<1x128x32xbf16>
    %44 = vector.shape_cast %43 : vector<1x128x32xbf16> to vector<128x32xbf16>
    %45 = tpu.concatenate %38, %40, %42, %44 in 1 : vector<128x32xbf16>, vector<128x32xbf16>, vector<128x32xbf16>, vector<128x32xbf16> -> vector<128x128xbf16>
    %c0_21 = arith.constant 0 : index
    %c0_22 = arith.constant 0 : index
    %c0_23 = arith.constant 0 : index
    %46 = vector.load %arg4[%c0_21, %c0_22, %c0_23] : memref<1x128x128xbf16, #tpu.memory_space<vmem>>, vector<1x128x128xbf16>
    %47 = vector.shape_cast %46 : vector<1x128x128xbf16> to vector<128x128xbf16>
    %cst_24 = arith.constant dense<0.000000e+00> : vector<128x128xf32>
    %48 = tpu.matmul %45, %47, %cst_24 {dimension_numbers = #tpu.dot_dimension_numbers<[1], [0], [0], [1], [0, 0, 1, 1], [], []>} : vector<128x128xbf16>, vector<128x128xbf16>, vector<128x128xf32> -> vector<128x128xf32>
    %49 = arith.addf %4, %48 : vector<128x128xf32>
    %50 = vector.broadcast %9 : vector<1x128xf32> to vector<128x128xf32>
    %51 = arith.addf %49, %50 : vector<128x128xf32>
    %cst_25 = arith.constant dense<0.000000e+00> : vector<128xf32>
    %52 = vector.multi_reduction <add>, %51, %cst_25 [1] : vector<128x128xf32> to vector<128xf32>
    %53 = vector.shape_cast %52 : vector<128xf32> to vector<128x1xf32>
    %cst_26 = arith.constant 1.280000e+02 : f32
    %54 = vector.broadcast %cst_26 : f32 to vector<128x1xf32>
    %55 = arith.divf %53, %54 : vector<128x1xf32>
    %56 = vector.broadcast %55 : vector<128x1xf32> to vector<128x128xf32>
    %57 = arith.subf %51, %56 : vector<128x128xf32>
    %58 = arith.mulf %57, %57 : vector<128x128xf32>
    %cst_27 = arith.constant dense<0.000000e+00> : vector<128xf32>
    %59 = vector.multi_reduction <add>, %58, %cst_27 [1] : vector<128x128xf32> to vector<128xf32>
    %60 = vector.shape_cast %59 : vector<128xf32> to vector<128x1xf32>
    %cst_28 = arith.constant 1.280000e+02 : f32
    %61 = vector.broadcast %cst_28 : f32 to vector<128x1xf32>
    %62 = arith.divf %60, %61 : vector<128x1xf32>
    %63 = vector.broadcast %55 : vector<128x1xf32> to vector<128x128xf32>
    %64 = arith.subf %51, %63 : vector<128x128xf32>
    %cst_29 = arith.constant 9.99999974E-6 : f32
    %65 = vector.broadcast %cst_29 : f32 to vector<128x1xf32>
    %66 = arith.addf %62, %65 : vector<128x1xf32>
    %67 = math.rsqrt %66 : vector<128x1xf32>
    %68 = vector.broadcast %67 : vector<128x1xf32> to vector<128x128xf32>
    %69 = arith.mulf %64, %68 : vector<128x128xf32>
    %70 = vector.broadcast %10 : vector<1x128xf32> to vector<128x128xf32>
    %71 = arith.mulf %69, %70 : vector<128x128xf32>
    %72 = vector.broadcast %11 : vector<1x128xf32> to vector<128x128xf32>
    %73 = arith.addf %71, %72 : vector<128x128xf32>
    %74 = arith.truncf %73 : vector<128x128xf32> to vector<128x128xbf16>
    %c0_30 = arith.constant 0 : index
    %c0_31 = arith.constant 0 : index
    %c0_32 = arith.constant 0 : index
    %75 = vector.load %arg5[%c0_30, %c0_31, %c0_32] : memref<1x128x384xbf16, #tpu.memory_space<vmem>>, vector<1x128x384xbf16>
    %76 = vector.shape_cast %75 : vector<1x128x384xbf16> to vector<128x384xbf16>
    %cst_33 = arith.constant dense<0.000000e+00> : vector<128x384xf32>
    %77 = tpu.matmul %74, %76, %cst_33 {dimension_numbers = #tpu.dot_dimension_numbers<[1], [0], [0], [1], [0, 0, 1, 1], [], []>} : vector<128x128xbf16>, vector<128x384xbf16>, vector<128x384xf32> -> vector<128x384xf32>
    %c0_34 = arith.constant 0 : index
    %c0_35 = arith.constant 0 : index
    %c0_36 = arith.constant 0 : index
    %78 = vector.load %arg8[%c0_34, %c0_35, %c0_36] : memref<1x1x384xf32, #tpu.memory_space<vmem>>, vector<1x1x384xf32>
    %79 = vector.shape_cast %78 : vector<1x1x384xf32> to vector<1x384xf32>
    %80 = vector.broadcast %79 : vector<1x384xf32> to vector<128x384xf32>
    %81 = arith.addf %77, %80 : vector<128x384xf32>
    %cst_37 = arith.constant 5.000000e-01 : f32
    %82 = vector.broadcast %cst_37 : f32 to vector<128x384xf32>
    %83 = arith.mulf %82, %81 : vector<128x384xf32>
    %cst_38 = arith.constant 0.707106769 : f32
    %84 = vector.broadcast %cst_38 : f32 to vector<128x384xf32>
    %85 = arith.mulf %81, %84 : vector<128x384xf32>
    %86 = math.erf %85 : vector<128x384xf32>
    %cst_39 = arith.constant 1.000000e+00 : f32
    %87 = vector.broadcast %cst_39 : f32 to vector<128x384xf32>
    %88 = arith.addf %87, %86 : vector<128x384xf32>
    %89 = arith.mulf %83, %88 : vector<128x384xf32>
    %90 = arith.truncf %89 : vector<128x384xf32> to vector<128x384xbf16>
    %c0_40 = arith.constant 0 : index
    %c0_41 = arith.constant 0 : index
    %c0_42 = arith.constant 0 : index
    %91 = vector.load %arg6[%c0_40, %c0_41, %c0_42] : memref<1x384x128xbf16, #tpu.memory_space<vmem>>, vector<1x384x128xbf16>
    %92 = vector.shape_cast %91 : vector<1x384x128xbf16> to vector<384x128xbf16>
    %cst_43 = arith.constant dense<0.000000e+00> : vector<128x128xf32>
    %93 = tpu.matmul %90, %92, %cst_43 {dimension_numbers = #tpu.dot_dimension_numbers<[1], [0], [0], [1], [0, 0, 1, 1], [], []>} : vector<128x384xbf16>, vector<384x128xbf16>, vector<128x128xf32> -> vector<128x128xf32>
    %94 = vector.broadcast %12 : vector<1x128xf32> to vector<128x128xf32>
    %95 = arith.addf %93, %94 : vector<128x128xf32>
    %96 = arith.addf %51, %95 : vector<128x128xf32>
    %97 = vector.shape_cast %96 : vector<128x128xf32> to vector<2x64x128xf32>
    %c0_44 = arith.constant 0 : index
    %c0_45 = arith.constant 0 : index
    %c0_46 = arith.constant 0 : index
    %98 = vector.load %arg11[%c0_44, %c0_45, %c0_46] : memref<2x64x128xf32, #tpu.memory_space<vmem>>, vector<2x64x128xf32>
    tpu.vector_store %arg11[%c0_44, %c0_45, %c0_46], %97 {strides = array<i32>} : memref<2x64x128xf32, #tpu.memory_space<vmem>>, vector<2x64x128xf32>,
    %c2_i32 = arith.constant 2 : i32
    %99 = arith.cmpi eq, %arg1, %c2_i32 : i32
    %100 = arith.extui %99 : i1 to i32
    %c0_i32_47 = arith.constant 0 : i32
    %101 = arith.cmpi ne, %100, %c0_i32_47 : i32
    scf.if %101 {
      %c0_48 = arith.constant 0 : index
      %c0_49 = arith.constant 0 : index
      %102 = vector.load %arg9[%c0_48, %c0_49] : memref<2x128xf32, #tpu.memory_space<vmem>>, vector<2x128xf32>
      %103 = vector.extract_strided_slice %102 {offsets = [0, 0], sizes = [1, 128], strides = [1, 1]} : vector<2x128xf32> to vector<1x128xf32>
      %104 = vector.extract_strided_slice %102 {offsets = [1, 0], sizes = [1, 128], strides = [1, 1]} : vector<2x128xf32> to vector<1x128xf32>
      %cst_50 = arith.constant dense<0.000000e+00> : vector<128xf32>
      %105 = vector.multi_reduction <add>, %96, %cst_50 [1] : vector<128x128xf32> to vector<128xf32>
      %106 = vector.shape_cast %105 : vector<128xf32> to vector<128x1xf32>
      %cst_51 = arith.constant 1.280000e+02 : f32
      %107 = vector.broadcast %cst_51 : f32 to vector<128x1xf32>
      %108 = arith.divf %106, %107 : vector<128x1xf32>
      %109 = vector.broadcast %108 : vector<128x1xf32> to vector<128x128xf32>
      %110 = arith.subf %96, %109 : vector<128x128xf32>
      %111 = arith.mulf %110, %110 : vector<128x128xf32>
      %cst_52 = arith.constant dense<0.000000e+00> : vector<128xf32>
      %112 = vector.multi_reduction <add>, %111, %cst_52 [1] : vector<128x128xf32> to vector<128xf32>
      %113 = vector.shape_cast %112 : vector<128xf32> to vector<128x1xf32>
      %cst_53 = arith.constant 1.280000e+02 : f32
      %114 = vector.broadcast %cst_53 : f32 to vector<128x1xf32>
      %115 = arith.divf %113, %114 : vector<128x1xf32>
      %116 = vector.broadcast %108 : vector<128x1xf32> to vector<128x128xf32>
      %117 = arith.subf %96, %116 : vector<128x128xf32>
      %cst_54 = arith.constant 9.99999974E-6 : f32
      %118 = vector.broadcast %cst_54 : f32 to vector<128x1xf32>
      %119 = arith.addf %115, %118 : vector<128x1xf32>
      %120 = math.rsqrt %119 : vector<128x1xf32>
      %121 = vector.broadcast %120 : vector<128x1xf32> to vector<128x128xf32>
      %122 = arith.mulf %117, %121 : vector<128x128xf32>
      %123 = vector.broadcast %103 : vector<1x128xf32> to vector<128x128xf32>
      %124 = arith.mulf %122, %123 : vector<128x128xf32>
      %125 = vector.broadcast %104 : vector<1x128xf32> to vector<128x128xf32>
      %126 = arith.addf %124, %125 : vector<128x128xf32>
      %127 = vector.shape_cast %126 : vector<128x128xf32> to vector<2x64x128xf32>
      %c0_55 = arith.constant 0 : index
      %c0_56 = arith.constant 0 : index
      %c0_57 = arith.constant 0 : index
      %128 = vector.load %arg10[%c0_55, %c0_56, %c0_57] : memref<2x64x128xf32, #tpu.memory_space<vmem>>, vector<2x64x128xf32>
      tpu.vector_store %arg10[%c0_55, %c0_56, %c0_57], %127 {strides = array<i32>} : memref<2x64x128xf32, #tpu.memory_space<vmem>>, vector<2x64x128xf32>,
    } else {
    }
    return
  }
  func.func @transform_0(%arg0: i32, %arg1: i32) -> (i32, i32, i32) {
    %c0_i32 = arith.constant 0 : i32
    %c0_i32_0 = arith.constant 0 : i32
    %c0_i32_1 = arith.constant 0 : i32
    return %arg0, %c0_i32, %c0_i32_0 : i32, i32, i32
  }
  func.func @transform_1(%arg0: i32, %arg1: i32) -> (i32, i32, i32, i32) {
    %c0_i32 = arith.constant 0 : i32
    %c0_i32_0 = arith.constant 0 : i32
    %c0_i32_1 = arith.constant 0 : i32
    %c0_i32_2 = arith.constant 0 : i32
    return %arg1, %c0_i32, %c0_i32_0, %c0_i32_1 : i32, i32, i32, i32
  }
  func.func @transform_2(%arg0: i32, %arg1: i32) -> (i32, i32, i32) {
    %c0_i32 = arith.constant 0 : i32
    %c0_i32_0 = arith.constant 0 : i32
    %c0_i32_1 = arith.constant 0 : i32
    return %arg1, %c0_i32, %c0_i32_0 : i32, i32, i32
  }
  func.func @transform_3(%arg0: i32, %arg1: i32) -> (i32, i32, i32) {
    %c0_i32 = arith.constant 0 : i32
    %c0_i32_0 = arith.constant 0 : i32
    %c0_i32_1 = arith.constant 0 : i32
    return %arg1, %c0_i32, %c0_i32_0 : i32, i32, i32
  }
  func.func @transform_4(%arg0: i32, %arg1: i32) -> (i32, i32, i32) {
    %c0_i32 = arith.constant 0 : i32
    %c0_i32_0 = arith.constant 0 : i32
    %c0_i32_1 = arith.constant 0 : i32
    return %arg1, %c0_i32, %c0_i32_0 : i32, i32, i32
  }
  func.func @transform_5(%arg0: i32, %arg1: i32) -> (i32, i32, i32) {
    %c0_i32 = arith.constant 0 : i32
    %c0_i32_0 = arith.constant 0 : i32
    %c0_i32_1 = arith.constant 0 : i32
    return %arg1, %c0_i32, %c0_i32_0 : i32, i32, i32
  }
  func.func @transform_6(%arg0: i32, %arg1: i32) -> (i32, i32, i32) {
    %c0_i32 = arith.constant 0 : i32
    %c0_i32_0 = arith.constant 0 : i32
    %c0_i32_1 = arith.constant 0 : i32
    return %arg1, %c0_i32, %c0_i32_0 : i32, i32, i32
  }
  func.func @transform_7(%arg0: i32, %arg1: i32) -> (i32, i32) {
    %c0_i32 = arith.constant 0 : i32
    %c0_i32_0 = arith.constant 0 : i32
    %c0_i32_1 = arith.constant 0 : i32
    return %c0_i32, %c0_i32_0 : i32, i32
  }
  func.func @transform_8(%arg0: i32, %arg1: i32) -> (i32, i32, i32) {
    %c0_i32 = arith.constant 0 : i32
    %c0_i32_0 = arith.constant 0 : i32
    %c0_i32_1 = arith.constant 0 : i32
    return %arg0, %c0_i32, %c0_i32_0 : i32, i32, i32
  }
}

</mosaic_0001>

<bundles_post_ra>
// kernel: tpu_custom_call.1
= control target key start
LH: loop header
LB: loop body
LE: loop exit
PB: predicated region body
PF: predicated region fallthrough
CT: control target
= control target key end

     0   :  { %s6188_s0 = inlined_call_operand.hbm [shape: f32[2,64,128], index: 0, kind: input, shape index: {}]   ;;  %s6189_s1 = inlined_call_operand.vmem [shape: bf16[3,4,128,96], index: 1, kind: input, shape index: {}]   ;;  %s6190_s2 = inlined_call_operand.vmem [shape: bf16[3,128,128], index: 2, kind: input, shape index: {}]   ;;  %s6191_s3 = inlined_call_operand.vmem [shape: bf16[3,128,384], index: 3, kind: input, shape index: {}]   ;;  %s6192_s4 = inlined_call_operand.vmem [shape: bf16[3,384,128], index: 4, kind: input, shape index: {}]   ;;  %s6193_s5 = inlined_call_operand.hbm [shape: f32[3,6,128], index: 5, kind: input, shape index: {}]   ;;  %s6194_s6 = inlined_call_operand.vmem [shape: f32[3,1,384], index: 6, kind: input, shape index: {}]   ;;  %s6195_s7 = inlined_call_operand.vmem [shape: f32[2,128], index: 7, kind: input, shape index: {}]   ;;  %s6196_s8 = inlined_call_operand.hbm [shape: f32[2,64,128], index: 8, kind: output, shape index: {}]  }
   0x1   :  { %6222 = sst [smem:[#allocation26_spill]] %s6188_s0 }
   0x2   :  { %6223 = sst [smem:[#allocation27_spill]] %s6193_s5 }
   0x3   :  { %13 = vsyncpa [#allocation5], 0 }
   0x4   :  { %14 = vsyncpa [#allocation8], 0 }
   0x5   :  { %16 = vsyncpa [#allocation8 + $0x1], 0 }
   0x6   :  { %17 = vsyncpa [#allocation6], 0  ;;  %s4653_s27 = smov 0   ;;  %s4655_s28 = smov 0  }
   0x7   :  { %s4657_s29 = smov 0   ;;  %s4659_s30 = smov 0  }
   0x8   :  { %s4661_s9 = smov 0   ;;  %s4663_s10 = smov 0  }
   0x9 LB: > { %s6201_s11 = sadd.s32 4294967295, %s4589_s10   ;;  %p185_p0 = scmp.ne.s32.totalorder %s4573_s28, %s4569_s27  ;;  %s4589_s10 = sphi %s4663_s10, %s23_s10   ;;  %s4585_s9 = sphi %s4661_s9, %s6291_s9   ;;  %s4581_s30 = sphi %s4659_s30, %s6290_s30   ;;  %s4577_s29 = sphi %s4657_s29, %s6289_s29   ;;  %s4573_s28 = sphi %s4655_s28, %s6288_s28   ;;  %s4569_s27 = sphi %s4653_s27, %s6287_s27  }
   0xa   : > { %p4685_p1 = scmp.eq.s32.totalorder %s6201_s11, 0  ;;  %p3554_p2 = scmp.ge.s32.totalorder %s4589_s10, 1 }
   0xb   : > { %p269_p3 = scmp.lt.s32.totalorder %s4589_s10, 4  ;;  %s4595_s15 = smov [#allocation4]  }
   0xc   : > { %s6224_s12 = scalar_select %p4685_p1, 1, 0 }
   0xd   : > { %p4693_p4 = por %p4685_p1, %p185_p0  ;;  %p4697_p5 = pnand %p3554_p2, %p269_p3 }
   0xe   : > { %s285_s16 = sshll.u32 %s4595_s15, 4  ;;  %s32_s18 = sadd.s32 1, %s4585_s9  ;;  %s286_s16 = int_to_ptr.vmem [resolvable:$true] %s285_s16 }
   0xf   : > { %s6225_s13 = scalar_select %p4693_p4, 1, 0 }
  0x10   : > { %s6226_s14 = scalar_select %p4697_p5, 1, 0 }
  0x11   : > { %p4034_p6 = pneg %p4697_p5  ;;  %s6228_s0 = sld [smem:[#allocation26_spill]] }
  0x13   : > { %p4705_p7 = pnand %p4034_p6, %p4685_p1 }
  0x15   : > { %p4445_p9 = pneg %p4705_p7 }
  0x17   : > { %s4443_s21 = scalar_lea.hbm %s6228_s0, 2048 }
  0x18   : > { %p4444_p8 = scmp.ne.s32.totalorder %s6228_s0, %s4443_s21  ;;  %p4450_p12 = scmp.lt.u32.totalorder %s4443_s21, %s6228_s0 }
  0x1a   : > { %p4446_p10 = pnand %p4445_p9, %p4444_p8 }
  0x1c   : > { %p4447_p11 = pneg %p4446_p10 }
  0x1e   : > { %p4452_p13 = pnand %p4450_p12, %p4447_p11 }
  0x20   : > { %4455 = shalt.err (!%p4452_p13)
}
  0x21   : > { %s4456_s26 = scalar_lea.vmem %s286_s16, 2048  ;;  %p4464_p6 = scmp.lt.s32.totalorder %s286_s16, %s286_s16 }
  0x22   : > { %p4457_p0 = scmp.ne.s32.totalorder %s286_s16, %s4456_s26  ;;  %p4465_p4 = scmp.lt.s32.totalorder %s4456_s26, %s4456_s26 }
  0x24   : > { %p4459_p2 = pnand %p4457_p0, %p4445_p9  ;;  %p4466_p1 = por %p4465_p4, %p4464_p6 }
  0x26   : > { %p4460_p3 = pneg %p4459_p2 }
  0x28   : > { %p4467_p5 = pnand %p4466_p1, %p4460_p3 }
  0x2a   : > { %4470 = shalt.err (!%p4467_p5)
}
  0x2b   : > { %s4596_s27 = smov 128   ;;  %s4597_s15 = smov 8  }
  0x2c   : > { %4037 = dma.hbm_to_vmem [thread:$0]  (!%p4705_p7), %s6228_s0, 2048, %s286_s16, [#allocation5], %s4596_s27, %s4596_s27, %s4597_s15  }
  0x2d   : > { %p33_p4 = scmp.ge.s32.totalorder %s32_s18, 3  ;;  %s172_s21 = sadd.s32 1, %s4577_s29 }
  0x2e   : > { %p179_p1 = scmp.ne.s32.totalorder %s4577_s29, %s4573_s28  ;;  %p180_p5 = scmp.eq.s32.totalorder %s4589_s10, 0 }
  0x2f   : > { %s6293_s18 = smov (%p33_p4, %s32_s18), 0  ;;  %p4043_p9 = scmp.lt.s32.totalorder %s4589_s10, 3 }
  0x30   : > { %6229 = sst [smem:[#allocation13_spill]] %s6293_s18  ;;  %p181_p8 = por %p180_p5, %p179_p1 }
  0x31   : > { %s169_s22 = ssub.s32 %s4585_s9, %s6293_s18  ;;  %s334_s23 = sand.u32 1, %s4577_s29  }
  0x32   : > { %p170_p10 = scmp.eq.s32.totalorder %s169_s22, 0  ;;  %s3557_s24 = sshll.u32 %s334_s23, 3 }
  0x33   : > { %s3558_s25 = sshll.u32 %s4585_s9, 7  ;;  %s6230_s5 = sld [smem:[#allocation27_spill]] }
  0x34   : > { %s4738_s26 = scalar_select %p170_p10, %s4577_s29, %s172_s21  }
  0x35   : > { %s338_s27 = scalar_lea.vmem [#allocation7], %s3557_s24  ;;  %p4745_p7 = pnand %p4043_p9, %p181_p8 }
  0x36   : > { %s345_s15 = sshll.u32 %s338_s27, 4  ;;  %s335_s20 = scalar_lea.sflag [#allocation8], %s334_s23  ;;  %s4749_s15 = int_to_ptr.vmem [resolvable:$true] %s345_s15 }
  0x37   : > { %p4473_p12 = pneg %p4745_p7 }
  0x39   : > { %s4743_s16 = scalar_lea.hbm %s6230_s5, %s3558_s25  ;;  %s4476_s24 = scalar_lea.hbm %s6230_s5, 384 }
  0x3a   : > { %s4471_s21 = scalar_lea.hbm %s4743_s16, 128  ;;  %p4477_p2 = scmp.lt.u32.totalorder %s4743_s16, %s6230_s5 }
  0x3b   : > { %p4472_p11 = scmp.ne.s32.totalorder %s4743_s16, %s4471_s21  ;;  %p4478_p3 = scmp.lt.u32.totalorder %s4476_s24, %s4471_s21 }
  0x3c   : > { %p4480_p4 = scmp.lt.u32.totalorder %s4471_s21, %s4743_s16 }
  0x3d   : > { %p4474_p13 = pnand %p4473_p12, %p4472_p11  ;;  %p4479_p6 = por %p4478_p3, %p4477_p2 }
  0x3f   : > { %p4475_p0 = pneg %p4474_p13  ;;  %p4481_p1 = por %p4480_p4, %p4479_p6 }
  0x41   : > { %p4482_p5 = pnand %p4481_p1, %p4475_p0 }
  0x43   : > { %4485 = shalt.err (!%p4482_p5)
}
  0x44   : > { %s4486_s23 = scalar_lea.vmem %s4749_s15, 128  ;;  %s4598_s27 = smov [#allocation7]  }
  0x45   : > { %p4487_p8 = scmp.ne.s32.totalorder %s4749_s15, %s4486_s23  ;;  %s4491_s11 = sshll.u32 %s4598_s27, 4  ;;  %s4492_s11 = int_to_ptr.vmem [resolvable:$false] %s4491_s11 }
  0x46   : > { %s4493_s22 = scalar_lea.vmem %s4492_s11, 256  ;;  %p4494_p11 = scmp.lt.s32.totalorder %s4749_s15, %s4492_s11 }
  0x47   : > { %p4489_p9 = pnand %p4487_p8, %p4473_p12  ;;  %p4495_p13 = scmp.lt.s32.totalorder %s4493_s22, %s4486_s23 }
  0x49   : > { %p4490_p10 = pneg %p4489_p9  ;;  %p4496_p2 = por %p4495_p13, %p4494_p11 }
  0x4b   : > { %p4497_p3 = pnand %p4496_p2, %p4490_p10 }
  0x4d   : > { %4500 = shalt.err (!%p4497_p3)
}
  0x4e   : > { %4041 = dma.hbm_to_vmem [thread:$0]  (!%p4745_p7), %s4743_s16, 128, %s4749_s15, %s335_s20  }
  0x4f   : > { %p6232_p0 = scmp.ne.s32.totalorder %s6226_s14, 0 }
  0x51   : > { %361 = sbr.rel (%p6232_p0) target bundleno = 3185 (0xc71), region = 52 }
  0x58   : > { %p6233_p12 = scmp.ne.s32.totalorder %s6224_s12, 0 }
  0x5a   : > { %4556 = dma.done.wait (%p6233_p12), [#allocation5], 2048  }
  0x5b   : > { %4558 = vsyncadd (%p6233_p12), [#allocation5], 4294965248  ;;  %s367_s21 = sand.u32 1, %s4573_s28   ;;  %p6234_p6 = scmp.ne.s32.totalorder %s6225_s13, 0 }
  0x5c   : > { %s4783_s24 = sshll.u32 %s367_s21, 3  ;;  %s368_s25 = scalar_lea.sflag [#allocation8], %s367_s21 }
  0x5d   : > { %4560 = dma.done.wait (%p6234_p6), %s368_s25, 128  }
  0x5e   : > { %4562 = vsyncadd (%p6234_p6), %s368_s25, 4294967168  ;;  %p424_p7 = scmp.lt.s32.totalorder %s4581_s30, 2  ;;  %p3568_p4 = scmp.ne.s32.totalorder %s4581_s30, 0 }
  0x5f   : > { %v454_v0 = vld [vmem:[#allocation4] sm:$0xff] (!%p3568_p4)  ;;  %v455_v1 = vld [vmem:[#allocation4 + $0x8] sm:$0xff] (!%p3568_p4)  ;;  %v456_v2 = vld [vmem:[#allocation4 + $0x10] sm:$0xff] (!%p3568_p4) }
  0x60   : > { %s425_s14 = scalar_select %p424_p7, %s4581_s30, 2 }
  0x61   : > { %453 = sbr.rel (%p3568_p4) target bundleno = 105 (0x69), region = 64  ;;  %470 = vst [vmem:[#allocation2] sm:$0xff] (!%p3568_p4), %v454_v0  ;;  %471 = vst [vmem:[#allocation2 + $0x8] sm:$0xff] (!%p3568_p4), %v455_v1  ;;  %v457_v3 = vld [vmem:[#allocation4 + $0x18] sm:$0xff] (!%p3568_p4)  ;;  %v458_v4 = vld [vmem:[#allocation4 + $0x20] sm:$0xff] (!%p3568_p4) }
  0x62   : > { %s3658_s16 = sshll.u32 %s425_s14, 8  ;;  %s3659_s12 = sshll.u32 %s425_s14, 6  ;;  %472 = vst [vmem:[#allocation2 + $0x10] sm:$0xff] (!%p3568_p4), %v456_v2  ;;  %v459_v5 = vld [vmem:[#allocation4 + $0x28] sm:$0xff] (!%p3568_p4)  ;;  %473 = vst [vmem:[#allocation2 + $0x18] sm:$0xff] (!%p3568_p4), %v457_v3  ;;  %v460_v6 = vld [vmem:[#allocation4 + $0x30] sm:$0xff] (!%p3568_p4) }
  0x63   : > { %s4795_s17 = scalar_lea.vmem %s6189_s1, %s3658_s16  ;;  %s4800_s11 = scalar_lea.vmem %s6190_s2, %s3659_s12  ;;  %474 = vst [vmem:[#allocation2 + $0x20] sm:$0xff] (!%p3568_p4), %v458_v4  ;;  %475 = vst [vmem:[#allocation2 + $0x28] sm:$0xff] (!%p3568_p4), %v459_v5  ;;  %v461_v7 = vld [vmem:[#allocation4 + $0x38] sm:$0xff] (!%p3568_p4)  ;;  %v462_v8 = vld [vmem:[#allocation4 + $0x40] sm:$0xff] (!%p3568_p4) }
  0x64   : > { %s4022_s22 = smul.u32 192, %s425_s14  ;;  %476 = vst [vmem:[#allocation2 + $0x30] sm:$0xff] (!%p3568_p4), %v460_v6  ;;  %477 = vst [vmem:[#allocation2 + $0x38] sm:$0xff] (!%p3568_p4), %v461_v7  ;;  %v463_v9 = vld [vmem:[#allocation4 + $0x48] sm:$0xff] (!%p3568_p4)  ;;  %v464_v10 = vld [vmem:[#allocation4 + $0x50] sm:$0xff] (!%p3568_p4) }
  0x65   : > { %s4023_s21 = smul.u32 3, %s425_s14  ;;  %478 = vst [vmem:[#allocation2 + $0x40] sm:$0xff] (!%p3568_p4), %v462_v8  ;;  %v465_v11 = vld [vmem:[#allocation4 + $0x58] sm:$0xff] (!%p3568_p4)  ;;  %479 = vst [vmem:[#allocation2 + $0x48] sm:$0xff] (!%p3568_p4), %v463_v9  ;;  %v466_v12 = vld [vmem:[#allocation4 + $0x60] sm:$0xff] (!%p3568_p4) }
  0x66   : > { %s4805_s19 = scalar_lea.vmem %s6191_s3, %s4022_s22  ;;  %s4810_s18 = scalar_lea.vmem %s6192_s4, %s4022_s22  ;;  %480 = vst [vmem:[#allocation2 + $0x50] sm:$0xff] (!%p3568_p4), %v464_v10  ;;  %481 = vst [vmem:[#allocation2 + $0x58] sm:$0xff] (!%p3568_p4), %v465_v11  ;;  %v467_v13 = vld [vmem:[#allocation4 + $0x68] sm:$0xff] (!%p3568_p4)  ;;  %v468_v14 = vld [vmem:[#allocation4 + $0x70] sm:$0xff] (!%p3568_p4) }
  0x67   : > { %s4815_s20 = scalar_lea.vmem %s6194_s6, %s4023_s21  ;;  %482 = vst [vmem:[#allocation2 + $0x60] sm:$0xff] (!%p3568_p4), %v466_v12  ;;  %483 = vst [vmem:[#allocation2 + $0x68] sm:$0xff] (!%p3568_p4), %v467_v13  ;;  %v469_v15 = vld [vmem:[#allocation4 + $0x78] sm:$0xff] (!%p3568_p4) }
  0x68   : > { %484 = vst [vmem:[#allocation2 + $0x70] sm:$0xff] %v468_v14  ;;  %485 = vst [vmem:[#allocation2 + $0x78] sm:$0xff] %v469_v15 }
  0x69 PF: > { %v4818_v16 = vld [vmem:[#allocation2] sm:$0xff]  ;;  %v4824_v18 = vld [vmem:[#allocation2 + $0x8] sm:$0xff]  ;;  %s6236_s0 = scalar_lea.vmem [#allocation7], %s4783_s24  ;;  %s5062_s5 = smov 0  }
  0x6a   : > { %v4820_v17 = vld [vmem:[#allocation2 + $0x10] sm:$0xff]  ;;  %503 = vadd.xlane.f32.xlu0 %v4818_v16  ;;  %v4826_v19 = vld [vmem:[#allocation2 + $0x18] sm:$0xff] }
  0x6b   : > { %507 = vadd.xlane.f32.xlu1 %v4820_v17  ;;  %v4830_v20 = vld [vmem:[#allocation2 + $0x20] sm:$0xff]  ;;  %v4832_v21 = vld [vmem:[#allocation2 + $0x28] sm:$0xff] }
  0x6c   : > { %v4836_v22 = vld [vmem:[#allocation2 + $0x30] sm:$0xff]  ;;  %v4838_v23 = vld [vmem:[#allocation2 + $0x38] sm:$0xff] }
  0x6d   : > { %v4842_v24 = vld [vmem:[#allocation2 + $0x40] sm:$0xff]  ;;  %v4844_v25 = vld [vmem:[#allocation2 + $0x48] sm:$0xff] }
  0x6e   : > { %505 = vadd.xlane.f32.xlu0 %v4824_v18  ;;  %v4848_v26 = vld [vmem:[#allocation2 + $0x50] sm:$0xff]  ;;  %v4850_v27 = vld [vmem:[#allocation2 + $0x58] sm:$0xff] }
  0x6f   : > { %509 = vadd.xlane.f32.xlu1 %v4826_v19  ;;  %v4854_v28 = vld [vmem:[#allocation2 + $0x60] sm:$0xff]  ;;  %v4856_v29 = vld [vmem:[#allocation2 + $0x68] sm:$0xff]  ;;  %v4860_v30 = vld [vmem:[#allocation2 + $0x70] sm:$0xff] }
  0x70   : > { %v4862_v31 = vld [vmem:[#allocation2 + $0x78] sm:$0xff] }
  0x72   : > { %511 = vadd.xlane.f32.xlu0 %v4830_v20 }
  0x73   : > { %513 = vadd.xlane.f32.xlu1 %v4832_v21 }
  0x76   : > { %515 = vadd.xlane.f32.xlu0 %v4836_v22 }
  0x77   : > { %517 = vadd.xlane.f32.xlu1 %v4838_v23 }
  0x7a   : > { %519 = vadd.xlane.f32.xlu0 %v4842_v24 }
  0x7b   : > { %521 = vadd.xlane.f32.xlu1 %v4844_v25 }
  0x7e   : > { %523 = vadd.xlane.f32.xlu0 %v4848_v26 }
  0x7f   : > { %525 = vadd.xlane.f32.xlu1 %v4850_v27 }
  0x82   : > { %527 = vadd.xlane.f32.xlu0 %v4854_v28 }
  0x83   : > { %529 = vadd.xlane.f32.xlu1 %v4856_v29 }
  0x86   : > { %531 = vadd.xlane.f32.xlu0 %v4860_v30 }
  0x87   : > { %533 = vadd.xlane.f32.xlu1 %v4862_v31 }
  0xf7   : > { %v504_v32 = vpop.xlane.xlu0 %503 }
  0xf8   : > { %v508_v33 = vpop.xlane.xlu1 %507  ;;  %v536_v34 = vmul.f32 0.0078125, %v504_v32 }
  0xf9   : > { %v538_v35 = vmul.f32 0.0078125, %v508_v33 }
  0xfa   : > { %v4867_v36 = vsub.f32 %v4818_v16, %v536_v34 }
  0xfb   : > { %v4870_v37 = vsub.f32 %v4820_v17, %v538_v35  ;;  %v506_v38 = vpop.xlane.xlu0 %505 }
  0xfc   : > { %v510_v39 = vpop.xlane.xlu1 %509  ;;  %v537_v40 = vmul.f32 0.0078125, %v506_v38  ;;  %v568_v41 = vmul.f32 %v4867_v36, %v4867_v36 }
  0xfd   : > { %v539_v42 = vmul.f32 0.0078125, %v510_v39  ;;  %v570_v45 = vmul.f32 %v4870_v37, %v4870_v37 }
  0xfe   : > { %v4875_v43 = vsub.f32 %v4824_v18, %v537_v40  ;;  %584 = vadd.xlane.f32.xlu0 %v568_v41 }
  0xff   : > { %v4878_v44 = vsub.f32 %v4826_v19, %v539_v42  ;;  %v512_v46 = vpop.xlane.xlu0 %511 }
 0x100   : > { %v514_v47 = vpop.xlane.xlu1 %513  ;;  %v540_v48 = vmul.f32 0.0078125, %v512_v46  ;;  %v569_v49 = vmul.f32 %v4875_v43, %v4875_v43 }
 0x101   : > { %v541_v50 = vmul.f32 0.0078125, %v514_v47  ;;  %v571_v53 = vmul.f32 %v4878_v44, %v4878_v44 }
 0x102   : > { %v4885_v51 = vsub.f32 %v4830_v20, %v540_v48  ;;  %588 = vadd.xlane.f32.xlu0 %v570_v45  ;;  %586 = vadd.xlane.f32.xlu1 %v569_v49 }
 0x103   : > { %v4888_v52 = vsub.f32 %v4832_v21, %v541_v50  ;;  %v516_v54 = vpop.xlane.xlu0 %515 }
 0x104   : > { %v518_v55 = vpop.xlane.xlu1 %517  ;;  %v542_v56 = vmul.f32 0.0078125, %v516_v54  ;;  %v572_v57 = vmul.f32 %v4885_v51, %v4885_v51 }
 0x105   : > { %v543_v58 = vmul.f32 0.0078125, %v518_v55  ;;  %v573_v61 = vmul.f32 %v4888_v52, %v4888_v52 }
 0x106   : > { %v4895_v59 = vsub.f32 %v4836_v22, %v542_v56  ;;  %590 = vadd.xlane.f32.xlu1 %v571_v53  ;;  %592 = vadd.xlane.f32.xlu0 %v572_v57  ;;  %v680_v57 = vlaneseq }
 0x107   : > { %v4898_v60 = vsub.f32 %v4838_v23, %v543_v58  ;;  %v520_v62 = vpop.xlane.xlu0 %519 }
 0x108   : > { %v522_v63 = vpop.xlane.xlu1 %521  ;;  %v544_v0 = vmul.f32 0.0078125, %v520_v62  ;;  %v574_v1 = vmul.f32 %v4895_v59, %v4895_v59 }
 0x109   : > { %v545_v2 = vmul.f32 0.0078125, %v522_v63  ;;  %v575_v5 = vmul.f32 %v4898_v60, %v4898_v60 }
 0x10a   : > { %v4905_v3 = vsub.f32 %v4842_v24, %v544_v0  ;;  %594 = vadd.xlane.f32.xlu1 %v573_v61  ;;  %596 = vadd.xlane.f32.xlu0 %v574_v1 }
 0x10b   : > { %v4908_v4 = vsub.f32 %v4844_v25, %v545_v2  ;;  %v524_v6 = vpop.xlane.xlu0 %523  ;;  %v4946_v2 = vshrl.u32 %v680_v57, 7 }
 0x10c   : > { %v526_v7 = vpop.xlane.xlu1 %525  ;;  %v546_v8 = vmul.f32 0.0078125, %v524_v6  ;;  %v576_v9 = vmul.f32 %v4905_v3, %v4905_v3 }
 0x10d   : > { %v547_v10 = vmul.f32 0.0078125, %v526_v7  ;;  %v577_v13 = vmul.f32 %v4908_v4, %v4908_v4 }
 0x10e   : > { %v4915_v11 = vsub.f32 %v4848_v26, %v546_v8  ;;  %598 = vadd.xlane.f32.xlu1 %v575_v5  ;;  %600 = vadd.xlane.f32.xlu0 %v576_v9 }
 0x10f   : > { %v4918_v12 = vsub.f32 %v4850_v27, %v547_v10  ;;  %v528_v14 = vpop.xlane.xlu0 %527 }
 0x110   : > { %v530_v15 = vpop.xlane.xlu1 %529  ;;  %v548_v32 = vmul.f32 0.0078125, %v528_v14  ;;  %v578_v33 = vmul.f32 %v4915_v11, %v4915_v11 }
 0x111   : > { %v549_v34 = vmul.f32 0.0078125, %v530_v15  ;;  %v579_v39 = vmul.f32 %v4918_v12, %v4918_v12 }
 0x112   : > { %v4925_v35 = vsub.f32 %v4854_v28, %v548_v32  ;;  %602 = vadd.xlane.f32.xlu1 %v577_v13  ;;  %604 = vadd.xlane.f32.xlu0 %v578_v33  ;;  %v4949_v13 = vsub.s32 0, %v4946_v2  ;;  %v4953_v32 = vld [vmem:[%s6236_s0] sm:$0x3f] }
 0x113   : > { %v4928_v38 = vsub.f32 %v4856_v29, %v549_v34  ;;  %v532_v40 = vpop.xlane.xlu0 %531 }
 0x114   : > { %v534_v41 = vpop.xlane.xlu1 %533  ;;  %v550_v42 = vmul.f32 0.0078125, %v532_v40  ;;  %v580_v45 = vmul.f32 %v4925_v35, %v4925_v35  ;;  %6235 = vst [vmem:[#allocation14_spill] sm:$0xff] %v4949_v13 }
 0x115   : > { %v551_v46 = vmul.f32 0.0078125, %v534_v41  ;;  %v581_v49 = vmul.f32 %v4928_v38, %v4928_v38 }
 0x116   : > { %v4935_v47 = vsub.f32 %v4860_v30, %v550_v42  ;;  %606 = vadd.xlane.f32.xlu1 %v579_v39  ;;  %608 = vadd.xlane.f32.xlu0 %v580_v45  ;;  %v4957_v42 = vrot.slane %v4953_v32, %v4949_v13  ;;  %v4960_v45 = vsub.s32 1, %v4946_v2 }
 0x117   : > { %v4938_v48 = vsub.f32 %v4862_v31, %v551_v46 }
 0x118   : > { %v582_v50 = vmul.f32 %v4935_v47, %v4935_v47  ;;  %6237 = vst [vmem:[#allocation15_spill] sm:$0xff] %v4960_v45 }
 0x119   : > { %v583_v53 = vmul.f32 %v4938_v48, %v4938_v48 }
 0x11a   : > { %610 = vadd.xlane.f32.xlu1 %v581_v49  ;;  %612 = vadd.xlane.f32.xlu0 %v582_v50 }
 0x11e   : > { %614 = vadd.xlane.f32.xlu1 %v583_v53 }
 0x18b   : > { %v585_v54 = vpop.xlane.xlu0 %584 }
 0x18c   : > { %v616_v55 = vmul.f32 0.0078125, %v585_v54 }
 0x18e   : > { %v632_v56 = vadd.f32 1e-05, %v616_v55 }
 0x18f   : > { %v587_v58 = vpop.xlane.xlu1 %586  ;;  %v589_v61 = vpop.xlane.xlu0 %588 }
 0x190   : > { %4115 = vrsqrt.f32 %v632_v56  ;;  %v617_v62 = vmul.f32 0.0078125, %v587_v58  ;;  %v618_v63 = vmul.f32 0.0078125, %v589_v61  ;;  %v4965_v61 = vrot.slane %v4953_v32, %v4960_v45 }
 0x192   : > { %v633_v0 = vadd.f32 1e-05, %v617_v62  ;;  %v634_v1 = vadd.f32 1e-05, %v618_v63 }
 0x193   : > { %v591_v5 = vpop.xlane.xlu1 %590  ;;  %v593_v6 = vpop.xlane.xlu0 %592 }
 0x194   : > { %4117 = vrsqrt.f32 %v633_v0  ;;  %v619_v7 = vmul.f32 0.0078125, %v591_v5  ;;  %v620_v8 = vmul.f32 0.0078125, %v593_v6 }
 0x195   : > { %4119 = vrsqrt.f32 %v634_v1 }
 0x196   : > { %v635_v9 = vadd.f32 1e-05, %v619_v7  ;;  %v636_v10 = vadd.f32 1e-05, %v620_v8 }
 0x197   : > { %v595_v14 = vpop.xlane.xlu1 %594  ;;  %v597_v15 = vpop.xlane.xlu0 %596 }
 0x198   : > { %4121 = vrsqrt.f32 %v635_v9  ;;  %v621_v33 = vmul.f32 0.0078125, %v595_v14  ;;  %v622_v34 = vmul.f32 0.0078125, %v597_v15 }
 0x199   : > { %4123 = vrsqrt.f32 %v636_v10 }
 0x19a   : > { %v4116_v39 = vpop.eup %4115  ;;  %v637_v40 = vadd.f32 1e-05, %v621_v33  ;;  %v638_v41 = vadd.f32 1e-05, %v622_v34 }
 0x19b   : > { %v664_v46 = vmul.f32 %v4116_v39, %v4867_v36  ;;  %v599_v49 = vpop.xlane.xlu1 %598  ;;  %v601_v50 = vpop.xlane.xlu0 %600 }
 0x19c   : > { %4125 = vrsqrt.f32 %v637_v40  ;;  %v623_v53 = vmul.f32 0.0078125, %v599_v49  ;;  %v624_v54 = vmul.f32 0.0078125, %v601_v50 }
 0x19d   : > { %4127 = vrsqrt.f32 %v638_v41  ;;  %v684_v62 = vmul.f32 %v4957_v42, %v664_v46 }
 0x19e   : > { %v4118_v55 = vpop.eup %4117  ;;  %v639_v56 = vadd.f32 1e-05, %v623_v53  ;;  %v640_v57 = vadd.f32 1e-05, %v624_v54 }
 0x19f   : > { %v4120_v58 = vpop.eup %4119  ;;  %v665_v63 = vmul.f32 %v4118_v55, %v4875_v43  ;;  %v603_v0 = vpop.xlane.xlu1 %602  ;;  %v4972_v15 = vadd.f32 %v4965_v61, %v684_v62 }
 0x1a0   : > { %v605_v36 = vpop.xlane.xlu0 %604  ;;  %v666_v1 = vmul.f32 %v4120_v58, %v4870_v37  ;;  %4129 = vrsqrt.f32 %v639_v56  ;;  %v625_v5 = vmul.f32 0.0078125, %v603_v0 }
 0x1a1   : > { %v626_v6 = vmul.f32 0.0078125, %v605_v36  ;;  %v685_v7 = vmul.f32 %v4957_v42, %v665_v63  ;;  %4131 = vrsqrt.f32 %v640_v57  ;;  %6238 = vst [vmem:[#allocation16_spill] sm:$0xff] %v4972_v15 }
 0x1a2   : > { %v4122_v8 = vpop.eup %4121  ;;  %v641_v9 = vadd.f32 1e-05, %v625_v5  ;;  %v686_v43 = vmul.f32 %v4957_v42, %v666_v1 }
 0x1a3   : > { %v642_v10 = vadd.f32 1e-05, %v626_v6  ;;  %v4124_v14 = vpop.eup %4123  ;;  %v4975_v33 = vadd.f32 %v4965_v61, %v685_v7  ;;  %v667_v37 = vmul.f32 %v4122_v8, %v4878_v44  ;;  %v607_v34 = vpop.xlane.xlu1 %606 }
 0x1a4   : > { %v609_v39 = vpop.xlane.xlu0 %608  ;;  %v668_v40 = vmul.f32 %v4124_v14, %v4885_v51  ;;  %4133 = vrsqrt.f32 %v641_v9  ;;  %v627_v41 = vmul.f32 0.0078125, %v607_v34  ;;  %v4985_v44 = vadd.f32 %v4965_v61, %v686_v43 }
 0x1a5   : > { %6239 = vst [vmem:[#allocation17_spill] sm:$0xff] %v4975_v33  ;;  %v687_v49 = vmul.f32 %v4957_v42, %v667_v37  ;;  %4135 = vrsqrt.f32 %v642_v10  ;;  %v628_v50 = vmul.f32 0.0078125, %v609_v39 }
 0x1a6   : > { %v4126_v53 = vpop.eup %4125  ;;  %v688_v54 = vmul.f32 %v4957_v42, %v668_v40  ;;  %v643_v55 = vadd.f32 1e-05, %v627_v41  ;;  %6240 = vst [vmem:[#allocation18_spill] sm:$0xff] %v4985_v44 }
 0x1a7   : > { %v4128_v56 = vpop.eup %4127  ;;  %v4988_v57 = vadd.f32 %v4965_v61, %v687_v49  ;;  %v669_v51 = vmul.f32 %v4126_v53, %v4888_v52  ;;  %v644_v58 = vadd.f32 1e-05, %v628_v50  ;;  %v611_v62 = vpop.xlane.xlu1 %610 }
 0x1a8   : > { %v613_v63 = vpop.xlane.xlu0 %612  ;;  %v670_v0 = vmul.f32 %v4128_v56, %v4895_v59  ;;  %4137 = vrsqrt.f32 %v643_v55  ;;  %v629_v36 = vmul.f32 0.0078125, %v611_v62  ;;  %v4996_v8 = vadd.f32 %v4965_v61, %v688_v54 }
 0x1a9   : > { %v689_v5 = vmul.f32 %v4957_v42, %v669_v51  ;;  %4139 = vrsqrt.f32 %v644_v58  ;;  %v630_v6 = vmul.f32 0.0078125, %v613_v63 }
 0x1aa   : > { %v4130_v7 = vpop.eup %4129  ;;  %6241 = vst [vmem:[#allocation19_spill] sm:$0xff] %v4996_v8  ;;  %v645_v9 = vadd.f32 1e-05, %v629_v36  ;;  %v690_v59 = vmul.f32 %v4957_v42, %v670_v0 }
 0x1ab   : > { %v4132_v52 = vpop.eup %4131  ;;  %v4999_v10 = vadd.f32 %v4965_v61, %v689_v5  ;;  %v671_v14 = vmul.f32 %v4130_v7, %v4898_v60  ;;  %v646_v43 = vadd.f32 1e-05, %v630_v6  ;;  %v615_v37 = vpop.xlane.xlu1 %614 }
 0x1ac   : > { %v672_v34 = vmul.f32 %v4132_v52, %v4905_v3  ;;  %4141 = vrsqrt.f32 %v645_v9  ;;  %v631_v39 = vmul.f32 0.0078125, %v615_v37  ;;  %v5008_v54 = vadd.f32 %v4965_v61, %v690_v59 }
 0x1ad   : > { %6242 = vst [vmem:[#allocation20_spill] sm:$0xff] %v4999_v10  ;;  %v691_v41 = vmul.f32 %v4957_v42, %v671_v14  ;;  %4143 = vrsqrt.f32 %v646_v43 }
 0x1ae   : > { %v4134_v49 = vpop.eup %4133  ;;  %v647_v50 = vadd.f32 1e-05, %v631_v39  ;;  %v692_v55 = vmul.f32 %v4957_v42, %v672_v34 }
 0x1af   : > { %v4136_v53 = vpop.eup %4135  ;;  %v5011_v60 = vadd.f32 %v4965_v61, %v691_v41  ;;  %v673_v3 = vmul.f32 %v4134_v49, %v4908_v4 }
 0x1b0   : > { %v674_v56 = vmul.f32 %v4136_v53, %v4915_v11  ;;  %4145 = vrsqrt.f32 %v647_v50  ;;  %v5020_v0 = vadd.f32 %v4965_v61, %v692_v55 }
 0x1b1   : > { %v693_v58 = vmul.f32 %v4957_v42, %v673_v3 }
 0x1b2   : > { %v4138_v62 = vpop.eup %4137  ;;  %6243 = vst [vmem:[#allocation21_spill] sm:$0xff] %v5020_v0  ;;  %v694_v5 = vmul.f32 %v4957_v42, %v674_v56 }
 0x1b3   : > { %v4140_v63 = vpop.eup %4139  ;;  %v5023_v36 = vadd.f32 %v4965_v61, %v693_v58  ;;  %v675_v4 = vmul.f32 %v4138_v62, %v4918_v12 }
 0x1b4   : > { %v676_v11 = vmul.f32 %v4140_v63, %v4925_v35  ;;  %v5032_v59 = vadd.f32 %v4965_v61, %v694_v5 }
 0x1b5   : > { %6244 = vst [vmem:[#allocation22_spill] sm:$0xff] %v5023_v36  ;;  %v695_v7 = vmul.f32 %v4957_v42, %v675_v4 }
 0x1b6   : > { %v4142_v9 = vpop.eup %4141  ;;  %v696_v43 = vmul.f32 %v4957_v42, %v676_v11 }
 0x1b7   : > { %v4144_v52 = vpop.eup %4143  ;;  %v5035_v14 = vadd.f32 %v4965_v61, %v695_v7  ;;  %v677_v37 = vmul.f32 %v4142_v9, %v4928_v38 }
 0x1b8   : > { %v678_v12 = vmul.f32 %v4144_v52, %v4935_v47  ;;  %v5044_v41 = vadd.f32 %v4965_v61, %v696_v43 }
 0x1b9   : > { %6245 = vst [vmem:[#allocation23_spill] sm:$0xff] %v5035_v14  ;;  %v697_v34 = vmul.f32 %v4957_v42, %v677_v37 }
 0x1ba   : > { %v4146_v39 = vpop.eup %4145  ;;  %6246 = vst [vmem:[#allocation24_spill] sm:$0xff] %v5044_v41  ;;  %v698_v50 = vmul.f32 %v4957_v42, %v678_v12 }
 0x1bb   : > { %v5047_v49 = vadd.f32 %v4965_v61, %v697_v34  ;;  %v679_v53 = vmul.f32 %v4146_v39, %v4938_v48 }
 0x1bc   : > { %v5055_v55 = vadd.f32 %v4965_v61, %v698_v50 }
 0x1bd   : > { %v699_v47 = vmul.f32 %v4957_v42, %v679_v53 }
 0x1bf   : > { %v5058_v3 = vadd.f32 %v4965_v61, %v699_v47 }
 0x1c1   : > { %6247 = vst [vmem:[#allocation25_spill] sm:$0xff] %v5058_v3 }
 0x1c2 LB: >> { %v6248_v33 = vld [vmem:[#allocation17_spill] sm:$0xff]  ;;  %v6249_v15 = vld [vmem:[#allocation16_spill] sm:$0xff]  ;;  %s3660_s24 = sshll.u32 %s4593_s5, 6  ;;  %v6251_v44 = vld [vmem:[#allocation18_spill] sm:$0xff]  ;;  %v6256_v51 = vpack.c.bf16 %v5011_v60, %v5008_v54  ;;  %vm918_vm0 = vcmask 261120   ;;  %s4599_s12 = smov 96   ;;  %s4593_s5 = sphi %s5062_s5, %s733_s5  }
 0x1c3   : >> { %v6250_v46 = vpack.c.bf16 %v6248_v33, %v6249_v15  ;;  %s736_s14 = scalar_lea.vmem %s4795_s17, %s3660_s24  ;;  %v6252_v1 = vpack.c.bf16 %v4988_v57, %v6251_v44  ;;  %v6253_v10 = vld [vmem:[#allocation20_spill] sm:$0xff]  ;;  %v6254_v8 = vld [vmem:[#allocation19_spill] sm:$0xff]  ;;  %v6257_v36 = vld [vmem:[#allocation22_spill] sm:$0xff]  ;;  %s4600_s23 = smov 64   ;;  %vm1109_vm1 = vcmask 523264  }
 0x1c4   : >> { %v4147_v48 = vld [vmem:[%s736_s14] sm:$0xff]   ;;  %v4148_v42 = vld [vmem:[%s736_s14 + $0x8] sm:$0xff]   ;;  %v4149_v61 = vld [vmem:[%s736_s14 + $0x10] sm:$0xff]   ;;  %v6255_v40 = vpack.c.bf16 %v6253_v10, %v6254_v8  ;;  %s1482_s27 = scalar_lea.vmem [#allocation3], %s3660_s24  ;;  %s733_s5 = sadd.s32 1, %s4593_s5  }
 0x1c5   : >> { %3838 = vmatprep.mubr.bf16.mxu0 %v6250_v46  ;;  %3822 = vmatprep.subr.bf16.mxu0 %v4147_v48  ;;  %v4150_v58 = vld [vmem:[%s736_s14 + $0x18] sm:$0xff]   ;;  %v4151_v62 = vld [vmem:[%s736_s14 + $0x20] sm:$0xff]   ;;  %v4152_v63 = vld [vmem:[%s736_s14 + $0x28] sm:$0xff]   ;;  %p730_p1 = scmp.ge.s32.totalorder %s733_s5, 4  }
 0x1c6   : >> { %3823 = vmatpush3.bf16.msra.mxu0 %v4147_v48  ;;  %v4153_v5 = vld [vmem:[%s736_s14 + $0x30] sm:$0xff]   ;;  %v4154_v4 = vld [vmem:[%s736_s14 + $0x38] sm:$0xff]   ;;  %v6258_v0 = vld [vmem:[#allocation21_spill] sm:$0xff]  ;;  %s4601_s22 = smov (%p730_p1), 64   ;;  %s4602_s21 = smov (%p730_p1), 32   ;;  %vm1640_vm2 = vcmask (%p730_p1), 785408  }
 0x1c7   : >> { %3824 = vmatprep.subr.bf16.mxu0 %v4148_v42  ;;  %v6259_v6 = vpack.c.bf16 %v6257_v36, %v6258_v0  ;;  %v6260_v14 = vld [vmem:[#allocation23_spill] sm:$0xff]  ;;  %v6262_v41 = vld [vmem:[#allocation24_spill] sm:$0xff]  ;;  %s4603_s17 = smov (%p730_p1), 96   ;;  %v4220_v60 = vld [vmem:[%s4800_s11 + $0x8] sm:$0xff] (%p730_p1)   ;;  %p3653_p5 = scmp.ne.s32.totalorder (%p730_p1), %s4581_s30, 2 }
 0x1c8   : >> { %v6261_v35 = vpack.c.bf16 %v6260_v14, %v5032_v59  ;;  %v6263_v38 = vpack.c.bf16 %v5047_v49, %v6262_v41  ;;  %v6264_v3 = vld [vmem:[#allocation25_spill] sm:$0xff]  ;;  %v4219_v57 = vld [vmem:[%s4800_s11] sm:$0xff] (%p730_p1)   ;;  %v4221_v59 = vld [vmem:[%s4800_s11 + $0x10] sm:$0xff] (%p730_p1)  }
 0x1c9   : >> { %v6265_v56 = vpack.c.bf16 %v6264_v3, %v5055_v55 }
 0x1ca   : >> { %3825 = vmatpush3.bf16.msra.mxu0 %v4148_v42 }
 0x1cb   : >> { %3826 = vmatprep.subr.bf16.mxu0 %v4149_v61 }
 0x1ce   : >> { %3827 = vmatpush3.bf16.msra.mxu0 %v4149_v61 }
 0x1cf   : >> { %3828 = vmatprep.subr.bf16.mxu0 %v4150_v58 }
 0x1d2   : >> { %3829 = vmatpush3.bf16.msra.mxu0 %v4150_v58 }
 0x1d3   : >> { %3830 = vmatprep.subr.bf16.mxu0 %v4151_v62 }
 0x1d6   : >> { %3831 = vmatpush3.bf16.msra.mxu0 %v4151_v62 }
 0x1d7   : >> { %3832 = vmatprep.subr.bf16.mxu0 %v4152_v63 }
 0x1da   : >> { %3833 = vmatpush3.bf16.msra.mxu0 %v4152_v63 }
 0x1db   : >> { %3834 = vmatprep.subr.bf16.mxu0 %v4153_v5 }
 0x1de   : >> { %3835 = vmatpush3.bf16.msra.mxu0 %v4153_v5 }
 0x1df   : >> { %3836 = vmatprep.subr.bf16.mxu0 %v4154_v4 }
 0x1e2   : >> { %3837 = vmatpush3.bf16.msra.mxu0 %v4154_v4 }
 0x1e5   : >> { %3839 = vmatmul.mubr.bf16.vlgmr.msra.gmra.mrb[0].mxu0 %v6252_v1 }
 0x1e6   : >> { %3842 = vmatprep.mubr.bf16.mxu0 %v6255_v40 }
 0x1ed   : >> { %3843 = vmatmul.mubr.bf16.gmra.mrb[4].mxu0 %v6256_v51 }
 0x1ee   : >> { %3846 = vmatprep.mubr.bf16.mxu0 %v6259_v6 }
 0x1f5   : >> { %3847 = vmatmul.mubr.bf16.gmra.mrb[8].mxu0 %v6261_v35 }
 0x1f6   : >> { %3850 = vmatprep.mubr.bf16.mxu0 %v6263_v38 }
 0x1fd   : >> { %3851 = vmatmul.mubr.bf16.gmra.mrb[12].mxu0 %v6265_v56 }
 0x2b8   : >> { %v3840_v11 = vpop.f32.mrb[0].mxu0 }
 0x2b9   : >> { %v835_v7 = vpop.f32.mrb[1].mxu0 }
 0x2ba   : >> { %v3841_v9 = vpop.f32.mrb[2].mxu0 }
 0x2bb   : >> { %v5095_v52 = vpack.c.bf16 %v3841_v9, %v3840_v11  ;;  %v838_v43 = vpop.f32.mrb[3].mxu0 }
 0x2bc   : >> { %v898_v37 = vpack.c.bf16 %v838_v43, %v835_v7 }
 0x2be   : >> { %910 = vrot.lane.b32.xlu0 %v898_v37, %s4599_s12  ;;  %3862 = vmatprep.mubr.msk.bf16.mxu1 %vm918_vm0, %v898_v37 }
 0x2c0   : >> { %v3844_v12 = vpop.f32.mrb[4].mxu0 }
 0x2c1   : >> { %v851_v34 = vpop.f32.mrb[5].mxu0 }
 0x2c2   : >> { %912 = vrot.lane.b32.xlu0 %v5095_v52, %s4599_s12  ;;  %v3845_v39 = vpop.f32.mrb[6].mxu0 }
 0x2c3   : >> { %v5099_v50 = vpack.c.bf16 %v3845_v39, %v3844_v12  ;;  %v854_v53 = vpop.f32.mrb[7].mxu0 }
 0x2c4   : >> { %v5101_v47 = vpack.c.bf16 %v854_v53, %v851_v34 }
 0x2c6   : >> { %914 = vrot.lane.b32.xlu1 %v5101_v47, %s4599_s12  ;;  %916 = vrot.lane.b32.xlu0 %v5099_v50, %s4599_s12 }
 0x2c8   : >> { %v3848_v48 = vpop.f32.mrb[8].mxu0 }
 0x2c9   : >> { %v867_v42 = vpop.f32.mrb[9].mxu0 }
 0x2ca   : >> { %v3849_v61 = vpop.f32.mrb[10].mxu0 }
 0x2cb   : >> { %v5105_v58 = vpack.c.bf16 %v3849_v61, %v3848_v48  ;;  %v870_v62 = vpop.f32.mrb[11].mxu0 }
 0x2cc   : >> { %v5107_v63 = vpack.c.bf16 %v870_v62, %v867_v42 }
 0x2ce   : >> { %1012 = vrot.lane.b32.xlu1 %v5107_v63, %s4599_s12  ;;  %3878 = vmatprep.mubr.msk.bf16.mxu0 %vm918_vm0, %v5107_v63 }
 0x2d0   : >> { %v3852_v5 = vpop.f32.mrb[12].mxu0 }
 0x2d1   : >> { %v883_v4 = vpop.f32.mrb[13].mxu0 }
 0x2d2   : >> { %1014 = vrot.lane.b32.xlu1 %v5105_v58, %s4599_s12  ;;  %v3853_v11 = vpop.f32.mrb[14].mxu0 }
 0x2d3   : >> { %v5113_v7 = vpack.c.bf16 %v3853_v11, %v3852_v5  ;;  %v886_v9 = vpop.f32.mrb[15].mxu0 }
 0x2d4   : >> { %v5115_v43 = vpack.c.bf16 %v886_v9, %v883_v4 }
 0x2d6   : >> { %1018 = vrot.lane.b32.xlu1 %v5113_v7, %s4599_s12  ;;  %1016 = vrot.lane.b32.xlu0 %v5115_v43, %s4599_s12 }
 0x2da   : >> { %1294 = vrot.lane.b32.xlu1 %v898_v37, %s4600_s23 }
 0x2de   : >> { %1296 = vrot.lane.b32.xlu1 %v5095_v52, %s4600_s23 }
 0x330   : >> { %v911_v12 = vpop.permute.xlu0 %910 }
 0x331   : >> { %4014 = vmatprep.subr.msk.bf16.mxu1 %vm918_vm0, %v911_v12  ;;  %v932_v34 = vsel %vm918_vm0, %v911_v12, 0 }
 0x332   : >> { %3855 = vmatpush3.bf16.xpose.msra.mxu1 %v932_v34 }
 0x334   : >> { %v913_v39 = vpop.permute.xlu0 %912 }
 0x335   : >> { %4015 = vmatprep.subr.msk.bf16.mxu1 %vm918_vm0, %v913_v39  ;;  %v935_v48 = vsel %vm918_vm0, %v913_v39, 0 }
 0x338   : >> { %v915_v53 = vpop.permute.xlu1 %914  ;;  %v917_v62 = vpop.permute.xlu0 %916 }
 0x339   : >> { %v938_v61 = vsel %vm918_vm0, %v915_v53, 0  ;;  %v941_v12 = vsel %vm918_vm0, %v917_v62, 0 }
 0x33a   : >> { %3857 = vmatpush3.bf16.xpose.msra.mxu1 %v935_v48 }
 0x33b   : >> { %4016 = vmatprep.subr.msk.bf16.mxu1 %vm918_vm0, %v915_v53 }
 0x340   : >> { %v1013_v42 = vpop.permute.xlu1 %1012 }
 0x341   : >> { %v1033_v37 = vsel %vm918_vm0, %v1013_v42, 0  ;;  %4018 = vmatprep.subr.msk.bf16.mxu0 %vm918_vm0, %v1013_v42 }
 0x342   : >> { %3859 = vmatpush3.bf16.xpose.msra.mxu1 %v938_v61  ;;  %3871 = vmatpush3.bf16.xpose.msra.mxu0 %v1033_v37 }
 0x343   : >> { %4017 = vmatprep.subr.msk.bf16.mxu1 %vm918_vm0, %v917_v62 }
 0x344   : >> { %v1015_v5 = vpop.permute.xlu1 %1014 }
 0x345   : >> { %4019 = vmatprep.subr.msk.bf16.mxu0 %vm918_vm0, %v1015_v5  ;;  %v1036_v9 = vsel %vm918_vm0, %v1015_v5, 0 }
 0x348   : >> { %v1019_v4 = vpop.permute.xlu1 %1018  ;;  %v1017_v11 = vpop.permute.xlu0 %1016 }
 0x349   : >> { %v1039_v39 = vsel %vm918_vm0, %v1017_v11, 0  ;;  %v1042_v48 = vsel %vm918_vm0, %v1019_v4, 0 }
 0x34a   : >> { %3861 = vmatpush3.bf16.xpose.msra.mxu1 %v941_v12  ;;  %3873 = vmatpush3.bf16.xpose.msra.mxu0 %v1036_v9 }
 0x34b   : >> { %4020 = vmatprep.subr.msk.bf16.mxu0 %vm918_vm0, %v1017_v11 }
 0x34c   : >> { %v1295_v34 = vpop.permute.xlu1 %1294 }
 0x34d   : >> { %3886 = vmatprep.subr.bf16.mxu1 %v1295_v34 }
 0x350   : >> { %v1297_v53 = vpop.permute.xlu1 %1296 }
 0x351   : >> { %3863 = vmatmul.mubr.msk.bf16.vlgmr.msra.gmra.mrb[0].mxu1 %vm918_vm0, %v5095_v52 }
 0x352   : >> { %3866 = vmatprep.mubr.msk.bf16.mxu1 %vm918_vm0, %v5101_v47  ;;  %3875 = vmatpush3.bf16.xpose.msra.mxu0 %v1039_v39 }
 0x353   : >> { %3887 = vmatpush3.bf16.msra.mxu1 %v1295_v34  ;;  %4021 = vmatprep.subr.msk.bf16.mxu0 %vm918_vm0, %v1019_v4 }
 0x354   : >> { %3888 = vmatprep.subr.bf16.mxu1 %v1297_v53 }
 0x357   : >> { %3889 = vmatpush3.bf16.msra.mxu1 %v1297_v53 }
 0x359   : >> { %3867 = vmatmul.mubr.msk.bf16.gmra.mrb[4].mxu1 %vm918_vm0, %v5099_v50 }
 0x35a   : >> { %3877 = vmatpush3.bf16.xpose.msra.mxu0 %v1042_v48 }
 0x35b   : > { %3918 = vmatprep.subr.bf16.mxu0 (%p730_p1), %v4219_v57 }
 0x361   : >> { %3879 = vmatmul.mubr.msk.bf16.vlgmr.msra.gmra.mrb[16].mxu0 %vm918_vm0, %v5105_v58 }
 0x362   : >> { %3882 = vmatprep.mubr.msk.bf16.mxu0 %vm918_vm0, %v5115_v43  ;;  %3919 = vmatpush3.bf16.msra.mxu0 (%p730_p1), %v4219_v57 }
 0x363   : > { %3920 = vmatprep.subr.bf16.mxu0 (%p730_p1), %v4220_v60 }
 0x366   : > { %3921 = vmatpush3.bf16.msra.mxu0 (%p730_p1), %v4220_v60 }
 0x367   : > { %3922 = vmatprep.subr.bf16.mxu0 (%p730_p1), %v4221_v59 }
 0x369   : >> { %3883 = vmatmul.mubr.msk.bf16.gmra.mrb[20].mxu0 %vm918_vm0, %v5113_v7 }
 0x36a   : > { %3923 = vmatpush3.bf16.msra.mxu0 (%p730_p1), %v4221_v59 }
 0x424   : >> { %v3864_v52 = vpop.f32.mrb[0].mxu1 }
 0x425   : >> { %v977_v42 = vpop.f32.mrb[1].mxu1  ;;  %v1116_v37 = vsel %vm1109_vm1, %v3864_v52, -inf }
 0x426   : >> { %v3865_v61 = vpop.f32.mrb[2].mxu1  ;;  %1117 = vmax.xlane.f32.xlu0 %v1116_v37  ;;  %v1110_v4 = vsel %vm1109_vm1, %v977_v42, -inf }
 0x427   : >> { %v980_v62 = vpop.f32.mrb[3].mxu1  ;;  %v1119_v34 = vsel %vm1109_vm1, %v3865_v61, -inf }
 0x428   : >> { %v1113_v5 = vsel %vm1109_vm1, %v980_v62, -inf }
 0x429   : >> { %1114 = vmax.xlane.f32.xlu1 %v1113_v5 }
 0x42a   : >> { %1111 = vmax.xlane.f32.xlu0 %v1110_v4 }
 0x42c   : >> { %v3868_v11 = vpop.f32.mrb[4].mxu1 }
 0x42d   : >> { %v5153_v9 = vpop.f32.mrb[5].mxu1  ;;  %v1128_v12 = vsel %vm1109_vm1, %v3868_v11, -inf }
 0x42e   : >> { %v3869_v39 = vpop.f32.mrb[6].mxu1  ;;  %1129 = vmax.xlane.f32.xlu1 %v1128_v12  ;;  %1120 = vmax.xlane.f32.xlu0 %v1119_v34  ;;  %v1122_v48 = vsel %vm1109_vm1, %v5153_v9, -inf }
 0x42f   : >> { %v5157_v53 = vpop.f32.mrb[7].mxu1  ;;  %v1131_v37 = vsel %vm1109_vm1, %v3869_v39, -inf }
 0x430   : >> { %v1125_v1 = vsel %vm1109_vm1, %v5157_v53, -inf }
 0x432   : >> { %1123 = vmax.xlane.f32.xlu1 %v1122_v48  ;;  %1132 = vmax.xlane.f32.xlu0 %v1131_v37 }
 0x434   : >> { %v5162_v5 = vpop.f32.mrb[16].mxu0 }
 0x435   : >> { %v5164_v4 = vpop.f32.mrb[17].mxu0  ;;  %v1140_v12 = vsel %vm1109_vm1, %v5162_v5, -inf }
 0x436   : >> { %1126 = vmax.xlane.f32.xlu0 %v1125_v1  ;;  %1141 = vmax.xlane.f32.xlu1 %v1140_v12  ;;  %v5170_v34 = vpop.f32.mrb[18].mxu0  ;;  %v1134_v48 = vsel %vm1109_vm1, %v5164_v4, -inf }
 0x437   : >> { %v5172_v6 = vpop.f32.mrb[19].mxu0  ;;  %v1143_v37 = vsel %vm1109_vm1, %v5170_v34, -inf }
 0x438   : >> { %v1137_v1 = vsel %vm1109_vm1, %v5172_v6, -inf }
 0x43a   : >> { %1135 = vmax.xlane.f32.xlu1 %v1134_v48  ;;  %1144 = vmax.xlane.f32.xlu0 %v1143_v37 }
 0x43c   : >> { %v5178_v35 = vpop.f32.mrb[20].mxu0 }
 0x43d   : >> { %v5180_v38 = vpop.f32.mrb[21].mxu0  ;;  %v1152_v12 = vsel %vm1109_vm1, %v5178_v35, -inf }
 0x43e   : >> { %1138 = vmax.xlane.f32.xlu0 %v1137_v1  ;;  %1153 = vmax.xlane.f32.xlu1 %v1152_v12  ;;  %v5186_v40 = vpop.f32.mrb[22].mxu0  ;;  %v1146_v48 = vsel %vm1109_vm1, %v5180_v38, -inf }
 0x43f   : >> { %v5188_v46 = vpop.f32.mrb[23].mxu0  ;;  %v1155_v37 = vsel %vm1109_vm1, %v5186_v40, -inf }
 0x440   : >> { %v1149_v51 = vsel %vm1109_vm1, %v5188_v46, -inf }
 0x442   : >> { %1147 = vmax.xlane.f32.xlu1 %v1146_v48  ;;  %1156 = vmax.xlane.f32.xlu0 %v1155_v37 }
 0x446   : >> { %1150 = vmax.xlane.f32.xlu0 %v1149_v51 }
 0x453   : >> { %1300 = vrot.lane.b32.xlu1 %v5099_v50, %s4600_s23 }
 0x45c   : >> { %1298 = vrot.lane.b32.xlu0 %v5101_v47, %s4600_s23 }
 0x4b3   : >> { %v1118_v1 = vpop.xlane.xlu0 %1117 }
 0x4b4   : >> { %v1160_v12 = vsub.f32 %v3864_v52, %v1118_v1 }
 0x4b6   : >> { %v1178_v56 = vmul.f32 1.442695, %v1160_v12  ;;  %v1115_v0 = vpop.xlane.xlu1 %1114 }
 0x4b7   : >> { %v1112_v3 = vpop.xlane.xlu0 %1111  ;;  %v1159_v48 = vsub.f32 %v980_v62, %v1115_v0 }
 0x4b8   : >> { %4155 = vpow2.f32 %v1178_v56  ;;  %v1158_v8 = vsub.f32 %v977_v42, %v1112_v3 }
 0x4b9   : >> { %v1176_v50 = vmul.f32 1.442695, %v1159_v48 }
 0x4ba   : >> { %v1174_v10 = vmul.f32 1.442695, %v1158_v8 }
 0x4bb   : >> { %v1130_v37 = vpop.xlane.xlu1 %1129  ;;  %v1121_v14 = vpop.xlane.xlu0 %1120 }
 0x4bc   : >> { %4157 = vpow2.f32 %v1174_v10  ;;  %v1164_v15 = vsub.f32 %v3868_v11, %v1130_v37  ;;  %v1161_v51 = vsub.f32 %v3865_v61, %v1121_v14 }
 0x4be   : >> { %v1186_v33 = vmul.f32 1.442695, %v1164_v15  ;;  %v1180_v36 = vmul.f32 1.442695, %v1161_v51 }
 0x4bf   : >> { %v1124_v41 = vpop.xlane.xlu1 %1123  ;;  %v1133_v44 = vpop.xlane.xlu0 %1132 }
 0x4c0   : >> { %4159 = vpow2.f32 %v1186_v33  ;;  %v1162_v47 = vsub.f32 %v5153_v9, %v1124_v41  ;;  %v1165_v52 = vsub.f32 %v3869_v39, %v1133_v44 }
 0x4c1   : >> { %4161 = vpow2.f32 %v1180_v36 }
 0x4c2   : >> { %v5201_v1 = vpop.eup %4155  ;;  %v1182_v3 = vmul.f32 1.442695, %v1162_v47  ;;  %4163 = vpow2.f32 %v1176_v50  ;;  %v1188_v8 = vmul.f32 1.442695, %v1165_v52 }
 0x4c3   : >> { %v1142_v0 = vpop.xlane.xlu1 %1141  ;;  %v1127_v56 = vpop.xlane.xlu0 %1126  ;;  %v1212_v10 = vsel %vm1109_vm1, %v5201_v1, 0.0 }
 0x4c4   : >> { %4165 = vpow2.f32 %v1182_v3  ;;  %v1163_v15 = vsub.f32 %v5157_v53, %v1127_v56  ;;  %1213 = vadd.xlane.f32.xlu1 %v1212_v10  ;;  %v1168_v33 = vsub.f32 %v5162_v5, %v1142_v0 }
 0x4c5   : >> { %4167 = vpow2.f32 %v1188_v8 }
 0x4c6   : >> { %v5206_v14 = vpop.eup %4157  ;;  %v1184_v44 = vmul.f32 1.442695, %v1163_v15  ;;  %v1194_v11 = vmul.f32 1.442695, %v1168_v33 }
 0x4c7   : >> { %v1136_v36 = vpop.xlane.xlu1 %1135  ;;  %v1145_v41 = vpop.xlane.xlu0 %1144  ;;  %v1206_v42 = vsel %vm1109_vm1, %v5206_v14, 0.0 }
 0x4c8   : >> { %1207 = vadd.xlane.f32.xlu1 %v1206_v42  ;;  %4169 = vpow2.f32 %v1184_v44  ;;  %v1166_v9 = vsub.f32 %v5164_v4, %v1136_v36  ;;  %v1169_v4 = vsub.f32 %v5170_v34, %v1145_v41 }
 0x4c9   : >> { %4171 = vpow2.f32 %v1194_v11 }
 0x4ca   : >> { %v5211_v61 = vpop.eup %4159  ;;  %v1190_v47 = vmul.f32 1.442695, %v1166_v9  ;;  %v1196_v34 = vmul.f32 1.442695, %v1169_v4 }
 0x4cb   : >> { %v5213_v62 = vpop.eup %4161  ;;  %v1154_v39 = vpop.xlane.xlu1 %1153  ;;  %v1224_v5 = vsel %vm1109_vm1, %v5211_v61, 0.0 }
 0x4cc   : >> { %v1139_v53 = vpop.xlane.xlu0 %1138  ;;  %v1172_v12 = vsub.f32 %v5178_v35, %v1154_v39  ;;  %1225 = vadd.xlane.f32.xlu1 %v1224_v5  ;;  %v1215_v48 = vsel %vm1109_vm1, %v5213_v62, 0.0  ;;  %v5221_v37 = vpop.eup %4163 }
 0x4cd   : >> { %1216 = vadd.xlane.f32.xlu0 %v1215_v48  ;;  %v1209_v56 = vsel %vm1109_vm1, %v5221_v37, 0.0  ;;  %v1167_v44 = vsub.f32 %v5172_v6, %v1139_v53 }
 0x4ce   : >> { %v5223_v51 = vpop.eup %4165  ;;  %v1202_v50 = vmul.f32 1.442695, %v1172_v12 }
 0x4cf   : >> { %v1148_v52 = vpop.xlane.xlu1 %1147  ;;  %v1218_v8 = vsel %vm1109_vm1, %v5223_v51, 0.0  ;;  %v5232_v10 = vpop.eup %4167 }
 0x4d0   : >> { %v1157_v3 = vpop.xlane.xlu0 %1156  ;;  %4173 = vpow2.f32 %v1202_v50  ;;  %v1170_v35 = vsub.f32 %v5180_v38, %v1148_v52  ;;  %1219 = vadd.xlane.f32.xlu1 %v1218_v8  ;;  %v1227_v38 = vsel %vm1109_vm1, %v5232_v10, 0.0 }
 0x4d1   : >> { %v1173_v0 = vsub.f32 %v5186_v40, %v1157_v3  ;;  %1210 = vadd.xlane.f32.xlu0 %v1209_v56  ;;  %4175 = vpow2.f32 %v1190_v47  ;;  %v1192_v40 = vmul.f32 1.442695, %v1167_v44 }
 0x4d2   : >> { %v1198_v15 = vmul.f32 1.442695, %v1170_v35  ;;  %v5237_v41 = vpop.eup %4169 }
 0x4d3   : >> { %v1204_v33 = vmul.f32 1.442695, %v1173_v0  ;;  %v1221_v9 = vsel %vm1109_vm1, %v5237_v41, 0.0  ;;  %v5242_v39 = vpop.eup %4171  ;;  %v1301_v6 = vpop.permute.xlu1 %1300 }
 0x4d4   : >> { %v1151_v36 = vpop.xlane.xlu0 %1150  ;;  %4177 = vpow2.f32 %v1198_v15 }
 0x4d5   : >> { %1228 = vadd.xlane.f32.xlu0 %v1227_v38  ;;  %4179 = vpow2.f32 %v1204_v33  ;;  %v1171_v42 = vsub.f32 %v5188_v46, %v1151_v36  ;;  %v1236_v46 = vsel %vm1109_vm1, %v5242_v39, 0.0 }
 0x4d6   : >> { %4181 = vpow2.f32 %v1196_v34 }
 0x4d7   : >> { %4183 = vpow2.f32 %v1192_v40  ;;  %v1200_v5 = vmul.f32 1.442695, %v1171_v42 }
 0x4d8   : >> { %v1299_v11 = vpop.permute.xlu0 %1298 }
 0x4d9   : >> { %3890 = vmatprep.subr.bf16.mxu1 %v1299_v11  ;;  %1222 = vadd.xlane.f32.xlu0 %v1221_v9  ;;  %4185 = vpow2.f32 %v1200_v5 }
 0x4da   : >> { %3891 = vmatpush3.bf16.msra.mxu1 %v1299_v11  ;;  %v5244_v53 = vpop.eup %4173 }
 0x4db   : >> { %3892 = vmatprep.subr.bf16.mxu1 %v1301_v6  ;;  %v1248_v12 = vsel %vm1109_vm1, %v5244_v53, 0.0  ;;  %v5250_v48 = vpop.eup %4175 }
 0x4dc   : >> { %1249 = vadd.xlane.f32.xlu1 %v1248_v12  ;;  %v1230_v52 = vsel %vm1109_vm1, %v5250_v48, 0.0 }
 0x4dd   : >> { %1237 = vadd.xlane.f32.xlu0 %v1236_v46 }
 0x4de   : >> { %3893 = vmatpush3.bf16.msra.mxu1 %v1301_v6  ;;  %v5252_v50 = vpop.eup %4177 }
 0x4df   : >> { %v1242_v47 = vsel %vm1109_vm1, %v5252_v50, 0.0  ;;  %v5256_v4 = vpop.eup %4179 }
 0x4e0   : >> { %1243 = vadd.xlane.f32.xlu1 %v1242_v47  ;;  %v5260_v3 = vpop.eup %4181  ;;  %v1251_v8 = vsel %vm1109_vm1, %v5256_v4, 0.0 }
 0x4e1   : >> { %1231 = vadd.xlane.f32.xlu0 %v1230_v52  ;;  %v1239_v35 = vsel %vm1109_vm1, %v5260_v3, 0.0  ;;  %v5266_v0 = vpop.eup %4183 }
 0x4e2   : >> { %v1233_v56 = vsel %vm1109_vm1, %v5266_v0, 0.0 }
 0x4e3   : >> { %v5270_v15 = vpop.eup %4185 }
 0x4e4   : >> { %1252 = vadd.xlane.f32.xlu1 %v1251_v8  ;;  %v1245_v33 = vsel %vm1109_vm1, %v5270_v15, 0.0 }
 0x4e5   : >> { %1240 = vadd.xlane.f32.xlu0 %v1239_v35 }
 0x4e9   : >> { %1234 = vadd.xlane.f32.xlu0 %v1233_v56 }
 0x4ed   : >> { %1246 = vadd.xlane.f32.xlu0 %v1245_v33 }
 0x4f5   : >> { %1385 = vrot.lane.b32.xlu1 %v5105_v58, %s4600_s23 }
 0x4f9   : >> { %1387 = vrot.lane.b32.xlu1 %v5115_v43, %s4600_s23 }
 0x4fd   : >> { %1389 = vrot.lane.b32.xlu1 %v5113_v7, %s4600_s23 }
 0x503   : >> { %1383 = vrot.lane.b32.xlu0 %v5107_v63, %s4600_s23 }
 0x551   : >> { %v1214_v34 = vpop.xlane.xlu1 %1213 }
 0x555   : >> { %v1208_v44 = vpop.xlane.xlu1 %1207 }
 0x559   : >> { %v1226_v38 = vpop.xlane.xlu1 %1225 }
 0x55a   : >> { %v1217_v36 = vpop.xlane.xlu0 %1216 }
 0x55b   : >> { %4187 = vrcp.f32 %v1217_v36 }
 0x55c   : >> { %4189 = vrcp.f32 %v1208_v44 }
 0x55d   : >> { %4191 = vrcp.f32 %v1214_v34  ;;  %v1220_v42 = vpop.xlane.xlu1 %1219 }
 0x55e   : >> { %v1211_v40 = vpop.xlane.xlu0 %1210 }
 0x55f   : >> { %4193 = vrcp.f32 %v1211_v40 }
 0x562   : >> { %v1229_v58 = vpop.xlane.xlu0 %1228 }
 0x563   : >> { %4195 = vrcp.f32 %v1229_v58 }
 0x564   : >> { %4197 = vrcp.f32 %v1220_v42 }
 0x565   : >> { %v4188_v43 = vpop.eup %4187  ;;  %4199 = vrcp.f32 %v1226_v38 }
 0x566   : >> { %v1223_v11 = vpop.xlane.xlu0 %1222  ;;  %v4190_v7 = vpop.eup %4189  ;;  %v1273_v6 = vmul.f32 %v4188_v43, %v5213_v62 }
 0x567   : >> { %4201 = vrcp.f32 %v1223_v11  ;;  %v4192_v9 = vpop.eup %4191  ;;  %v1270_v46 = vmul.f32 %v4190_v7, %v5206_v14 }
 0x568   : >> { %v1272_v52 = vmul.f32 %v4192_v9, %v5201_v1 }
 0x569   : >> { %v4194_v63 = vpop.eup %4193  ;;  %v1250_v5 = vpop.xlane.xlu1 %1249 }
 0x56a   : >> { %v1238_v12 = vpop.xlane.xlu0 %1237  ;;  %v1271_v47 = vmul.f32 %v4194_v63, %v5221_v37  ;;  %v1287_v35 = vpack.c.bf16 %v1273_v6, %v1272_v52 }
 0x56c   : >> { %v1286_v8 = vpack.c.bf16 %v1271_v47, %v1270_v46 }
 0x56d   : >> { %v4196_v56 = vpop.eup %4195  ;;  %v1244_v36 = vpop.xlane.xlu1 %1243 }
 0x56e   : >> { %3894 = vmatprep.mubr.msk.bf16.mxu1 %vm1109_vm1, %v1286_v8  ;;  %v1232_v33 = vpop.xlane.xlu0 %1231  ;;  %v4198_v34 = vpop.eup %4197  ;;  %v1277_v38 = vmul.f32 %v4196_v56, %v5232_v10 }
 0x56f   : >> { %3895 = vmatmul.mubr.msk.bf16.vlgmr.msra.gmra.mrb[8].mxu1 %vm1109_vm1, %v1287_v35  ;;  %v4200_v44 = vpop.eup %4199  ;;  %v1274_v14 = vmul.f32 %v4198_v34, %v5223_v51  ;;  %4203 = vrcp.f32 %v1232_v33 }
 0x570   : >> { %v1276_v1 = vmul.f32 %v4200_v44, %v5211_v61 }
 0x571   : >> { %v4202_v62 = vpop.eup %4201  ;;  %v1253_v43 = vpop.xlane.xlu1 %1252 }
 0x572   : >> { %v1241_v40 = vpop.xlane.xlu0 %1240  ;;  %v1275_v37 = vmul.f32 %v4202_v62, %v5237_v41  ;;  %v1289_v58 = vpack.c.bf16 %v1277_v38, %v1276_v1 }
 0x574   : >> { %v1288_v42 = vpack.c.bf16 %v1275_v37, %v1274_v14 }
 0x575   : >> { %v1386_v10 = vpop.permute.xlu1 %1385 }
 0x576   : >> { %3898 = vmatprep.mubr.msk.bf16.mxu1 %vm1109_vm1, %v1288_v42  ;;  %v1235_v11 = vpop.xlane.xlu0 %1234 }
 0x577   : >> { %4205 = vrcp.f32 %v1235_v11  ;;  %3899 = vmatmul.mubr.msk.bf16.gmra.mrb[12].mxu1 %vm1109_vm1, %v1289_v58 }
 0x578   : >> { %4207 = vrcp.f32 %v1241_v40 }
 0x579   : >> { %v4204_v9 = vpop.eup %4203  ;;  %v1388_v41 = vpop.permute.xlu1 %1387 }
 0x57a   : >> { %v1247_v7 = vpop.xlane.xlu0 %1246  ;;  %v1278_v63 = vmul.f32 %v4204_v9, %v5250_v48 }
 0x57b   : >> { %4209 = vrcp.f32 %v1247_v7 }
 0x57c   : >> { %4211 = vrcp.f32 %v1238_v12 }
 0x57d   : >> { %4213 = vrcp.f32 %v1244_v36  ;;  %v1390_v8 = vpop.permute.xlu1 %1389 }
 0x57e   : >> { %v1384_v51 = vpop.permute.xlu0 %1383  ;;  %4215 = vrcp.f32 %v1253_v43 }
 0x57f   : >> { %3902 = vmatprep.subr.bf16.mxu1 %v1384_v51  ;;  %4217 = vrcp.f32 %v1250_v5 }
 0x580   : >> { %3903 = vmatpush3.bf16.msra.mxu1 %v1384_v51 }
 0x581   : >> { %v4206_v61 = vpop.eup %4205  ;;  %3904 = vmatprep.subr.bf16.mxu1 %v1386_v10 }
 0x582   : >> { %v1279_v6 = vmul.f32 %v4206_v61, %v5266_v0  ;;  %v4208_v47 = vpop.eup %4207 }
 0x583   : >> { %v1281_v56 = vmul.f32 %v4208_v47, %v5260_v3 }
 0x584   : >> { %3905 = vmatpush3.bf16.msra.mxu1 %v1386_v10  ;;  %v1290_v46 = vpack.c.bf16 %v1279_v6, %v1278_v63 }
 0x585   : >> { %3906 = vmatprep.subr.bf16.mxu1 %v1388_v41  ;;  %v4210_v12 = vpop.eup %4209 }
 0x586   : >> { %3910 = vmatprep.mubr.msk.bf16.mxu1 %vm1109_vm1, %v1290_v46  ;;  %v4212_v52 = vpop.eup %4211  ;;  %v1283_v48 = vmul.f32 %v4210_v12, %v5270_v15 }
 0x587   : >> { %v4214_v35 = vpop.eup %4213  ;;  %v1280_v0 = vmul.f32 %v4212_v52, %v5242_v39 }
 0x588   : >> { %3907 = vmatpush3.bf16.msra.mxu1 %v1388_v41  ;;  %v1282_v33 = vmul.f32 %v4214_v35, %v5252_v50  ;;  %v4216_v5 = vpop.eup %4215 }
 0x589   : >> { %3908 = vmatprep.subr.bf16.mxu1 %v1390_v8  ;;  %v1291_v34 = vpack.c.bf16 %v1281_v56, %v1280_v0  ;;  %v4218_v36 = vpop.eup %4217  ;;  %v1285_v62 = vmul.f32 %v4216_v5, %v5256_v4 }
 0x58a   : >> { %v1292_v44 = vpack.c.bf16 %v1283_v48, %v1282_v33  ;;  %v1284_v3 = vmul.f32 %v4218_v36, %v5244_v53  ;;  %v4223_v36 = vld [vmem:[%s4800_s11 + $0x20] sm:$0xff] (%p730_p1)  }
 0x58c   : >> { %3909 = vmatpush3.bf16.msra.mxu1 %v1390_v8  ;;  %v1293_v38 = vpack.c.bf16 %v1285_v62, %v1284_v3 }
 0x58f   : >> { %3911 = vmatmul.mubr.msk.bf16.vlgmr.msra.gmra.mrb[16].mxu1 %vm1109_vm1, %v1291_v34  ;;  %v4222_v34 = vld [vmem:[%s4800_s11 + $0x18] sm:$0xff] (%p730_p1)  }
 0x590   : >> { %3914 = vmatprep.mubr.msk.bf16.mxu1 %vm1109_vm1, %v1292_v44  ;;  %3924 = vmatprep.subr.bf16.mxu0 (%p730_p1), %v4222_v34 }
 0x591   : > { %3925 = vmatpush3.bf16.msra.mxu0 (%p730_p1), %v4222_v34 }
 0x592   : > { %3926 = vmatprep.subr.bf16.mxu0 (%p730_p1), %v4223_v36 }
 0x595   : > { %3927 = vmatpush3.bf16.msra.mxu0 (%p730_p1), %v4223_v36 }
 0x597   : >> { %3915 = vmatmul.mubr.msk.bf16.gmra.mrb[20].mxu1 %vm1109_vm1, %v1293_v38 }
 0x642   : >> { %v3896_v39 = vpop.f32.mrb[8].mxu1 }
 0x643   : >> { %v1352_v15 = vpop.f32.mrb[9].mxu1 }
 0x644   : >> { %v3897_v40 = vpop.f32.mrb[10].mxu1 }
 0x645   : >> { %v1473_v50 = vpack.c.bf16 %v3897_v40, %v3896_v39  ;;  %v1355_v14 = vpop.f32.mrb[11].mxu1  ;;  %v4224_v39 = vld [vmem:[%s4800_s11 + $0x28] sm:$0xff] (%p730_p1)   ;;  %v4225_v40 = vld [vmem:[%s4800_s11 + $0x30] sm:$0xff] (%p730_p1)  }
 0x646   : >> { %v1472_v37 = vpack.c.bf16 %v1355_v14, %v1352_v15  ;;  %3928 = vmatprep.subr.bf16.mxu0 (%p730_p1), %v4224_v39 }
 0x647   : >> { %1484 = vst.msk [vmem:[%s1482_s27 + $0x8] sm:$0xff] %vm918_vm0, %v1473_v50  ;;  %3929 = vmatpush3.bf16.msra.mxu0 (%p730_p1), %v4224_v39 }
 0x648   : >> { %1483 = vst.msk [vmem:[%s1482_s27] sm:$0xff] %vm918_vm0, %v1472_v37  ;;  %v4226_v37 = vld [vmem:[%s4800_s11 + $0x38] sm:$0xff] (%p730_p1)   ;;  %3930 = vmatprep.subr.bf16.mxu0 (%p730_p1), %v4225_v40 }
 0x64a   : >> { %v3900_v1 = vpop.f32.mrb[12].mxu1 }
 0x64b   : >> { %v1368_v42 = vpop.f32.mrb[13].mxu1  ;;  %3931 = vmatpush3.bf16.msra.mxu0 (%p730_p1), %v4225_v40 }
 0x64c   : >> { %v3901_v4 = vpop.f32.mrb[14].mxu1  ;;  %3932 = vmatprep.subr.bf16.mxu0 (%p730_p1), %v4226_v37 }
 0x64d   : >> { %v1475_v58 = vpack.c.bf16 %v3901_v4, %v3900_v1  ;;  %v1371_v53 = vpop.f32.mrb[15].mxu1 }
 0x64e   : >> { %v1474_v43 = vpack.c.bf16 %v1371_v53, %v1368_v42 }
 0x64f   : >> { %1486 = vst.msk [vmem:[%s1482_s27 + $0x18] sm:$0xff] %vm918_vm0, %v1475_v58  ;;  %3933 = vmatpush3.bf16.msra.mxu0 (%p730_p1), %v4226_v37 }
 0x650   : >> { %1485 = vst.msk [vmem:[%s1482_s27 + $0x10] sm:$0xff] %vm918_vm0, %v1474_v43 }
 0x662   : >> { %v3912_v11 = vpop.f32.mrb[16].mxu1 }
 0x663   : >> { %v1441_v7 = vpop.f32.mrb[17].mxu1 }
 0x664   : >> { %v3913_v10 = vpop.f32.mrb[18].mxu1 }
 0x665   : >> { %v1477_v51 = vpack.c.bf16 %v3913_v10, %v3912_v11  ;;  %v1444_v9 = vpop.f32.mrb[19].mxu1 }
 0x666   : >> { %v1476_v61 = vpack.c.bf16 %v1444_v9, %v1441_v7 }
 0x667   : >> { %1488 = vst.msk [vmem:[%s1482_s27 + $0x28] sm:$0xff] %vm918_vm0, %v1477_v51 }
 0x668   : >> { %1487 = vst.msk [vmem:[%s1482_s27 + $0x20] sm:$0xff] %vm918_vm0, %v1476_v61 }
 0x66a   : >> { %v3916_v41 = vpop.f32.mrb[20].mxu1  ;;  %732 = sbr.rel (!%p730_p1) target bundleno = 450 (0x1c2), region = 131 }
 0x66b   : >> { %v1457_v63 = vpop.f32.mrb[21].mxu1 }
 0x66c   : >> { %v3917_v6 = vpop.f32.mrb[22].mxu1 }
 0x66d   : >> { %v1479_v46 = vpack.c.bf16 %v3917_v6, %v3916_v41  ;;  %v1460_v47 = vpop.f32.mrb[23].mxu1 }
 0x66e   : >> { %v1478_v12 = vpack.c.bf16 %v1460_v47, %v1457_v63 }
 0x66f   : >> { %1490 = vst.msk [vmem:[%s1482_s27 + $0x38] sm:$0xff] %vm918_vm0, %v1479_v46 }
 0x670   : >> { %1489 = vst.msk [vmem:[%s1482_s27 + $0x30] sm:$0xff] %vm918_vm0, %v1478_v12 }
 0x677   : > { %v1509_v52 = vld [vmem:[#allocation3 + $0x80] sm:$0xff]  ;;  %v1510_v35 = vld [vmem:[#allocation3 + $0x88] sm:$0xff]  ;;  %v1503_v33 = vld [vmem:[#allocation3 + $0x58] sm:$0xff] }
 0x678   : > { %v1500_v8 = vld [vmem:[#allocation3 + $0x40] sm:$0xff]  ;;  %1558 = vrot.lane.b32.xlu1 %v1509_v52, %s4601_s22  ;;  %v1501_v56 = vld [vmem:[#allocation3 + $0x48] sm:$0xff]  ;;  %v1502_v54 = vld [vmem:[#allocation3 + $0x50] sm:$0xff] }
 0x679   : > { %1534 = vrot.lane.b32.xlu0 %v1500_v8, %s4602_s21  ;;  %v1519_v48 = vld [vmem:[#allocation3 + $0xc8] sm:$0xff]  ;;  %v1518_v0 = vld [vmem:[#allocation3 + $0xc0] sm:$0xff]  ;;  %v1512_v49 = vld [vmem:[#allocation3 + $0x98] sm:$0xff] }
 0x67a   : > { %v1511_v55 = vld [vmem:[#allocation3 + $0x90] sm:$0xff]  ;;  %v1521_v5 = vld [vmem:[#allocation3 + $0xd8] sm:$0xff]  ;;  %v1504_v62 = vld [vmem:[#allocation3 + $0x60] sm:$0xff] }
 0x67b   : > { %v1520_v44 = vld [vmem:[#allocation3 + $0xd0] sm:$0xff]  ;;  %v1505_v3 = vld [vmem:[#allocation3 + $0x68] sm:$0xff]  ;;  %v1513_v38 = vld [vmem:[#allocation3 + $0xa0] sm:$0xff] }
 0x67c   : > { %1560 = vrot.lane.b32.xlu1 %v1510_v35, %s4601_s22  ;;  %v1514_v15 = vld [vmem:[#allocation3 + $0xa8] sm:$0xff]  ;;  %v1522_v50 = vld [vmem:[#allocation3 + $0xe0] sm:$0xff]  ;;  %v1506_v1 = vld [vmem:[#allocation3 + $0x70] sm:$0xff] }
 0x67d   : > { %1536 = vrot.lane.b32.xlu0 %v1501_v56, %s4602_s21  ;;  %v1523_v14 = vld [vmem:[#allocation3 + $0xe8] sm:$0xff]  ;;  %v1507_v42 = vld [vmem:[#allocation3 + $0x78] sm:$0xff]  ;;  %v1515_v4 = vld [vmem:[#allocation3 + $0xb0] sm:$0xff] }
 0x67e   : > { %v1516_v58 = vld [vmem:[#allocation3 + $0xb8] sm:$0xff]  ;;  %v1524_v53 = vld [vmem:[#allocation3 + $0xf0] sm:$0xff]  ;;  %v1491_v10 = vld [vmem:[#allocation3] sm:$0xff] }
 0x67f   : > { %v1525_v43 = vld [vmem:[#allocation3 + $0xf8] sm:$0xff]  ;;  %v1492_v51 = vld [vmem:[#allocation3 + $0x8] sm:$0xff] }
 0x680   : > { %1584 = vrot.lane.b32.xlu1 %v1519_v48, %s4603_s17  ;;  %v1494_v56 = vld [vmem:[#allocation3 + $0x18] sm:$0xff] }
 0x681   : > { %1582 = vrot.lane.b32.xlu0 %v1518_v0, %s4603_s17  ;;  %v1493_v0 = vld [vmem:[#allocation3 + $0x10] sm:$0xff] }
 0x684   : > { %1540 = vrot.lane.b32.xlu1 %v1503_v33, %s4602_s21 }
 0x685   : > { %1538 = vrot.lane.b32.xlu0 %v1502_v54, %s4602_s21 }
 0x688   : > { %1564 = vrot.lane.b32.xlu1 %v1512_v49, %s4601_s22 }
 0x689   : > { %1562 = vrot.lane.b32.xlu0 %v1511_v55, %s4601_s22 }
 0x68c   : > { %1588 = vrot.lane.b32.xlu1 %v1521_v5, %s4603_s17 }
 0x68d   : > { %1586 = vrot.lane.b32.xlu0 %v1520_v44, %s4603_s17 }
 0x690   : > { %1544 = vrot.lane.b32.xlu1 %v1505_v3, %s4602_s21 }
 0x691   : > { %1542 = vrot.lane.b32.xlu0 %v1504_v62, %s4602_s21  ;;  %v1495_v62 = vld [vmem:[#allocation3 + $0x20] sm:$0xff] }
 0x694   : > { %1568 = vrot.lane.b32.xlu1 %v1514_v15, %s4601_s22 }
 0x695   : > { %1566 = vrot.lane.b32.xlu0 %v1513_v38, %s4601_s22  ;;  %v1496_v38 = vld [vmem:[#allocation3 + $0x28] sm:$0xff] }
 0x698   : > { %1592 = vrot.lane.b32.xlu1 %v1523_v14, %s4603_s17 }
 0x699   : > { %1590 = vrot.lane.b32.xlu0 %v1522_v50, %s4603_s17 }
 0x69c   : > { %1548 = vrot.lane.b32.xlu1 %v1507_v42, %s4602_s21 }
 0x69d   : > { %1546 = vrot.lane.b32.xlu0 %v1506_v1, %s4602_s21 }
 0x6a0   : > { %1572 = vrot.lane.b32.xlu1 %v1516_v58, %s4601_s22 }
 0x6a1   : > { %1570 = vrot.lane.b32.xlu0 %v1515_v4, %s4601_s22 }
 0x6a4   : > { %1596 = vrot.lane.b32.xlu1 %v1525_v43, %s4603_s17  ;;  %v1497_v43 = vld [vmem:[#allocation3 + $0x30] sm:$0xff] }
 0x6a5   : > { %1594 = vrot.lane.b32.xlu0 %v1524_v53, %s4603_s17 }
 0x6ea   : > { %v1559_v11 = vpop.permute.xlu1 %1558 }
 0x6eb   : > { %v1535_v7 = vpop.permute.xlu0 %1534 }
 0x6ec   : > { %v1601_v41 = vsel %vm918_vm0, %v1491_v10, %v1535_v7  ;;  %v1498_v7 = vld [vmem:[#allocation3 + $0x38] sm:$0xff] }
 0x6ed   : > { %v1625_v6 = vsel %vm1109_vm1, %v1601_v41, %v1559_v11 }
 0x6ee   : > { %v1561_v9 = vpop.permute.xlu1 %1560 }
 0x6ef   : > { %v1537_v61 = vpop.permute.xlu0 %1536 }
 0x6f0   : > { %v1604_v63 = vsel %vm918_vm0, %v1492_v51, %v1537_v61 }
 0x6f1   : > { %v1627_v46 = vsel %vm1109_vm1, %v1604_v63, %v1561_v9 }
 0x6f2   : > { %v1585_v47 = vpop.permute.xlu1 %1584 }
 0x6f3   : > { %v1583_v12 = vpop.permute.xlu0 %1582  ;;  %v1645_v8 = vsel %vm1640_vm2, %v1627_v46, %v1585_v47 }
 0x6f4   : > { %v1642_v52 = vsel %vm1640_vm2, %v1625_v6, %v1583_v12 }
 0x6f5   : > { %3934 = vmatprep.mubr.bf16.mxu0 %v1642_v52  ;;  %v1844_v52 = vsub.s32 2, %v4946_v2 }
 0x6f6   : > { %3935 = vmatmul.mubr.bf16.vlgmr.msra.gmra.mrb[0].mxu0 %v1645_v8  ;;  %v1541_v35 = vpop.permute.xlu1 %1540 }
 0x6f7   : > { %v1539_v48 = vpop.permute.xlu0 %1538  ;;  %v1610_v33 = vsel %vm918_vm0, %v1494_v56, %v1541_v35  ;;  %v1845_v35 = vrot.slane %v4953_v32, %v1844_v52 }
 0x6f8   : > { %v1607_v60 = vsel %vm918_vm0, %v1493_v0, %v1539_v48 }
 0x6fa   : > { %v1565_v57 = vpop.permute.xlu1 %1564 }
 0x6fb   : > { %v1563_v54 = vpop.permute.xlu0 %1562  ;;  %v1631_v59 = vsel %vm1109_vm1, %v1610_v33, %v1565_v57 }
 0x6fc   : > { %v1629_v49 = vsel %vm1109_vm1, %v1607_v60, %v1563_v54 }
 0x6fe   : > { %v1589_v55 = vpop.permute.xlu1 %1588 }
 0x6ff   : > { %v1587_v34 = vpop.permute.xlu0 %1586  ;;  %v1651_v44 = vsel %vm1640_vm2, %v1631_v59, %v1589_v55 }
 0x700   : > { %v1648_v5 = vsel %vm1640_vm2, %v1629_v49, %v1587_v34 }
 0x701   : > { %3938 = vmatprep.mubr.bf16.mxu0 %v1648_v5 }
 0x702   : > { %3939 = vmatmul.mubr.bf16.gmra.mrb[4].mxu0 %v1651_v44  ;;  %v1545_v3 = vpop.permute.xlu1 %1544 }
 0x703   : > { %v1543_v36 = vpop.permute.xlu0 %1542  ;;  %v1616_v15 = vsel %vm918_vm0, %v1496_v38, %v1545_v3 }
 0x704   : > { %v1613_v39 = vsel %vm918_vm0, %v1495_v62, %v1543_v36 }
 0x706   : > { %v1569_v50 = vpop.permute.xlu1 %1568 }
 0x707   : > { %v1567_v40 = vpop.permute.xlu0 %1566  ;;  %v1635_v37 = vsel %vm1109_vm1, %v1616_v15, %v1569_v50 }
 0x708   : > { %v1633_v14 = vsel %vm1109_vm1, %v1613_v39, %v1567_v40 }
 0x70a   : > { %v1593_v42 = vpop.permute.xlu1 %1592 }
 0x70b   : > { %v1591_v1 = vpop.permute.xlu0 %1590  ;;  %v1657_v58 = vsel %vm1640_vm2, %v1635_v37, %v1593_v42 }
 0x70c   : > { %v1654_v4 = vsel %vm1640_vm2, %v1633_v14, %v1591_v1 }
 0x70d   : > { %3942 = vmatprep.mubr.bf16.mxu0 %v1654_v4 }
 0x70e   : > { %3943 = vmatmul.mubr.bf16.gmra.mrb[8].mxu0 %v1657_v58  ;;  %v1549_v11 = vpop.permute.xlu1 %1548 }
 0x70f   : > { %v1547_v53 = vpop.permute.xlu0 %1546  ;;  %v1622_v51 = vsel %vm918_vm0, %v1498_v7, %v1549_v11 }
 0x710   : > { %v1619_v10 = vsel %vm918_vm0, %v1497_v43, %v1547_v53 }
 0x712   : > { %v1573_v61 = vpop.permute.xlu1 %1572 }
 0x713   : > { %v1571_v9 = vpop.permute.xlu0 %1570  ;;  %v1639_v63 = vsel %vm1109_vm1, %v1622_v51, %v1573_v61  ;;  %v4229_v61 = vld [vmem:[%s4805_s19] ss:$12 sps:$4 sm:$0xff]  }
 0x714   : > { %v1637_v41 = vsel %vm1109_vm1, %v1619_v10, %v1571_v9 }
 0x716   : > { %v1597_v46 = vpop.permute.xlu1 %1596 }
 0x717   : > { %v1595_v6 = vpop.permute.xlu0 %1594  ;;  %v1663_v12 = vsel %vm1640_vm2, %v1639_v63, %v1597_v46 }
 0x718   : > { %v1660_v47 = vsel %vm1640_vm2, %v1637_v41, %v1595_v6  ;;  %v4230_v41 = vld [vmem:[%s4805_s19 + $0x1c] ss:$12 sps:$4 sm:$0xff]  }
 0x719   : > { %3946 = vmatprep.mubr.bf16.mxu0 %v1660_v47 }
 0x71a   : > { %3947 = vmatmul.mubr.bf16.gmra.mrb[12].mxu0 %v1663_v12 }
 0x7c9   : > { %v3936_v8 = vpop.f32.mrb[0].mxu0 }
 0x7ca   : > { %v1763_v56 = vpop.f32.mrb[1].mxu0  ;;  %v1828_v57 = vadd.f32 %v3936_v8, %v4820_v17 }
 0x7cb   : > { %v1826_v48 = vadd.f32 %v1763_v56, %v4818_v16  ;;  %v3937_v0 = vpop.f32.mrb[2].mxu0 }
 0x7cc   : > { %v1766_v33 = vpop.f32.mrb[3].mxu0  ;;  %v5387_v49 = vadd.f32 %v1845_v35, %v1828_v57  ;;  %v1829_v55 = vadd.f32 %v3937_v0, %v4826_v19 }
 0x7cd   : > { %v5381_v54 = vadd.f32 %v1845_v35, %v1826_v48  ;;  %v1827_v60 = vadd.f32 %v1766_v33, %v4824_v18 }
 0x7ce   : > { %v5392_v16 = vadd.f32 %v1845_v35, %v1829_v55 }
 0x7cf   : > { %v5384_v59 = vadd.f32 %v1845_v35, %v1827_v60  ;;  %1862 = vadd.xlane.f32.xlu0 %v5381_v54 }
 0x7d1   : > { %1864 = vadd.xlane.f32.xlu1 %v5384_v59 }
 0x7d3   : > { %1866 = vadd.xlane.f32.xlu0 %v5387_v49 }
 0x7d5   : > { %v3940_v34 = vpop.f32.mrb[4].mxu0 }
 0x7d6   : > { %v1779_v17 = vpop.f32.mrb[5].mxu0  ;;  %v1832_v36 = vadd.f32 %v3940_v34, %v4836_v22 }
 0x7d7   : > { %v1830_v5 = vadd.f32 %v1779_v17, %v4830_v20  ;;  %1868 = vadd.xlane.f32.xlu0 %v5392_v16  ;;  %v3941_v18 = vpop.f32.mrb[6].mxu0 }
 0x7d8   : > { %v1782_v44 = vpop.f32.mrb[7].mxu0  ;;  %v1833_v3 = vadd.f32 %v3941_v18, %v4838_v23  ;;  %v5404_v39 = vadd.f32 %v1845_v35, %v1832_v36 }
 0x7d9   : > { %v5397_v62 = vadd.f32 %v1845_v35, %v1830_v5  ;;  %v1831_v19 = vadd.f32 %v1782_v44, %v4832_v21 }
 0x7da   : > { %v5407_v20 = vadd.f32 %v1845_v35, %v1833_v3 }
 0x7db   : > { %v5401_v38 = vadd.f32 %v1845_v35, %v1831_v19  ;;  %1870 = vadd.xlane.f32.xlu1 %v5397_v62 }
 0x7dd   : > { %1872 = vadd.xlane.f32.xlu0 %v5401_v38 }
 0x7df   : > { %1874 = vadd.xlane.f32.xlu1 %v5404_v39 }
 0x7e1   : > { %1876 = vadd.xlane.f32.xlu0 %v5407_v20  ;;  %v3944_v22 = vpop.f32.mrb[8].mxu0 }
 0x7e2   : > { %v1795_v15 = vpop.f32.mrb[9].mxu0  ;;  %v1836_v50 = vadd.f32 %v3944_v22, %v4848_v26 }
 0x7e3   : > { %v1834_v21 = vadd.f32 %v1795_v15, %v4842_v24  ;;  %v3945_v40 = vpop.f32.mrb[10].mxu0 }
 0x7e4   : > { %v1798_v23 = vpop.f32.mrb[11].mxu0  ;;  %v1837_v1 = vadd.f32 %v3945_v40, %v4850_v27  ;;  %v5420_v4 = vadd.f32 %v1845_v35, %v1836_v50 }
 0x7e5   : > { %v5413_v14 = vadd.f32 %v1845_v35, %v1834_v21  ;;  %v1835_v37 = vadd.f32 %v1798_v23, %v4844_v25 }
 0x7e6   : > { %6267 = vst [vmem:[#allocation17_spill] sm:$0xff] %v5420_v4  ;;  %v5423_v58 = vadd.f32 %v1845_v35, %v1837_v1  ;;  %v4234_v1 = vld [vmem:[%s4805_s19 + $0x34] ss:$12 sps:$4 sm:$0xff]  }
 0x7e7   : > { %v5417_v42 = vadd.f32 %v1845_v35, %v1835_v37  ;;  %1878 = vadd.xlane.f32.xlu1 %v5413_v14 }
 0x7e8   : > { %6268 = vst [vmem:[#allocation18_spill] sm:$0xff] %v5423_v58 }
 0x7e9   : > { %6266 = vst [vmem:[#allocation16_spill] sm:$0xff] %v5417_v42  ;;  %1880 = vadd.xlane.f32.xlu0 %v5417_v42 }
 0x7eb   : > { %1882 = vadd.xlane.f32.xlu1 %v5420_v4 }
 0x7ed   : > { %1884 = vadd.xlane.f32.xlu0 %v5423_v58  ;;  %v3948_v24 = vpop.f32.mrb[12].mxu0 }
 0x7ee   : > { %v1811_v26 = vpop.f32.mrb[13].mxu0  ;;  %v1840_v25 = vadd.f32 %v3948_v24, %v4860_v30 }
 0x7ef   : > { %v1838_v27 = vadd.f32 %v1811_v26, %v4854_v28  ;;  %v3949_v53 = vpop.f32.mrb[14].mxu0  ;;  %v4227_v28 = vld [vmem:[%s4805_s19 + $0x4] ss:$12 sps:$4 sm:$0xff]  }
 0x7f0   : > { %v1814_v43 = vpop.f32.mrb[15].mxu0  ;;  %v1841_v7 = vadd.f32 %v3949_v53, %v4862_v31  ;;  %v5433_v51 = vadd.f32 %v1845_v35, %v1840_v25  ;;  %v4233_v31 = vld [vmem:[%s4805_s19 + $0x8] ss:$12 sps:$4 sm:$0xff]   ;;  %2263 = vmatprep.subr.bf16.mxu1 %v4227_v28  ;;  %v4236_v25 = vld [vmem:[%s4805_s19 + $0x30] ss:$12 sps:$4 sm:$0xff]  }
 0x7f1   : > { %v5429_v11 = vadd.f32 %v1845_v35, %v1838_v27  ;;  %v1839_v10 = vadd.f32 %v1814_v43, %v4856_v29  ;;  %2264 = vmatpush1.bf16.msra.mxu1 %v4229_v61  ;;  %v4232_v29 = vld [vmem:[%s4805_s19 + $0x18] ss:$12 sps:$4 sm:$0xff]   ;;  %3950 = vmatprep.subr.bf16.mxu0 %v4233_v31  ;;  %v4237_v27 = vld [vmem:[%s4805_s19 + $0x20] ss:$12 sps:$4 sm:$0xff]   ;;  %v4240_v28 = vld [vmem:[%s4805_s19 + $0x48] ss:$12 sps:$4 sm:$0xff]  }
 0x7f2   : > { %6270 = vst [vmem:[#allocation20_spill] sm:$0xff] %v5433_v51  ;;  %v5438_v30 = vadd.f32 %v1845_v35, %v1841_v7  ;;  %2265 = vmatprep.subr.bf16.mxu1 %v4230_v41  ;;  %3951 = vmatpush3.bf16.msra.mxu0 %v4233_v31  ;;  %v4238_v7 = vld [vmem:[%s4805_s19 + $0x4c] ss:$12 sps:$4 sm:$0xff]  }
 0x7f3   : > { %6269 = vst [vmem:[#allocation19_spill] sm:$0xff] %v5429_v11  ;;  %v5435_v9 = vadd.f32 %v1845_v35, %v1839_v10  ;;  %1886 = vadd.xlane.f32.xlu1 %v5429_v11  ;;  %3952 = vmatprep.subr.bf16.mxu0 %v4237_v27  ;;  %v4241_v41 = vld [vmem:[%s4805_s19 + $0x38] ss:$12 sps:$4 sm:$0xff]  }
 0x7f4   : > { %6272 = vst [vmem:[#allocation22_spill] sm:$0xff] %v5438_v30 }
 0x7f5   : > { %6271 = vst [vmem:[#allocation21_spill] sm:$0xff] %v5435_v9  ;;  %1888 = vadd.xlane.f32.xlu0 %v5435_v9  ;;  %2266 = vmatpush1.bf16.msra.mxu1 %v4232_v29 }
 0x7f6   : > { %2267 = vmatprep.subr.bf16.mxu1 %v4234_v1  ;;  %3953 = vmatpush3.bf16.msra.mxu0 %v4237_v27  ;;  %v4253_v1 = vld [vmem:[%s4805_s19 + $0x80] ss:$12 sps:$4 sm:$0xff]  }
 0x7f7   : > { %1890 = vadd.xlane.f32.xlu1 %v5433_v51  ;;  %3954 = vmatprep.subr.bf16.mxu0 %v4241_v41 }
 0x7f9   : > { %1892 = vadd.xlane.f32.xlu0 %v5438_v30  ;;  %2268 = vmatpush1.bf16.msra.mxu1 %v4236_v25 }
 0x7fa   : > { %2269 = vmatprep.subr.bf16.mxu1 %v4238_v7  ;;  %3955 = vmatpush3.bf16.msra.mxu0 %v4241_v41  ;;  %v4257_v41 = vld [vmem:[%s4805_s19 + $0x98] ss:$12 sps:$4 sm:$0xff]  }
 0x7fd   : > { %2270 = vmatpush1.bf16.msra.mxu1 %v4240_v28  ;;  %v4256_v28 = vld [vmem:[%s4805_s19 + $0xa8] ss:$12 sps:$4 sm:$0xff]  }
 0x85c   : > { %v1863_v63 = vpop.xlane.xlu0 %1862 }
 0x85d   : > { %v1894_v6 = vmul.f32 0.0078125, %v1863_v63 }
 0x85e   : > { %v1865_v46 = vpop.xlane.xlu1 %1864 }
 0x85f   : > { %v5449_v47 = vsub.f32 %v5381_v54, %v1894_v6  ;;  %v1895_v12 = vmul.f32 0.0078125, %v1865_v46  ;;  %v4242_v6 = vld [vmem:[%s4805_s19 + $0x64] ss:$12 sps:$4 sm:$0xff]  }
 0x860   : > { %v1867_v8 = vpop.xlane.xlu0 %1866  ;;  %2271 = vmatprep.subr.bf16.mxu1 %v4242_v6 }
 0x861   : > { %v5452_v35 = vsub.f32 %v5384_v59, %v1895_v12  ;;  %v1896_v56 = vmul.f32 0.0078125, %v1867_v8  ;;  %v1926_v48 = vmul.f32 %v5449_v47, %v5449_v47 }
 0x863   : > { %v5457_v0 = vsub.f32 %v5387_v49, %v1896_v56  ;;  %1942 = vadd.xlane.f32.xlu1 %v1926_v48  ;;  %v1927_v33 = vmul.f32 %v5452_v35, %v5452_v35  ;;  %v4244_v56 = vld [vmem:[%s4805_s19 + $0x60] ss:$12 sps:$4 sm:$0xff]  }
 0x864   : > { %v1869_v57 = vpop.xlane.xlu0 %1868  ;;  %2272 = vmatpush1.bf16.msra.mxu1 %v4244_v56  ;;  %v4604_v56 = vmov 0  }
 0x865   : > { %v1897_v60 = vmul.f32 0.0078125, %v1869_v57  ;;  %1944 = vadd.xlane.f32.xlu0 %v1927_v33  ;;  %v1928_v55 = vmul.f32 %v5457_v0, %v5457_v0  ;;  %v4245_v33 = vld [vmem:[%s4805_s19 + $0x50] ss:$12 sps:$4 sm:$0xff]   ;;  %2295 = vmatprep.mubr.bf16.mxu1 %v4604_v56 }
 0x866   : > { %3956 = vmatprep.subr.bf16.mxu0 %v4245_v33 }
 0x867   : > { %v5464_v34 = vsub.f32 %v5392_v16, %v1897_v60  ;;  %1946 = vadd.xlane.f32.xlu1 %v1928_v55  ;;  %3957 = vmatpush3.bf16.msra.mxu0 %v4245_v33 }
 0x868   : > { %v1871_v17 = vpop.xlane.xlu1 %1870 }
 0x869   : > { %v1898_v5 = vmul.f32 0.0078125, %v1871_v17  ;;  %v1929_v18 = vmul.f32 %v5464_v34, %v5464_v34  ;;  %v4246_v17 = vld [vmem:[%s4805_s19 + $0x7c] ss:$12 sps:$4 sm:$0xff]  }
 0x86a   : > { %v1873_v44 = vpop.xlane.xlu0 %1872  ;;  %2273 = vmatprep.subr.bf16.mxu1 %v4246_v17 }
 0x86b   : > { %v5469_v36 = vsub.f32 %v5397_v62, %v1898_v5  ;;  %v1899_v19 = vmul.f32 0.0078125, %v1873_v44  ;;  %1948 = vadd.xlane.f32.xlu0 %v1929_v18  ;;  %v4248_v44 = vld [vmem:[%s4805_s19 + $0x78] ss:$12 sps:$4 sm:$0xff]  }
 0x86c   : > { %v1875_v3 = vpop.xlane.xlu1 %1874  ;;  %2274 = vmatpush1.bf16.msra.mxu1 %v4248_v44 }
 0x86d   : > { %v5472_v22 = vsub.f32 %v5401_v38, %v1899_v19  ;;  %v1900_v15 = vmul.f32 0.0078125, %v1875_v3  ;;  %v1930_v21 = vmul.f32 %v5469_v36, %v5469_v36  ;;  %v4249_v19 = vld [vmem:[%s4805_s19 + $0x68] ss:$12 sps:$4 sm:$0xff]  }
 0x86e   : > { %v1877_v40 = vpop.xlane.xlu0 %1876  ;;  %3958 = vmatprep.subr.bf16.mxu0 %v4249_v19 }
 0x86f   : > { %v5477_v23 = vsub.f32 %v5404_v39, %v1900_v15  ;;  %v1901_v50 = vmul.f32 0.0078125, %v1877_v40  ;;  %1950 = vadd.xlane.f32.xlu1 %v1930_v21  ;;  %v1931_v37 = vmul.f32 %v5472_v22, %v5472_v22  ;;  %v4250_v21 = vld [vmem:[%s4805_s19 + $0x94] ss:$12 sps:$4 sm:$0xff]   ;;  %3959 = vmatpush3.bf16.msra.mxu0 %v4249_v19 }
 0x870   : > { %2275 = vmatprep.subr.bf16.mxu1 %v4250_v21  ;;  %3960 = vmatprep.subr.bf16.mxu0 %v4253_v1 }
 0x871   : > { %v5483_v24 = vsub.f32 %v5407_v20, %v1901_v50  ;;  %1952 = vadd.xlane.f32.xlu0 %v1931_v37  ;;  %v1932_v26 = vmul.f32 %v5477_v23, %v5477_v23  ;;  %v4252_v50 = vld [vmem:[%s4805_s19 + $0x90] ss:$12 sps:$4 sm:$0xff]  }
 0x872   : > { %2276 = vmatpush1.bf16.msra.mxu1 %v4252_v50 }
 0x873   : > { %1954 = vadd.xlane.f32.xlu1 %v1932_v26  ;;  %v1933_v53 = vmul.f32 %v5483_v24, %v5483_v24  ;;  %3961 = vmatpush3.bf16.msra.mxu0 %v4253_v1 }
 0x874   : > { %v1879_v43 = vpop.xlane.xlu1 %1878  ;;  %3962 = vmatprep.subr.bf16.mxu0 %v4257_v41 }
 0x875   : > { %v1902_v10 = vmul.f32 0.0078125, %v1879_v43  ;;  %1956 = vadd.xlane.f32.xlu0 %v1933_v53  ;;  %v4254_v53 = vld [vmem:[%s4805_s19 + $0xac] ss:$12 sps:$4 sm:$0xff]  }
 0x876   : > { %v1881_v61 = vpop.xlane.xlu0 %1880  ;;  %2277 = vmatprep.subr.bf16.mxu1 %v4254_v53 }
 0x877   : > { %v5495_v31 = vsub.f32 %v5413_v14, %v1902_v10  ;;  %v1903_v29 = vmul.f32 0.0078125, %v1881_v61  ;;  %2278 = vmatpush1.bf16.msra.mxu1 %v4256_v28  ;;  %3963 = vmatpush3.bf16.msra.mxu0 %v4257_v41 }
 0x878   : > { %v1883_v63 = vpop.xlane.xlu1 %1882 }
 0x879   : > { %v5499_v46 = vsub.f32 %v5417_v42, %v1903_v29  ;;  %v1904_v12 = vmul.f32 0.0078125, %v1883_v63  ;;  %v1934_v8 = vmul.f32 %v5495_v31, %v5495_v31 }
 0x87a   : > { %v1885_v48 = vpop.xlane.xlu0 %1884 }
 0x87b   : > { %v5506_v57 = vsub.f32 %v5420_v4, %v1904_v12  ;;  %v1905_v60 = vmul.f32 0.0078125, %v1885_v48  ;;  %1958 = vadd.xlane.f32.xlu1 %v1934_v8  ;;  %v1935_v55 = vmul.f32 %v5499_v46, %v5499_v46  ;;  %v4258_v48 = vld [vmem:[%s4805_s19 + $0xb0] ss:$12 sps:$4 sm:$0xff]  }
 0x87c   : > { %3964 = vmatprep.subr.bf16.mxu0 %v4258_v48 }
 0x87d   : > { %v5512_v5 = vsub.f32 %v5423_v58, %v1905_v60  ;;  %1960 = vadd.xlane.f32.xlu0 %v1935_v55  ;;  %v1936_v18 = vmul.f32 %v5506_v57, %v5506_v57  ;;  %3965 = vmatpush3.bf16.msra.mxu0 %v4258_v48  ;;  %v4259_v60 = vld [vmem:[%s4810_s18 + $0x40] sm:$0xff]  }
 0x87e   : > { %v4262_v55 = vld [vmem:[%s4810_s18 + $0x80] sm:$0xff]   ;;  %3742 = vmatprep.subr.bf16.mxu0 %v4259_v60 }
 0x87f   : > { %1962 = vadd.xlane.f32.xlu1 %v1936_v18  ;;  %v1937_v3 = vmul.f32 %v5512_v5, %v5512_v5  ;;  %3982 = vmatprep.subr.bf16.mxu1 %v4262_v55 }
 0x880   : > { %v1887_v15 = vpop.xlane.xlu1 %1886 }
 0x881   : > { %v1906_v40 = vmul.f32 0.0078125, %v1887_v15  ;;  %1964 = vadd.xlane.f32.xlu0 %v1937_v3 }
 0x882   : > { %v1889_v37 = vpop.xlane.xlu0 %1888 }
 0x883   : > { %v5524_v26 = vsub.f32 %v5429_v11, %v1906_v40  ;;  %v1907_v25 = vmul.f32 0.0078125, %v1889_v37 }
 0x884   : > { %v1891_v27 = vpop.xlane.xlu1 %1890 }
 0x885   : > { %v5528_v43 = vsub.f32 %v5435_v9, %v1907_v25  ;;  %v1908_v7 = vmul.f32 0.0078125, %v1891_v27  ;;  %v1938_v10 = vmul.f32 %v5524_v26, %v5524_v26  ;;  %v2040_v25 = vsub.s32 3, %v4946_v2 }
 0x886   : > { %v1893_v61 = vpop.xlane.xlu0 %1892 }
 0x887   : > { %v5535_v29 = vsub.f32 %v5433_v51, %v1908_v7  ;;  %v1909_v63 = vmul.f32 0.0078125, %v1893_v61  ;;  %1966 = vadd.xlane.f32.xlu1 %v1938_v10  ;;  %v1939_v6 = vmul.f32 %v5528_v43, %v5528_v43  ;;  %v5552_v10 = vrot.slane %v4953_v32, %v2040_v25 }
 0x888   : > { %v2060_v61 = vsub.s32 4, %v4946_v2 }
 0x889   : > { %v5540_v12 = vsub.f32 %v5438_v30, %v1909_v63  ;;  %1968 = vadd.xlane.f32.xlu0 %v1939_v6  ;;  %v1940_v8 = vmul.f32 %v5535_v29, %v5535_v29 }
 0x88b   : > { %1970 = vadd.xlane.f32.xlu1 %v1940_v8  ;;  %v1941_v33 = vmul.f32 %v5540_v12, %v5540_v12 }
 0x88d   : > { %1972 = vadd.xlane.f32.xlu0 %v1941_v33 }
 0x8f0   : > { %v1943_v17 = vpop.xlane.xlu1 %1942 }
 0x8f1   : > { %v1974_v18 = vmul.f32 0.0078125, %v1943_v17 }
 0x8f2   : > { %v1945_v44 = vpop.xlane.xlu0 %1944 }
 0x8f3   : > { %v1990_v19 = vadd.f32 1e-05, %v1974_v18  ;;  %v1975_v3 = vmul.f32 0.0078125, %v1945_v44 }
 0x8f4   : > { %v1947_v15 = vpop.xlane.xlu1 %1946 }
 0x8f5   : > { %4283 = vrsqrt.f32 %v1990_v19  ;;  %v1991_v21 = vadd.f32 1e-05, %v1975_v3  ;;  %v1976_v40 = vmul.f32 0.0078125, %v1947_v15  ;;  %v5559_v3 = vrot.slane %v4953_v32, %v2060_v61 }
 0x8f7   : > { %4285 = vrsqrt.f32 %v1991_v21  ;;  %v1992_v50 = vadd.f32 1e-05, %v1976_v40 }
 0x8f8   : > { %v1949_v37 = vpop.xlane.xlu0 %1948 }
 0x8f9   : > { %4287 = vrsqrt.f32 %v1992_v50  ;;  %v1977_v1 = vmul.f32 0.0078125, %v1949_v37 }
 0x8fb   : > { %v1993_v27 = vadd.f32 1e-05, %v1977_v1 }
 0x8fc   : > { %v1951_v53 = vpop.xlane.xlu1 %1950 }
 0x8fd   : > { %4289 = vrsqrt.f32 %v1993_v27  ;;  %v1978_v7 = vmul.f32 0.0078125, %v1951_v53 }
 0x8fe   : > { %v1953_v28 = vpop.xlane.xlu0 %1952 }
 0x8ff   : > { %v4284_v41 = vpop.eup %4283  ;;  %v1994_v63 = vadd.f32 1e-05, %v1978_v7  ;;  %v1979_v6 = vmul.f32 0.0078125, %v1953_v28 }
 0x900   : > { %v1955_v8 = vpop.xlane.xlu1 %1954  ;;  %v2022_v48 = vmul.f32 %v4284_v41, %v5449_v47 }
 0x901   : > { %v4286_v33 = vpop.eup %4285  ;;  %4291 = vrsqrt.f32 %v1994_v63  ;;  %v1995_v60 = vadd.f32 1e-05, %v1979_v6  ;;  %v1980_v17 = vmul.f32 0.0078125, %v1955_v8 }
 0x902   : > { %v1957_v18 = vpop.xlane.xlu0 %1956  ;;  %v2023_v44 = vmul.f32 %v4286_v33, %v5452_v35  ;;  %v2042_v19 = vmul.f32 %v5552_v10, %v2022_v48 }
 0x903   : > { %v4288_v15 = vpop.eup %4287  ;;  %4293 = vrsqrt.f32 %v1995_v60  ;;  %v1996_v21 = vadd.f32 1e-05, %v1980_v17  ;;  %v1981_v40 = vmul.f32 0.0078125, %v1957_v18 }
 0x904   : > { %v2024_v50 = vmul.f32 %v4288_v15, %v5457_v0  ;;  %v2043_v47 = vmul.f32 %v5552_v10, %v2023_v44  ;;  %v2062_v1 = vadd.f32 %v5559_v3, %v2042_v19  ;;  %v4260_v19 = vld [vmem:[%s4810_s18] sm:$0xff]  }
 0x905   : > { %4295 = vrsqrt.f32 %v1996_v21  ;;  %v1997_v37 = vadd.f32 1e-05, %v1981_v40 }
 0x906   : > { %v2063_v25 = vadd.f32 %v5559_v3, %v2043_v47  ;;  %v2044_v27 = vmul.f32 %v5552_v10, %v2024_v50 }
 0x907   : > { %v4290_v35 = vpop.eup %4289  ;;  %4297 = vrsqrt.f32 %v1997_v37 }
 0x908   : > { %v2025_v53 = vmul.f32 %v4290_v35, %v5464_v34  ;;  %v1959_v7 = vpop.xlane.xlu1 %1958  ;;  %v2078_v28 = vpack.c.bf16 %v2063_v25, %v2062_v1  ;;  %v2064_v33 = vadd.f32 %v5559_v3, %v2044_v27 }
 0x909   : > { %v1982_v61 = vmul.f32 0.0078125, %v1959_v7  ;;  %v4263_v7 = vld [vmem:[%s4810_s18 + $0x8] sm:$0xff]  }
 0x90a   : > { %v2045_v41 = vmul.f32 %v5552_v10, %v2025_v53  ;;  %2296 = vmatmul.mubr.bf16.vlgmr.msra.gmra.mrb[0].mxu1 %v2078_v28  ;;  %3966 = vmatprep.mubr.bf16.mxu0 %v2078_v28  ;;  %v1961_v0 = vpop.xlane.xlu0 %1960 }
 0x90b   : > { %v4292_v63 = vpop.eup %4291  ;;  %v1998_v6 = vadd.f32 1e-05, %v1982_v61  ;;  %v1983_v8 = vmul.f32 0.0078125, %v1961_v0  ;;  %2305 = vmatprep.mubr.bf16.mxu1 %v4604_v56  ;;  %3983 = vmatpush3.bf16.msra.mxu1 %v4262_v55  ;;  %v4261_v55 = vld [vmem:[%s4810_s18 + $0x48] sm:$0xff]  }
 0x90c   : > { %v1963_v48 = vpop.xlane.xlu1 %1962  ;;  %v2065_v34 = vadd.f32 %v5559_v3, %v2045_v41  ;;  %v2026_v60 = vmul.f32 %v4292_v63, %v5469_v36 }
 0x90d   : > { %v4294_v17 = vpop.eup %4293  ;;  %4299 = vrsqrt.f32 %v1998_v6  ;;  %v1999_v18 = vadd.f32 1e-05, %v1983_v8  ;;  %v1984_v44 = vmul.f32 0.0078125, %v1963_v48 }
 0x90e   : > { %v1965_v15 = vpop.xlane.xlu0 %1964  ;;  %v2079_v21 = vpack.c.bf16 %v2065_v34, %v2064_v33  ;;  %v2027_v40 = vmul.f32 %v4294_v17, %v5472_v22  ;;  %v2046_v50 = vmul.f32 %v5552_v10, %v2026_v60 }
 0x90f   : > { %v4296_v47 = vpop.eup %4295  ;;  %4301 = vrsqrt.f32 %v1999_v18  ;;  %v2000_v37 = vadd.f32 1e-05, %v1984_v44  ;;  %v1985_v1 = vmul.f32 0.0078125, %v1965_v15 }
 0x910   : > { %3967 = vmatmul.mubr.bf16.vlgmr.msra.gmra.mrb[16].mxu0 %v2079_v21  ;;  %v2047_v36 = vmul.f32 %v5552_v10, %v2027_v40  ;;  %v2028_v25 = vmul.f32 %v4296_v47, %v5477_v23  ;;  %v2066_v53 = vadd.f32 %v5559_v3, %v2046_v50 }
 0x911   : > { %v4298_v35 = vpop.eup %4297  ;;  %4303 = vrsqrt.f32 %v2000_v37  ;;  %v2001_v27 = vadd.f32 1e-05, %v1985_v1  ;;  %3743 = vmatpush3.bf16.msra.mxu0 %v4260_v19 }
 0x912   : > { %2306 = vmatmul.mubr.bf16.gmra.mrb[4].mxu1 %v2079_v21  ;;  %v2067_v22 = vadd.f32 %v5559_v3, %v2047_v36  ;;  %v2029_v28 = vmul.f32 %v4298_v35, %v5483_v24  ;;  %v2048_v61 = vmul.f32 %v5552_v10, %v2028_v25  ;;  %3744 = vmatprep.subr.bf16.mxu0 %v4261_v55 }
 0x913   : > { %4305 = vrsqrt.f32 %v2001_v27  ;;  %2315 = vmatprep.mubr.bf16.mxu1 %v4604_v56 }
 0x914   : > { %v1967_v41 = vpop.xlane.xlu1 %1966  ;;  %v2080_v23 = vpack.c.bf16 %v2067_v22, %v2066_v53  ;;  %v2049_v0 = vmul.f32 %v5552_v10, %v2029_v28  ;;  %v2068_v8 = vadd.f32 %v5559_v3, %v2048_v61 }
 0x915   : > { %v1986_v63 = vmul.f32 0.0078125, %v1967_v41  ;;  %3745 = vmatpush3.bf16.msra.mxu0 %v4263_v7 }
 0x916   : > { %3970 = vmatprep.mubr.bf16.mxu0 %v2080_v23  ;;  %v1969_v6 = vpop.xlane.xlu0 %1968  ;;  %v2069_v48 = vadd.f32 %v5559_v3, %v2049_v0 }
 0x917   : > { %v4300_v33 = vpop.eup %4299  ;;  %v2002_v24 = vadd.f32 1e-05, %v1986_v63  ;;  %v1987_v34 = vmul.f32 0.0078125, %v1969_v6 }
 0x918   : > { %v1971_v60 = vpop.xlane.xlu1 %1970  ;;  %v2081_v17 = vpack.c.bf16 %v2069_v48, %v2068_v8  ;;  %v2030_v18 = vmul.f32 %v4300_v33, %v5495_v31 }
 0x919   : > { %v4302_v44 = vpop.eup %4301  ;;  %4307 = vrsqrt.f32 %v2002_v24  ;;  %v2003_v19 = vadd.f32 1e-05, %v1987_v34  ;;  %v1988_v15 = vmul.f32 0.0078125, %v1971_v60 }
 0x91a   : > { %2316 = vmatmul.mubr.bf16.gmra.mrb[8].mxu1 %v2080_v23  ;;  %3971 = vmatmul.mubr.bf16.gmra.mrb[20].mxu0 %v2081_v17  ;;  %v1973_v21 = vpop.xlane.xlu0 %1972  ;;  %v2031_v40 = vmul.f32 %v4302_v44, %v5499_v46  ;;  %v2050_v50 = vmul.f32 %v5552_v10, %v2030_v18 }
 0x91b   : > { %v4304_v55 = vpop.eup %4303  ;;  %4309 = vrsqrt.f32 %v2003_v19  ;;  %v2004_v47 = vadd.f32 1e-05, %v1988_v15  ;;  %v1989_v37 = vmul.f32 0.0078125, %v1973_v21  ;;  %2325 = vmatprep.mubr.bf16.mxu1 %v4604_v56  ;;  %v4266_v19 = vld [vmem:[%s4810_s18 + $0x88] sm:$0xff]   ;;  %v4268_v15 = vld [vmem:[%s4810_s18 + $0x18] sm:$0xff]   ;;  %v4269_v21 = vld [vmem:[%s4810_s18 + $0x90] sm:$0xff]  }
 0x91c   : > { %v2051_v1 = vmul.f32 %v5552_v10, %v2031_v40  ;;  %v2032_v31 = vmul.f32 %v4304_v55, %v5506_v57  ;;  %v2070_v35 = vadd.f32 %v5559_v3, %v2050_v50  ;;  %3984 = vmatprep.subr.bf16.mxu1 %v4266_v19  ;;  %v4271_v40 = vld [vmem:[%s4810_s18 + $0x20] sm:$0xff]   ;;  %v4272_v50 = vld [vmem:[%s4810_s18 + $0x98] sm:$0xff]   ;;  %v4273_v55 = vld [vmem:[%s4810_s18 + $0x68] sm:$0xff]  }
 0x91d   : > { %v4306_v36 = vpop.eup %4305  ;;  %4311 = vrsqrt.f32 %v2004_v47  ;;  %v2005_v25 = vadd.f32 1e-05, %v1989_v37  ;;  %3985 = vmatpush3.bf16.msra.mxu1 %v4266_v19  ;;  %v4274_v47 = vld [vmem:[%s4810_s18 + $0x28] sm:$0xff]   ;;  %v4275_v37 = vld [vmem:[%s4810_s18 + $0xa0] sm:$0xff]  }
 0x91e   : > { %v2071_v27 = vadd.f32 %v5559_v3, %v2051_v1  ;;  %v2033_v46 = vmul.f32 %v4306_v36, %v5512_v5  ;;  %v2052_v53 = vmul.f32 %v5552_v10, %v2032_v31  ;;  %3986 = vmatprep.subr.bf16.mxu1 %v4269_v21  ;;  %v4276_v1 = vld [vmem:[%s4810_s18 + $0x70] sm:$0xff]   ;;  %v4278_v36 = vld [vmem:[%s4810_s18 + $0xa8] sm:$0xff]  }
 0x91f   : > { %4313 = vrsqrt.f32 %v2005_v25  ;;  %v4277_v31 = vld [vmem:[%s4810_s18 + $0x30] sm:$0xff]   ;;  %v4279_v25 = vld [vmem:[%s4810_s18 + $0x78] sm:$0xff]  }
 0x920   : > { %v2082_v7 = vpack.c.bf16 %v2071_v27, %v2070_v35  ;;  %v2053_v22 = vmul.f32 %v5552_v10, %v2033_v46  ;;  %v2072_v28 = vadd.f32 %v5559_v3, %v2052_v53  ;;  %v4280_v35 = vld [vmem:[%s4810_s18 + $0x38] sm:$0xff]   ;;  %v4281_v27 = vld [vmem:[%s4810_s18 + $0xb0] sm:$0xff]   ;;  %v2118_v53 = vld [vmem:[%s4815_s20] sm:$0x7] }
 0x921   : > { %3987 = vmatpush3.bf16.msra.mxu1 %v4269_v21  ;;  %v4282_v46 = vld [vmem:[%s4810_s18 + $0xb8] sm:$0xff]  }
 0x922   : > { %2326 = vmatmul.mubr.bf16.gmra.mrb[12].mxu1 %v2081_v17  ;;  %3974 = vmatprep.mubr.bf16.mxu0 %v2082_v7  ;;  %v2073_v57 = vadd.f32 %v5559_v3, %v2053_v22  ;;  %v5640_v22 = vrot.slane %v2118_v53, %v4960_v45 }
 0x923   : > { %v4308_v61 = vpop.eup %4307  ;;  %2335 = vmatprep.mubr.bf16.mxu1 %v4604_v56  ;;  %3988 = vmatprep.subr.bf16.mxu1 %v4272_v50 }
 0x924   : > { %v2083_v41 = vpack.c.bf16 %v2073_v57, %v2072_v28  ;;  %v2034_v23 = vmul.f32 %v4308_v61, %v5524_v26 }
 0x925   : > { %v4310_v0 = vpop.eup %4309  ;;  %3989 = vmatpush3.bf16.msra.mxu1 %v4272_v50 }
 0x926   : > { %3975 = vmatmul.mubr.bf16.gmra.mrb[24].mxu0 %v2083_v41  ;;  %v2035_v5 = vmul.f32 %v4310_v0, %v5528_v43  ;;  %v2054_v63 = vmul.f32 %v5552_v10, %v2034_v23  ;;  %3990 = vmatprep.subr.bf16.mxu1 %v4275_v37 }
 0x927   : > { %v4312_v6 = vpop.eup %4311 }
 0x928   : > { %v2055_v8 = vmul.f32 %v5552_v10, %v2035_v5  ;;  %v2036_v48 = vmul.f32 %v4312_v6, %v5535_v29  ;;  %v2074_v24 = vadd.f32 %v5559_v3, %v2054_v63  ;;  %v5647_v6 = vrot.slane %v2118_v53, %v1844_v52 }
 0x929   : > { %v4314_v33 = vpop.eup %4313  ;;  %3991 = vmatpush3.bf16.msra.mxu1 %v4275_v37 }
 0x92a   : > { %2336 = vmatmul.mubr.bf16.gmra.mrb[16].mxu1 %v2082_v7  ;;  %v2075_v34 = vadd.f32 %v5559_v3, %v2055_v8  ;;  %v2037_v26 = vmul.f32 %v4314_v33, %v5540_v12  ;;  %v2056_v60 = vmul.f32 %v5552_v10, %v2036_v48  ;;  %v4264_v12 = vld [vmem:[%s4810_s18 + $0x50] sm:$0xff]   ;;  %3992 = vmatprep.subr.bf16.mxu1 %v4278_v36 }
 0x92b   : > { %2345 = vmatprep.mubr.bf16.mxu1 %v4604_v56  ;;  %3746 = vmatprep.subr.bf16.mxu0 %v4264_v12  ;;  %v5637_v7 = vrot.slane %v2118_v53, %v4949_v13 }
 0x92c   : > { %v2084_v43 = vpack.c.bf16 %v2075_v34, %v2074_v24  ;;  %v2057_v17 = vmul.f32 %v5552_v10, %v2037_v26  ;;  %v2076_v29 = vadd.f32 %v5559_v3, %v2056_v60  ;;  %v4265_v10 = vld [vmem:[%s4810_s18 + $0x10] sm:$0xff]  }
 0x92d   : > { %3747 = vmatpush3.bf16.msra.mxu0 %v4265_v10  ;;  %3993 = vmatpush3.bf16.msra.mxu1 %v4278_v36 }
 0x92e   : > { %3978 = vmatprep.mubr.bf16.mxu0 %v2084_v43  ;;  %v2077_v18 = vadd.f32 %v5559_v3, %v2057_v17  ;;  %v4267_v3 = vld [vmem:[%s4810_s18 + $0x58] sm:$0xff]   ;;  %3994 = vmatprep.subr.bf16.mxu1 %v4281_v27 }
 0x92f   : > { %3748 = vmatprep.subr.bf16.mxu0 %v4267_v3 }
 0x930   : > { %v2085_v44 = vpack.c.bf16 %v2077_v18, %v2076_v29 }
 0x931   : > { %3749 = vmatpush3.bf16.msra.mxu0 %v4268_v15  ;;  %3995 = vmatpush3.bf16.msra.mxu1 %v4281_v27 }
 0x932   : > { %2346 = vmatmul.mubr.bf16.gmra.mrb[20].mxu1 %v2083_v41  ;;  %3979 = vmatmul.mubr.bf16.gmra.mrb[28].mxu0 %v2085_v44 }
 0x933   : > { %2355 = vmatprep.mubr.bf16.mxu1 %v4604_v56  ;;  %3996 = vmatprep.subr.bf16.mxu1 %v4282_v46 }
 0x935   : > { %3997 = vmatpush3.bf16.msra.mxu1 %v4282_v46 }
 0x93a   : > { %2356 = vmatmul.mubr.bf16.gmra.mrb[24].mxu1 %v2084_v43 }
 0x93b   : > { %2365 = vmatprep.mubr.bf16.mxu1 %v4604_v56  ;;  %v4270_v56 = vld [vmem:[%s4810_s18 + $0x60] sm:$0xff]  }
 0x93c   : > { %3750 = vmatprep.subr.bf16.mxu0 %v4270_v56 }
 0x93d   : > { %3751 = vmatpush3.bf16.msra.mxu0 %v4271_v40 }
 0x93e   : > { %3752 = vmatprep.subr.bf16.mxu0 %v4273_v55 }
 0x941   : > { %3753 = vmatpush3.bf16.msra.mxu0 %v4274_v47 }
 0x942   : > { %2366 = vmatmul.mubr.bf16.gmra.mrb[28].mxu1 %v2085_v44  ;;  %3754 = vmatprep.subr.bf16.mxu0 %v4276_v1 }
 0x945   : > { %3755 = vmatpush3.bf16.msra.mxu0 %v4277_v31 }
 0x946   : > { %3756 = vmatprep.subr.bf16.mxu0 %v4279_v25 }
 0x949   : > { %3757 = vmatpush3.bf16.msra.mxu0 %v4280_v35 }
 0x9dd   : > { %v2297_v28 = vpop.f32.mrb[0].mxu1 }
 0x9de   : > { %v2298_v57 = vadd.f32 %v2297_v28, %v5637_v7  ;;  %v2299_v61 = vpop.f32.mrb[1].mxu1 }
 0x9df   : > { %v2300_v41 = vadd.f32 %v2299_v61, %v5640_v22  ;;  %v2301_v23 = vpop.f32.mrb[2].mxu1 }
 0x9e0   : > { %v2521_v0 = vmul.f32 0.70710677, %v2298_v57  ;;  %v2302_v5 = vadd.f32 %v2301_v23, %v5637_v7  ;;  %v2303_v63 = vpop.f32.mrb[3].mxu1  ;;  %v2473_v1 = vmul.f32 0.5, %v2298_v57 }
 0x9e1   : > { %v2522_v8 = vmul.f32 0.70710677, %v2300_v41  ;;  %v2304_v48 = vadd.f32 %v2303_v63, %v5640_v22  ;;  %v2474_v25 = vmul.f32 0.5, %v2300_v41 }
 0x9e2   : > { %4315 = verf.f32 %v2521_v0  ;;  %v2524_v33 = vmul.f32 0.70710677, %v2302_v5  ;;  %v2476_v35 = vmul.f32 0.5, %v2302_v5 }
 0x9e3   : > { %4317 = verf.f32 %v2522_v8  ;;  %v2525_v24 = vmul.f32 0.70710677, %v2304_v48  ;;  %v3968_v34 = vpop.f32.mrb[16].mxu0  ;;  %v2477_v28 = vmul.f32 0.5, %v2304_v48 }
 0x9e4   : > { %4319 = verf.f32 %v2524_v33  ;;  %v2419_v26 = vadd.f32 %v3968_v34, %v5647_v6  ;;  %v2410_v60 = vpop.f32.mrb[17].mxu0 }
 0x9e5   : > { %v2411_v43 = vadd.f32 %v2410_v60, %v5647_v6  ;;  %v2307_v17 = vpop.f32.mrb[4].mxu1  ;;  %v3969_v29 = vpop.f32.mrb[18].mxu0  ;;  %4321 = verf.f32 %v2525_v24 }
 0x9e6   : > { %v2529_v18 = vmul.f32 0.70710677, %v2419_v26  ;;  %v2308_v52 = vadd.f32 %v2307_v17, %v5637_v7  ;;  %v2422_v44 = vadd.f32 %v3969_v29, %v5647_v6  ;;  %v2309_v12 = vpop.f32.mrb[5].mxu1  ;;  %v2413_v10 = vpop.f32.mrb[19].mxu0  ;;  %v2481_v8 = vmul.f32 0.5, %v2419_v26 }
 0x9e7   : > { %v2523_v19 = vmul.f32 0.70710677, %v2411_v43  ;;  %v2310_v3 = vadd.f32 %v2309_v12, %v5640_v22  ;;  %v2414_v15 = vadd.f32 %v2413_v10, %v5647_v6  ;;  %v2311_v21 = vpop.f32.mrb[6].mxu1  ;;  %v5660_v5 = vmul.f32 0.5, %v2411_v43 }
 0x9e8   : > { %4323 = verf.f32 %v2529_v18  ;;  %v2527_v56 = vmul.f32 0.70710677, %v2308_v52  ;;  %v2313_v40 = vpop.f32.mrb[7].mxu1  ;;  %v2532_v50 = vmul.f32 0.70710677, %v2422_v44  ;;  %v2312_v37 = vadd.f32 %v2311_v21, %v5637_v7 }
 0x9e9   : > { %4325 = verf.f32 %v2523_v19  ;;  %v2528_v55 = vmul.f32 0.70710677, %v2310_v3  ;;  %v2526_v47 = vmul.f32 0.70710677, %v2414_v15  ;;  %v2314_v31 = vadd.f32 %v2313_v40, %v5640_v22 }
 0x9ea   : > { %4327 = verf.f32 %v2527_v56  ;;  %v2530_v27 = vmul.f32 0.70710677, %v2312_v37  ;;  %v5663_v18 = vmul.f32 0.5, %v2308_v52  ;;  %v2484_v12 = vmul.f32 0.5, %v2422_v44 }
 0x9eb   : > { %4329 = verf.f32 %v2532_v50  ;;  %v2531_v61 = vmul.f32 0.70710677, %v2314_v31 }
 0x9ec   : > { %v4316_v36 = vpop.eup %4315  ;;  %4331 = verf.f32 %v2528_v55  ;;  %v5669_v55 = vmul.f32 0.5, %v2310_v3 }
 0x9ed   : > { %v4318_v46 = vpop.eup %4317  ;;  %v2617_v53 = vadd.f32 1.0, %v4316_v36  ;;  %4333 = verf.f32 %v2526_v47  ;;  %v2317_v23 = vpop.f32.mrb[8].mxu1  ;;  %v5671_v47 = vmul.f32 0.5, %v2414_v15  ;;  %v2483_v15 = vmul.f32 0.5, %v2314_v31 }
 0x9ee   : > { %v3972_v0 = vpop.f32.mrb[20].mxu0  ;;  %v4320_v63 = vpop.eup %4319  ;;  %4335 = verf.f32 %v2530_v27  ;;  %v2318_v57 = vadd.f32 %v2317_v23, %v5637_v7  ;;  %v2618_v56 = vadd.f32 1.0, %v4318_v46 }
 0x9ef   : > { %v2435_v33 = vadd.f32 %v3972_v0, %v5647_v6  ;;  %v2319_v24 = vpop.f32.mrb[9].mxu1  ;;  %v2426_v34 = vpop.f32.mrb[21].mxu0  ;;  %v2620_v41 = vadd.f32 1.0, %v4320_v63  ;;  %4337 = verf.f32 %v2531_v61  ;;  %v5665_v21 = vmul.f32 %v2617_v53, %v2473_v1 }
 0x9f0   : > { %v2320_v60 = vadd.f32 %v2319_v24, %v5640_v22  ;;  %v2321_v48 = vpop.f32.mrb[10].mxu1  ;;  %v3973_v17 = vpop.f32.mrb[22].mxu0  ;;  %v2533_v26 = vmul.f32 0.70710677, %v2318_v57  ;;  %v2427_v27 = vadd.f32 %v2426_v34, %v5647_v6  ;;  %v2482_v53 = vmul.f32 0.5, %v2312_v37 }
 0x9f1   : > { %v4322_v29 = vpop.eup %4321  ;;  %v2323_v10 = vpop.f32.mrb[11].mxu1  ;;  %v5667_v40 = vmul.f32 %v2620_v41, %v2476_v35  ;;  %v2541_v50 = vmul.f32 0.70710677, %v2435_v33  ;;  %v2322_v1 = vadd.f32 %v2321_v48, %v5637_v7  ;;  %v2666_v0 = vmul.f32 %v2618_v56, %v2474_v25 }
 0x9f2   : > { %v2429_v19 = vpop.f32.mrb[23].mxu0  ;;  %v4324_v43 = vpop.eup %4323  ;;  %v2534_v36 = vmul.f32 0.70710677, %v2320_v60  ;;  %v2621_v61 = vadd.f32 1.0, %v4322_v29  ;;  %4339 = verf.f32 %v2533_v26  ;;  %v2535_v23 = vmul.f32 0.70710677, %v2427_v27 }
 0x9f3   : > { %v4326_v52 = vpop.eup %4325  ;;  %v2625_v35 = vadd.f32 1.0, %v4324_v43  ;;  %4341 = verf.f32 %v2541_v50  ;;  %v2536_v63 = vmul.f32 0.70710677, %v2322_v1  ;;  %v5677_v45 = vmul.f32 0.5, %v2318_v57 }
 0x9f4   : > { %v4328_v46 = vpop.eup %4327  ;;  %4343 = verf.f32 %v2534_v36  ;;  %v5679_v44 = vmul.f32 0.5, %v2435_v33  ;;  %v2438_v29 = vadd.f32 %v3973_v17, %v5647_v6  ;;  %v2669_v43 = vmul.f32 %v2621_v61, %v2477_v28 }
 0x9f5   : > { %v4330_v3 = vpop.eup %4329  ;;  %v2327_v24 = vpop.f32.mrb[12].mxu1  ;;  %v2619_v37 = vadd.f32 1.0, %v4326_v52  ;;  %v5682_v50 = vmul.f32 0.5, %v2320_v60  ;;  %v2324_v25 = vadd.f32 %v2323_v10, %v5640_v22  ;;  %v5685_v36 = vmul.f32 %v2625_v35, %v2481_v8 }
 0x9f6   : > { %v4332_v34 = vpop.eup %4331  ;;  %v2628_v41 = vadd.f32 1.0, %v4330_v3  ;;  %v2329_v48 = vpop.f32.mrb[13].mxu1  ;;  %4345 = verf.f32 %v2535_v23  ;;  %v2544_v57 = vmul.f32 0.70710677, %v2438_v29  ;;  %v2623_v30 = vadd.f32 1.0, %v4328_v46 }
 0x9f7   : > { %v4334_v26 = vpop.eup %4333  ;;  %v2331_v31 = vpop.f32.mrb[14].mxu1  ;;  %v5689_v17 = vmul.f32 0.5, %v2427_v27  ;;  %4347 = verf.f32 %v2536_v63  ;;  %v2537_v28 = vmul.f32 0.70710677, %v2324_v25  ;;  %v2624_v10 = vadd.f32 1.0, %v4332_v34 }
 0x9f8   : > { %v4336_v56 = vpop.eup %4335  ;;  %v5687_v13 = vmul.f32 %v2628_v41, %v2484_v12  ;;  %v2333_v33 = vpop.f32.mrb[15].mxu1  ;;  %v2622_v61 = vadd.f32 1.0, %v4334_v26  ;;  %4349 = verf.f32 %v2544_v57  ;;  %v2430_v12 = vadd.f32 %v2429_v19, %v5647_v6 }
 0x9f9   : > { %v4338_v3 = vpop.eup %4337  ;;  %v3976_v52 = vpop.f32.mrb[24].mxu0  ;;  %v2626_v35 = vadd.f32 1.0, %v4336_v56  ;;  %4351 = verf.f32 %v2537_v28  ;;  %v2328_v23 = vadd.f32 %v2327_v24, %v5637_v7  ;;  %v2330_v27 = vadd.f32 %v2329_v48, %v5640_v22 }
 0x9fa   : > { %v2442_v8 = vpop.f32.mrb[25].mxu0  ;;  %v2627_v46 = vadd.f32 1.0, %v4338_v3  ;;  %v2714_v63 = vpack.c.bf16 %v2669_v43, %v2666_v0  ;;  %v2332_v51 = vadd.f32 %v2331_v31, %v5637_v7  ;;  %v5698_v34 = vmul.f32 %v2619_v37, %v5660_v5 }
 0x9fb   : > { %v3977_v41 = vpop.f32.mrb[26].mxu0  ;;  %v5701_v26 = vmul.f32 %v2623_v30, %v5663_v18  ;;  %v5703_v56 = vmul.f32 0.5, %v2322_v1  ;;  %v2538_v19 = vmul.f32 0.70710677, %v2430_v12  ;;  %v5706_v3 = vmul.f32 %v2624_v10, %v5669_v55 }
 0x9fc   : > { %v2445_v9 = vpop.f32.mrb[27].mxu0  ;;  %v4340_v11 = vpop.eup %4339  ;;  %v5708_v48 = vmul.f32 0.5, %v2438_v29  ;;  %v2539_v0 = vmul.f32 0.70710677, %v2328_v23  ;;  %v2540_v43 = vmul.f32 0.70710677, %v2330_v27  ;;  %2965 = vmatprep.mubr.bf16.mxu0 %v2714_v63  ;;  %v2670_v5 = vmul.f32 %v2622_v61, %v5671_v47 }
 0x9fd   : > { %v2337_v57 = vpop.f32.mrb[16].mxu1  ;;  %v4342_v24 = vpop.eup %4341  ;;  %v5711_v37 = vmul.f32 %v2626_v35, %v2482_v53  ;;  %v5713_v30 = vmul.f32 0.5, %v2324_v25  ;;  %4353 = verf.f32 %v2538_v19  ;;  %v6273_v18 = vpack.c.bf16 %v5667_v40, %v5665_v21 }
 0x9fe   : > { %v4344_v31 = vpop.eup %4343  ;;  %v2339_v1 = vpop.f32.mrb[17].mxu1  ;;  %v5718_v55 = vmul.f32 %v2627_v46, %v2483_v15  ;;  %v2629_v29 = vadd.f32 1.0, %v4340_v11  ;;  %v2542_v28 = vmul.f32 0.70710677, %v2332_v51  ;;  %v2334_v10 = vadd.f32 %v2333_v33, %v5640_v22 }
 0x9ff   : > { %2966 = vmatmul.mubr.bf16.vlgmr.msra.gmra.mrb[32].mxu0 %v6273_v18  ;;  %v2341_v63 = vpop.f32.mrb[18].mxu1  ;;  %v2637_v60 = vadd.f32 1.0, %v4342_v24  ;;  %v5721_v58 = vmul.f32 0.5, %v2430_v12  ;;  %4355 = verf.f32 %v2539_v0  ;;  %v2451_v47 = vadd.f32 %v3976_v52, %v5647_v6 }
 0xa00   : > { %v5724_v53 = vpop.f32.mrb[19].mxu1  ;;  %v4346_v25 = vpop.eup %4345  ;;  %v2630_v61 = vadd.f32 1.0, %v4344_v31  ;;  %v5726_v21 = vmul.f32 0.5, %v2328_v23  ;;  %4357 = verf.f32 %v2540_v43  ;;  %v2543_v40 = vmul.f32 0.70710677, %v2334_v10 }
 0xa01   : > { %v4348_v15 = vpop.eup %4347  ;;  %v5728_v11 = vmul.f32 0.5, %v2330_v27  ;;  %4359 = verf.f32 %v2542_v28  ;;  %v2553_v33 = vmul.f32 0.70710677, %v2451_v47  ;;  %v2443_v35 = vadd.f32 %v2442_v8, %v5647_v6 }
 0xa02   : > { %v4350_v12 = vpop.eup %4349  ;;  %v5732_v46 = vmul.f32 %v2629_v29, %v5677_v45  ;;  %4361 = verf.f32 %v2543_v40  ;;  %v2454_v52 = vadd.f32 %v3977_v41, %v5647_v6  ;;  %v2446_v19 = vadd.f32 %v2445_v9, %v5647_v6 }
 0xa03   : > { %v4352_v23 = vpop.eup %4351  ;;  %v5737_v24 = vmul.f32 %v2637_v60, %v5679_v44  ;;  %v5739_v0 = vmul.f32 0.5, %v2332_v51  ;;  %4363 = verf.f32 %v2553_v33  ;;  %v2547_v27 = vmul.f32 0.70710677, %v2443_v35 }
 0xa04   : > { %v5742_v8 = vmul.f32 %v2630_v61, %v5682_v50  ;;  %v2631_v45 = vadd.f32 1.0, %v4346_v25  ;;  %v2632_v18 = vadd.f32 1.0, %v4348_v15  ;;  %v2556_v29 = vmul.f32 0.70710677, %v2454_v52 }
 0xa05   : > { %v2347_v43 = vpop.f32.mrb[20].mxu1  ;;  %v3980_v31 = vpop.f32.mrb[28].mxu0  ;;  %v2640_v41 = vadd.f32 1.0, %v4350_v12  ;;  %v5744_v40 = vmul.f32 0.5, %v2334_v10  ;;  %v2550_v9 = vmul.f32 0.70710677, %v2446_v19  ;;  %v2715_v44 = vpack.c.bf16 %v2670_v5, %v5698_v34 }
 0xa06   : > { %v2349_v28 = vpop.f32.mrb[21].mxu1  ;;  %v2458_v60 = vpop.f32.mrb[29].mxu0  ;;  %v2633_v33 = vadd.f32 1.0, %v4352_v23  ;;  %4365 = verf.f32 %v2547_v27  ;;  %v2338_v4 = vadd.f32 %v2337_v57, %v5637_v7  ;;  %v2340_v50 = vadd.f32 %v2339_v1, %v5640_v22 }
 0xa07   : > { %v5747_v51 = vpop.f32.mrb[22].mxu1  ;;  %v5751_v61 = vpop.f32.mrb[30].mxu0  ;;  %4367 = verf.f32 %v2556_v29  ;;  %3998 = vmatprep.mubr.bf16.mxu1 %v2715_v44  ;;  %v2717_v10 = vpack.c.bf16 %v5718_v55, %v5706_v3  ;;  %v2342_v34 = vadd.f32 %v2341_v63, %v5637_v7  ;;  %v2716_v5 = vpack.c.bf16 %v5711_v37, %v5701_v26 }
 0xa08   : > { %v5753_v25 = vpop.f32.mrb[23].mxu1  ;;  %v4354_v15 = vpop.eup %4353  ;;  %v5763_v57 = vmul.f32 %v2631_v45, %v5689_v17  ;;  %v2505_v1 = vmul.f32 0.5, %v2451_v47  ;;  %4369 = verf.f32 %v2550_v9  ;;  %v2545_v23 = vmul.f32 0.70710677, %v2338_v4 }
 0xa09   : > { %v5760_v12 = vpop.f32.mrb[31].mxu0  ;;  %v6274_v27 = vpack.c.bf16 %v5687_v13, %v5685_v36  ;;  %v4356_v29 = vpop.eup %4355  ;;  %v5769_v3 = vmul.f32 %v2632_v18, %v5703_v56  ;;  %v2634_v55 = vadd.f32 1.0, %v4354_v15  ;;  %v2546_v63 = vmul.f32 0.70710677, %v2340_v50  ;;  %2973 = vmatprep.mubr.bf16.mxu0 %v2717_v10 }
 0xa0a   : > { %v2548_v26 = vmul.f32 0.70710677, %v2342_v34  ;;  %v4358_v37 = vpop.eup %4357  ;;  %v5771_v44 = vmul.f32 0.5, %v2443_v35  ;;  %v5773_v17 = vmul.f32 0.5, %v2454_v52  ;;  %v5775_v47 = vmul.f32 0.5, %v2446_v19  ;;  %2974 = vmatmul.mubr.bf16.gmra.mrb[36].mxu0 %v2716_v5 }
 0xa0b   : > { %3999 = vmatmul.mubr.bf16.vlgmr.msra.gmra.mrb[32].mxu1 %v6274_v27  ;;  %v2344_v13 = vadd.f32 %v5724_v53, %v5640_v22  ;;  %v4360_v36 = vpop.eup %4359  ;;  %v5780_v45 = vmul.f32 %v2640_v41, %v5708_v48  ;;  %v2681_v56 = vmul.f32 %v2633_v33, %v5713_v30  ;;  %4371 = verf.f32 %v2545_v23 }
 0xa0c   : > { %v2348_v18 = vadd.f32 %v2347_v43, %v5637_v7  ;;  %v4362_v35 = vpop.eup %4361  ;;  %v2635_v52 = vadd.f32 1.0, %v4356_v29  ;;  %v5786_v15 = vmul.f32 0.5, %v2338_v4  ;;  %4373 = verf.f32 %v2546_v63 }
 0xa0d   : > { %v5784_v9 = vpop.f32.mrb[24].mxu1  ;;  %v2549_v19 = vmul.f32 0.70710677, %v2344_v13  ;;  %v4364_v53 = vpop.eup %4363  ;;  %v2682_v5 = vmul.f32 %v2634_v55, %v5721_v58  ;;  %v2636_v48 = vadd.f32 1.0, %v4358_v37  ;;  %4375 = verf.f32 %v2548_v26 }
 0xa0e   : > { %v5788_v10 = vpop.f32.mrb[25].mxu1  ;;  %v2551_v41 = vmul.f32 0.70710677, %v2348_v18  ;;  %v2638_v33 = vadd.f32 1.0, %v4360_v36  ;;  %v2467_v43 = vadd.f32 %v3980_v31, %v5647_v6  ;;  %v2350_v23 = vadd.f32 %v2349_v28, %v5640_v22 }
 0xa0f   : > { %v5791_v30 = vpop.f32.mrb[26].mxu1  ;;  %4377 = verf.f32 %v2549_v19  ;;  %v2639_v27 = vadd.f32 1.0, %v4362_v35  ;;  %v2649_v29 = vadd.f32 1.0, %v4364_v53  ;;  %v2459_v63 = vadd.f32 %v2458_v60, %v5647_v6 }
 0xa10   : > { %v5795_v4 = vpop.f32.mrb[27].mxu1  ;;  %v2720_v42 = vpack.c.bf16 %v2681_v56, %v5742_v8  ;;  %v4366_v58 = vpop.eup %4365  ;;  %v5799_v55 = vmul.f32 0.5, %v2340_v50  ;;  %v5801_v26 = vmul.f32 0.5, %v2342_v34  ;;  %4379 = verf.f32 %v2551_v41 }
 0xa11   : > { %v2565_v37 = vmul.f32 0.70710677, %v2467_v43  ;;  %v4368_v36 = vpop.eup %4367  ;;  %v5804_v31 = vmul.f32 %v2635_v52, %v5726_v21  ;;  %v5807_v28 = vmul.f32 %v2636_v48, %v5728_v11  ;;  %v5809_v35 = vmul.f32 0.5, %v2344_v13 }
 0xa12   : > { %v2552_v19 = vmul.f32 0.70710677, %v2350_v23  ;;  %2981 = vmatprep.mubr.bf16.mxu0 %v2720_v42  ;;  %v4370_v60 = vpop.eup %4369  ;;  %v5812_v8 = vmul.f32 %v2638_v33, %v5739_v0  ;;  %v5814_v50 = vmul.f32 0.5, %v2348_v18  ;;  %v2559_v34 = vmul.f32 0.70710677, %v2459_v63 }
 0xa13   : > { %4381 = verf.f32 %v2565_v37  ;;  %v2687_v56 = vmul.f32 %v2639_v27, %v5744_v40  ;;  %v5817_v53 = vmul.f32 %v2649_v29, %v2505_v1  ;;  %v2721_v21 = vpack.c.bf16 %v2682_v5, %v5763_v57 }
 0xa14   : > { %v2352_v11 = vadd.f32 %v5747_v51, %v5637_v7  ;;  %v2643_v42 = vadd.f32 1.0, %v4366_v58  ;;  %v2652_v52 = vadd.f32 1.0, %v4368_v36  ;;  %v2470_v0 = vadd.f32 %v5751_v61, %v5647_v6 }
 0xa15   : > { %v5822_v13 = vpop.f32.mrb[28].mxu1  ;;  %v2719_v18 = vpack.c.bf16 %v5769_v3, %v5732_v46  ;;  %v4372_v40 = vpop.eup %4371  ;;  %v2646_v1 = vadd.f32 1.0, %v4370_v60  ;;  %4383 = verf.f32 %v2552_v19  ;;  %4002 = vmatprep.mubr.bf16.mxu1 %v2721_v21  ;;  %v2724_v51 = vpack.c.bf16 %v5780_v45, %v5737_v24 }
 0xa16   : > { %v5828_v48 = vpop.f32.mrb[29].mxu1  ;;  %v2554_v57 = vmul.f32 0.70710677, %v2352_v11  ;;  %v4374_v41 = vpop.eup %4373  ;;  %v5834_v33 = vmul.f32 0.5, %v2467_v43  ;;  %4385 = verf.f32 %v2559_v34  ;;  %v2568_v61 = vmul.f32 0.70710677, %v2470_v0 }
 0xa17   : > { %v5832_v5 = vpop.f32.mrb[30].mxu1  ;;  %2982 = vmatmul.mubr.bf16.gmra.mrb[40].mxu0 %v2719_v18  ;;  %v2354_v46 = vadd.f32 %v5753_v25, %v5640_v22  ;;  %v4376_v27 = vpop.eup %4375  ;;  %v5840_v29 = vmul.f32 0.5, %v2350_v23  ;;  %v5842_v58 = vmul.f32 0.5, %v2459_v63  ;;  %4003 = vmatmul.mubr.bf16.gmra.mrb[36].mxu1 %v2724_v51  ;;  %v2462_v24 = vadd.f32 %v5760_v12, %v5647_v6 }
 0xa18   : > { %v5838_v3 = vpop.f32.mrb[31].mxu1  ;;  %4387 = verf.f32 %v2554_v57  ;;  %v2691_v43 = vmul.f32 %v2643_v42, %v5771_v44  ;;  %v2641_v37 = vadd.f32 1.0, %v4372_v40  ;;  %v2700_v25 = vmul.f32 %v2652_v52, %v5773_v17 }
 0xa19   : > { %v4378_v45 = vpop.eup %4377  ;;  %4389 = verf.f32 %v2568_v61  ;;  %v2555_v36 = vmul.f32 0.70710677, %v2354_v46  ;;  %v2694_v19 = vmul.f32 %v2646_v1, %v5775_v47  ;;  %v2642_v60 = vadd.f32 1.0, %v4374_v41 }
 0xa1a   : > { %v2562_v23 = vmul.f32 0.70710677, %v2462_v24  ;;  %v4380_v34 = vpop.eup %4379  ;;  %v2645_v63 = vadd.f32 1.0, %v4378_v45  ;;  %v5851_v21 = vadd.f32 %v5784_v9, %v5637_v7  ;;  %v5855_v6 = vadd.f32 %v5788_v10, %v5640_v22 }
 0xa1b   : > { %4391 = verf.f32 %v2555_v36  ;;  %v2506_v12 = vmul.f32 0.5, %v2352_v11  ;;  %v2723_v44 = vpack.c.bf16 %v2687_v56, %v5807_v28  ;;  %v5860_v17 = vadd.f32 %v5791_v30, %v5637_v7 }
 0xa1c   : > { %4393 = verf.f32 %v2562_v23  ;;  %v2689_v42 = vmul.f32 %v2641_v37, %v5786_v15  ;;  %v2644_v52 = vadd.f32 1.0, %v4376_v27  ;;  %v2520_v18 = vmul.f32 0.5, %v2470_v0 }
 0xa1d   : > { %v4382_v47 = vpop.eup %4381  ;;  %v2557_v9 = vmul.f32 0.70710677, %v5851_v21  ;;  %v2690_v40 = vmul.f32 %v2642_v60, %v5799_v55  ;;  %v2647_v1 = vadd.f32 1.0, %v4380_v34  ;;  %v2558_v10 = vmul.f32 0.70710677, %v5855_v6  ;;  %2989 = vmatprep.mubr.bf16.mxu0 %v2723_v44 }
 0xa1e   : > { %v2560_v11 = vmul.f32 0.70710677, %v5860_v17  ;;  %v2693_v28 = vmul.f32 %v2645_v63, %v5809_v35  ;;  %v2722_v30 = vpack.c.bf16 %v5812_v8, %v5804_v31  ;;  %v5872_v15 = vadd.f32 %v5795_v4, %v5640_v22 }
 0xa1f   : > { %4395 = verf.f32 %v2557_v9  ;;  %v4384_v56 = vpop.eup %4383  ;;  %v2661_v0 = vadd.f32 1.0, %v4382_v47  ;;  %v2507_v57 = vmul.f32 0.5, %v2354_v46  ;;  %v2727_v55 = vpack.c.bf16 %v2694_v19, %v2691_v43 }
 0xa20   : > { %4397 = verf.f32 %v2558_v10  ;;  %v4386_v51 = vpop.eup %4385  ;;  %v2692_v41 = vmul.f32 %v2644_v52, %v5801_v26  ;;  %v2514_v61 = vmul.f32 0.5, %v2462_v24  ;;  %2990 = vmatmul.mubr.bf16.gmra.mrb[44].mxu0 %v2722_v30  ;;  %v2561_v35 = vmul.f32 0.70710677, %v5872_v15 }
 0xa21   : > { %4399 = verf.f32 %v2560_v11  ;;  %v5877_v31 = vmul.f32 %v2647_v1, %v5814_v50  ;;  %4006 = vmatprep.mubr.bf16.mxu1 %v2727_v55  ;;  %v2730_v4 = vpack.c.bf16 %v2700_v25, %v5817_v53  ;;  %v5882_v8 = vadd.f32 %v5822_v13, %v5637_v7 }
 0xa22   : > { %v4388_v27 = vpop.eup %4387  ;;  %v5886_v46 = vadd.f32 %v5828_v48, %v5640_v22  ;;  %4401 = verf.f32 %v2561_v35  ;;  %v2726_v45 = vpack.c.bf16 %v2693_v28, %v2690_v40  ;;  %v2372_v43 = vadd.f32 %v5832_v5, %v5637_v7 }
 0xa23   : > { %v4390_v26 = vpop.eup %4389  ;;  %v2650_v24 = vadd.f32 1.0, %v4388_v27  ;;  %v2709_v50 = vmul.f32 %v2661_v0, %v5834_v33  ;;  %v2648_v37 = vadd.f32 1.0, %v4384_v56  ;;  %4007 = vmatmul.mubr.bf16.gmra.mrb[40].mxu1 %v2730_v4  ;;  %v2563_v53 = vmul.f32 0.70710677, %v5882_v8 }
 0xa24   : > { %v2664_v36 = vadd.f32 1.0, %v4390_v26  ;;  %v2655_v25 = vadd.f32 1.0, %v4386_v51  ;;  %v2564_v48 = vmul.f32 0.70710677, %v5886_v46  ;;  %2997 = vmatprep.mubr.bf16.mxu0 %v2726_v45  ;;  %v2566_v60 = vmul.f32 0.70710677, %v2372_v43 }
 0xa25   : > { %v4392_v13 = vpop.eup %4391  ;;  %v2698_v19 = vmul.f32 %v2650_v24, %v2506_v12  ;;  %4403 = verf.f32 %v2563_v53  ;;  %v2725_v44 = vpack.c.bf16 %v2692_v41, %v2689_v42  ;;  %v2374_v5 = vadd.f32 %v5838_v3, %v5640_v22 }
 0xa26   : > { %v4394_v23 = vpop.eup %4393  ;;  %v2712_v34 = vmul.f32 %v2664_v36, %v2520_v18  ;;  %v2651_v63 = vadd.f32 1.0, %v4392_v13  ;;  %4405 = verf.f32 %v2564_v48  ;;  %v2696_v47 = vmul.f32 %v2648_v37, %v5840_v29 }
 0xa27   : > { %v2658_v7 = vadd.f32 1.0, %v4394_v23  ;;  %v2728_v33 = vpack.c.bf16 %v2698_v19, %v5877_v31  ;;  %4407 = verf.f32 %v2566_v60  ;;  %v2703_v40 = vmul.f32 %v2655_v25, %v5842_v58 }
 0xa28   : > { %v2699_v52 = vmul.f32 %v2651_v63, %v2507_v57  ;;  %v2736_v12 = vpack.c.bf16 %v2712_v34, %v2709_v50  ;;  %2998 = vmatmul.mubr.bf16.gmra.mrb[48].mxu0 %v2725_v44  ;;  %v2567_v18 = vmul.f32 0.70710677, %v2374_v5  ;;  %v2509_v22 = vmul.f32 0.5, %v5851_v21 }
 0xa29   : > { %v4396_v9 = vpop.eup %4395  ;;  %v2706_v1 = vmul.f32 %v2658_v7, %v2514_v61  ;;  %v2512_v29 = vmul.f32 0.5, %v5860_v17  ;;  %v2510_v57 = vmul.f32 0.5, %v5855_v6  ;;  %v2513_v51 = vmul.f32 0.5, %v5872_v15 }
 0xa2a   : > { %v4398_v10 = vpop.eup %4397  ;;  %v2653_v42 = vadd.f32 1.0, %v4396_v9  ;;  %v2729_v11 = vpack.c.bf16 %v2699_v52, %v2696_v47  ;;  %4409 = verf.f32 %v2567_v18  ;;  %v2515_v24 = vmul.f32 0.5, %v5882_v8 }
 0xa2b   : > { %v4400_v28 = vpop.eup %4399  ;;  %v2733_v30 = vpack.c.bf16 %v2706_v1, %v2703_v40  ;;  %v2654_v3 = vadd.f32 1.0, %v4398_v10  ;;  %v2518_v45 = vmul.f32 0.5, %v2372_v43  ;;  %v2516_v53 = vmul.f32 0.5, %v5886_v46 }
 0xa2c   : > { %v2656_v56 = vadd.f32 1.0, %v4400_v28  ;;  %3005 = vmatprep.mubr.bf16.mxu0 %v2729_v11  ;;  %v4402_v0 = vpop.eup %4401  ;;  %v2701_v58 = vmul.f32 %v2653_v42, %v2509_v22  ;;  %v2519_v13 = vmul.f32 0.5, %v2374_v5  ;;  %v2787_v7 = vsub.s32 5, %v4946_v2 }
 0xa2d   : > { %4010 = vmatprep.mubr.bf16.mxu1 %v2733_v30  ;;  %v2657_v41 = vadd.f32 1.0, %v4402_v0  ;;  %v2702_v35 = vmul.f32 %v2654_v3, %v2510_v57 }
 0xa2e   : > { %v2704_v55 = vmul.f32 %v2656_v56, %v2512_v29  ;;  %4011 = vmatmul.mubr.bf16.gmra.mrb[44].mxu1 %v2736_v12  ;;  %v5906_v47 = vrot.slane %v4953_v32, %v2787_v7 }
 0xa2f   : > { %v4404_v61 = vpop.eup %4403  ;;  %v2705_v27 = vmul.f32 %v2657_v41, %v2513_v51 }
 0xa30   : > { %v2731_v31 = vpack.c.bf16 %v2704_v55, %v2701_v58  ;;  %v4406_v21 = vpop.eup %4405  ;;  %v2659_v4 = vadd.f32 1.0, %v4404_v61  ;;  %3006 = vmatmul.mubr.bf16.gmra.mrb[52].mxu0 %v2728_v33 }
 0xa31   : > { %v4408_v17 = vpop.eup %4407  ;;  %v2732_v26 = vpack.c.bf16 %v2705_v27, %v2702_v35  ;;  %v2660_v50 = vadd.f32 1.0, %v4406_v21 }
 0xa32   : > { %v2662_v6 = vadd.f32 1.0, %v4408_v17  ;;  %v2707_v36 = vmul.f32 %v2659_v4, %v2515_v24 }
 0xa33   : > { %3013 = vmatprep.mubr.bf16.mxu0 %v2732_v26  ;;  %v2708_v48 = vmul.f32 %v2660_v50, %v2516_v53 }
 0xa34   : > { %v4410_v37 = vpop.eup %4409  ;;  %v2710_v15 = vmul.f32 %v2662_v6, %v2518_v45 }
 0xa35   : > { %v2663_v25 = vadd.f32 1.0, %v4410_v37 }
 0xa36   : > { %v2734_v19 = vpack.c.bf16 %v2710_v15, %v2707_v36 }
 0xa37   : > { %v2711_v60 = vmul.f32 %v2663_v25, %v2519_v13 }
 0xa38   : > { %3014 = vmatmul.mubr.bf16.gmra.mrb[56].mxu0 %v2731_v31 }
 0xa39   : > { %v2735_v23 = vpack.c.bf16 %v2711_v60, %v2708_v48 }
 0xa3b   : > { %3021 = vmatprep.mubr.bf16.mxu0 %v2735_v23 }
 0xa40   : > { %3022 = vmatmul.mubr.bf16.gmra.mrb[60].mxu0 %v2734_v19 }
 0xad2   : > { %v3758_v34 = vpop.f32.mrb[32].mxu0 }
 0xad3   : > { %v3759_v8 = vpop.f32.mrb[33].mxu0 }
 0xad4   : > { %v3760_v43 = vadd.f32 %v3759_v8, %v3758_v34  ;;  %v3761_v63 = vpop.f32.mrb[34].mxu0 }
 0xad5   : > { %v3762_v44 = vpop.f32.mrb[35].mxu0 }
 0xad6   : > { %v3763_v33 = vadd.f32 %v3762_v44, %v3761_v63  ;;  %v2968_v5 = vadd.f32 %v3760_v43, %v5906_v47 }
 0xad8   : > { %v2971_v1 = vadd.f32 %v3763_v33, %v5906_v47 }
 0xadd   : > { %v3764_v9 = vpop.f32.mrb[36].mxu0 }
 0xade   : > { %v4000_v46 = vpop.f32.mrb[32].mxu1  ;;  %v3765_v18 = vpop.f32.mrb[37].mxu0 }
 0xadf   : > { %v3064_v52 = vpop.f32.mrb[33].mxu1  ;;  %v3766_v11 = vadd.f32 %v3765_v18, %v3764_v9  ;;  %v3767_v28 = vpop.f32.mrb[38].mxu0 }
 0xae0   : > { %v3065_v12 = vadd.f32 %v3064_v52, %v2968_v5  ;;  %v4001_v40 = vpop.f32.mrb[34].mxu1  ;;  %v3768_v30 = vpop.f32.mrb[39].mxu0 }
 0xae1   : > { %v3067_v10 = vpop.f32.mrb[35].mxu1  ;;  %v2976_v32 = vadd.f32 %v3766_v11, %v5906_v47  ;;  %v3769_v3 = vadd.f32 %v3768_v30, %v3767_v28  ;;  %v6275_v11 = vld [vmem:[#allocation16_spill] sm:$0xff] }
 0xae2   : > { %v5911_v42 = vadd.f32 %v3065_v12, %v5381_v54  ;;  %v3068_v2 = vadd.f32 %v3067_v10, %v2971_v1 }
 0xae3   : > { %v3073_v29 = vadd.f32 %v4000_v46, %v2976_v32  ;;  %v2979_v56 = vadd.f32 %v3769_v3, %v5906_v47 }
 0xae4   : > { %3143 = vst [vmem:[#allocation2] sm:$0xff] %v5911_v42  ;;  %v5916_v22 = vadd.f32 %v3068_v2, %v5384_v59  ;;  %3164 = vadd.xlane.f32.xlu0 (!%p3653_p5), %v5911_v42 }
 0xae5   : > { %v5921_v54 = vadd.f32 %v3073_v29, %v5387_v49  ;;  %v3076_v0 = vadd.f32 %v4001_v40, %v2979_v56 }
 0xae6   : > { %3144 = vst [vmem:[#allocation2 + $0x8] sm:$0xff] %v5916_v22 }
 0xae7   : > { %3145 = vst [vmem:[#allocation2 + $0x10] sm:$0xff] %v5921_v54  ;;  %v5925_v57 = vadd.f32 %v3076_v0, %v5392_v16  ;;  %v6276_v0 = vld [vmem:[#allocation17_spill] sm:$0xff]  ;;  %3168 = vadd.xlane.f32.xlu1 (!%p3653_p5), %v5921_v54 }
 0xae8   : > { %3166 = vadd.xlane.f32.xlu0 (!%p3653_p5), %v5916_v22 }
 0xae9   : > { %3146 = vst [vmem:[#allocation2 + $0x18] sm:$0xff] %v5925_v57 }
 0xaea   : > { %v3770_v58 = vpop.f32.mrb[40].mxu0  ;;  %v4004_v59 = vpop.f32.mrb[36].mxu1 }
 0xaeb   : > { %v3771_v55 = vpop.f32.mrb[41].mxu0  ;;  %v3080_v41 = vpop.f32.mrb[37].mxu1  ;;  %3170 = vadd.xlane.f32.xlu1 (!%p3653_p5), %v5925_v57 }
 0xaec   : > { %v3772_v51 = vadd.f32 %v3771_v55, %v3770_v58  ;;  %v3773_v61 = vpop.f32.mrb[42].mxu0  ;;  %v4005_v35 = vpop.f32.mrb[38].mxu1 }
 0xaed   : > { %v3774_v27 = vpop.f32.mrb[43].mxu0  ;;  %v3083_v21 = vpop.f32.mrb[39].mxu1 }
 0xaee   : > { %v2984_v31 = vadd.f32 %v3772_v51, %v5906_v47  ;;  %v3775_v49 = vadd.f32 %v3774_v27, %v3773_v61 }
 0xaf0   : > { %v3081_v4 = vadd.f32 %v3080_v41, %v2984_v31  ;;  %v2987_v17 = vadd.f32 %v3775_v49, %v5906_v47  ;;  %v6277_v41 = vld [vmem:[#allocation18_spill] sm:$0xff] }
 0xaf2   : > { %v5931_v16 = vadd.f32 %v3081_v4, %v5397_v62  ;;  %v3084_v26 = vadd.f32 %v3083_v21, %v2987_v17 }
 0xaf3   : > { %v3776_v45 = vpop.f32.mrb[44].mxu0 }
 0xaf4   : > { %3147 = vst [vmem:[#allocation2 + $0x20] sm:$0xff] %v5931_v16  ;;  %v5935_v24 = vadd.f32 %v3084_v26, %v5401_v38  ;;  %v3777_v6 = vpop.f32.mrb[45].mxu0  ;;  %v6278_v26 = vld [vmem:[#allocation19_spill] sm:$0xff]  ;;  %3172 = vadd.xlane.f32.xlu0 (!%p3653_p5), %v5931_v16 }
 0xaf5   : > { %v3778_v50 = vadd.f32 %v3777_v6, %v3776_v45  ;;  %v3779_v37 = vpop.f32.mrb[46].mxu0 }
 0xaf6   : > { %3148 = vst [vmem:[#allocation2 + $0x28] sm:$0xff] %v5935_v24  ;;  %v3780_v36 = vpop.f32.mrb[47].mxu0  ;;  %v4008_v15 = vpop.f32.mrb[40].mxu1  ;;  %3174 = vadd.xlane.f32.xlu1 (!%p3653_p5), %v5935_v24 }
 0xaf7   : > { %v2992_v53 = vadd.f32 %v3778_v50, %v5906_v47  ;;  %v3781_v13 = vadd.f32 %v3780_v36, %v3779_v37  ;;  %v3096_v25 = vpop.f32.mrb[41].mxu1  ;;  %v6279_v36 = vld [vmem:[#allocation21_spill] sm:$0xff] }
 0xaf8   : > { %v4009_v62 = vpop.f32.mrb[42].mxu1 }
 0xaf9   : > { %v3089_v19 = vadd.f32 %v4004_v59, %v2992_v53  ;;  %v2995_v48 = vadd.f32 %v3781_v13, %v5906_v47  ;;  %v3099_v60 = vpop.f32.mrb[43].mxu1 }
 0xafb   : > { %v5941_v38 = vadd.f32 %v3089_v19, %v5404_v39  ;;  %v3092_v23 = vadd.f32 %v4005_v35, %v2995_v48  ;;  %v3782_v34 = vpop.f32.mrb[48].mxu0 }
 0xafc   : > { %v3783_v8 = vpop.f32.mrb[49].mxu0 }
 0xafd   : > { %3149 = vst [vmem:[#allocation2 + $0x30] sm:$0xff] %v5941_v38  ;;  %v5945_v43 = vadd.f32 %v3092_v23, %v5407_v20  ;;  %v3784_v63 = vadd.f32 %v3783_v8, %v3782_v34  ;;  %v3785_v44 = vpop.f32.mrb[50].mxu0  ;;  %v6280_v23 = vld [vmem:[#allocation20_spill] sm:$0xff]  ;;  %3176 = vadd.xlane.f32.xlu0 (!%p3653_p5), %v5941_v38 }
 0xafe   : > { %v3786_v7 = vpop.f32.mrb[51].mxu0 }
 0xaff   : > { %3150 = vst [vmem:[#allocation2 + $0x38] sm:$0xff] %v5945_v43  ;;  %v3000_v33 = vadd.f32 %v3784_v63, %v5906_v47  ;;  %v3787_v46 = vadd.f32 %v3786_v7, %v3785_v44  ;;  %v6281_v63 = vld [vmem:[#allocation22_spill] sm:$0xff]  ;;  %3178 = vadd.xlane.f32.xlu1 (!%p3653_p5), %v5945_v43 }
 0xb01   : > { %v4012_v5 = vpop.f32.mrb[44].mxu1  ;;  %v3097_v52 = vadd.f32 %v3096_v25, %v3000_v33  ;;  %v3003_v39 = vadd.f32 %v3787_v46, %v5906_v47 }
 0xb02   : > { %v3112_v12 = vpop.f32.mrb[45].mxu1 }
 0xb03   : > { %v4013_v9 = vpop.f32.mrb[46].mxu1  ;;  %v5951_v40 = vadd.f32 %v3097_v52, %v5413_v14  ;;  %v3100_v1 = vadd.f32 %v3099_v60, %v3003_v39  ;;  %v3788_v20 = vpop.f32.mrb[52].mxu0 }
 0xb04   : > { %v3115_v18 = vpop.f32.mrb[47].mxu1  ;;  %v3789_v10 = vpop.f32.mrb[53].mxu0 }
 0xb05   : > { %3151 = vst [vmem:[#allocation2 + $0x40] sm:$0xff] %v5951_v40  ;;  %v5955_v2 = vadd.f32 %v3100_v1, %v6275_v11  ;;  %v3790_v28 = vadd.f32 %v3789_v10, %v3788_v20  ;;  %v3791_v30 = vpop.f32.mrb[54].mxu0  ;;  %3180 = vadd.xlane.f32.xlu0 (!%p3653_p5), %v5951_v40 }
 0xb06   : > { %v3792_v32 = vpop.f32.mrb[55].mxu0 }
 0xb07   : > { %3152 = vst [vmem:[#allocation2 + $0x48] sm:$0xff] %v5955_v2  ;;  %v3008_v3 = vadd.f32 %v3790_v28, %v5906_v47  ;;  %v3793_v29 = vadd.f32 %v3792_v32, %v3791_v30  ;;  %3182 = vadd.xlane.f32.xlu1 (!%p3653_p5), %v5955_v2 }
 0xb09   : > { %v3105_v56 = vadd.f32 %v4008_v15, %v3008_v3  ;;  %v3011_v14 = vadd.f32 %v3793_v29, %v5906_v47 }
 0xb0b   : > { %v5961_v58 = vadd.f32 %v3105_v56, %v6276_v0  ;;  %v3108_v59 = vadd.f32 %v4009_v62, %v3011_v14  ;;  %v3794_v55 = vpop.f32.mrb[56].mxu0 }
 0xb0c   : > { %v3795_v51 = vpop.f32.mrb[57].mxu0 }
 0xb0d   : > { %3153 = vst [vmem:[#allocation2 + $0x50] sm:$0xff] %v5961_v58  ;;  %v5965_v61 = vadd.f32 %v3108_v59, %v6277_v41  ;;  %v3796_v35 = vadd.f32 %v3795_v51, %v3794_v55  ;;  %v3797_v27 = vpop.f32.mrb[58].mxu0  ;;  %3184 = vadd.xlane.f32.xlu0 (!%p3653_p5), %v5961_v58 }
 0xb0e   : > { %v3798_v31 = vpop.f32.mrb[59].mxu0 }
 0xb0f   : > { %3154 = vst [vmem:[#allocation2 + $0x58] sm:$0xff] %v5965_v61  ;;  %v3016_v49 = vadd.f32 %v3796_v35, %v5906_v47  ;;  %v3799_v21 = vadd.f32 %v3798_v31, %v3797_v27  ;;  %3186 = vadd.xlane.f32.xlu1 (!%p3653_p5), %v5965_v61 }
 0xb11   : > { %v3113_v4 = vadd.f32 %v3112_v12, %v3016_v49  ;;  %v3019_v17 = vadd.f32 %v3799_v21, %v5906_v47 }
 0xb13   : > { %v5971_v45 = vadd.f32 %v3113_v4, %v6278_v26  ;;  %v3116_v6 = vadd.f32 %v3115_v18, %v3019_v17  ;;  %v3800_v50 = vpop.f32.mrb[60].mxu0 }
 0xb14   : > { %v3801_v37 = vpop.f32.mrb[61].mxu0 }
 0xb15   : > { %3155 = vst [vmem:[#allocation2 + $0x60] sm:$0xff] %v5971_v45  ;;  %v5975_v15 = vadd.f32 %v3116_v6, %v6279_v36  ;;  %v3802_v53 = vadd.f32 %v3801_v37, %v3800_v50  ;;  %v3803_v13 = vpop.f32.mrb[62].mxu0  ;;  %3188 = vadd.xlane.f32.xlu0 (!%p3653_p5), %v5971_v45 }
 0xb16   : > { %v3804_v25 = vpop.f32.mrb[63].mxu0 }
 0xb17   : > { %3156 = vst [vmem:[#allocation2 + $0x68] sm:$0xff] %v5975_v15  ;;  %v3024_v62 = vadd.f32 %v3802_v53, %v5906_v47  ;;  %v3805_v19 = vadd.f32 %v3804_v25, %v3803_v13  ;;  %3190 = vadd.xlane.f32.xlu1 (!%p3653_p5), %v5975_v15 }
 0xb19   : > { %v3121_v48 = vadd.f32 %v4012_v5, %v3024_v62  ;;  %v3027_v60 = vadd.f32 %v3805_v19, %v5906_v47  ;;  %3162 = sbr.rel (%p3653_p5) target bundleno = 3159 (0xc57), region = 75 }
 0xb1b   : > { %v5981_v34 = vadd.f32 %v3121_v48, %v6280_v23  ;;  %v3124_v8 = vadd.f32 %v4013_v9, %v3027_v60 }
 0xb1d   : > { %3157 = vst [vmem:[#allocation2 + $0x70] sm:$0xff] %v5981_v34  ;;  %v5985_v44 = vadd.f32 %v3124_v8, %v6281_v63  ;;  %3192 = vadd.xlane.f32.xlu0 (!%p3653_p5), %v5981_v34 }
 0xb1f   : > { %3158 = vst [vmem:[#allocation2 + $0x78] sm:$0xff] %v5985_v44  ;;  %3194 = vadd.xlane.f32.xlu1 (!%p3653_p5), %v5985_v44 }
 0xb71   : > { %v3165_v47 = vpop.xlane.xlu0 %3164 }
 0xb72   : > { %v3196_v33 = vmul.f32 0.0078125, %v3165_v47 }
 0xb74   : > { %v3169_v7 = vpop.xlane.xlu1 %3168  ;;  %v6006_v5 = vsub.f32 %v5911_v42, %v3196_v33 }
 0xb75   : > { %v3198_v46 = vmul.f32 0.0078125, %v3169_v7  ;;  %v3167_v39 = vpop.xlane.xlu0 %3166 }
 0xb76   : > { %v3197_v9 = vmul.f32 0.0078125, %v3167_v39  ;;  %v3228_v1 = vmul.f32 %v6006_v5, %v6006_v5 }
 0xb77   : > { %v6009_v52 = vsub.f32 %v5921_v54, %v3198_v46 }
 0xb78   : > { %v3171_v12 = vpop.xlane.xlu1 %3170  ;;  %v6014_v18 = vsub.f32 %v5916_v22, %v3197_v9  ;;  %3244 = vadd.xlane.f32.xlu0 %v3228_v1 }
 0xb79   : > { %v3199_v20 = vmul.f32 0.0078125, %v3171_v12  ;;  %v3230_v42 = vmul.f32 %v6009_v52, %v6009_v52 }
 0xb7a   : > { %v3229_v30 = vmul.f32 %v6014_v18, %v6014_v18 }
 0xb7b   : > { %v6017_v10 = vsub.f32 %v5925_v57, %v3199_v20 }
 0xb7c   : > { %3248 = vadd.xlane.f32.xlu0 %v3230_v42  ;;  %3246 = vadd.xlane.f32.xlu1 %v3229_v30  ;;  %v3163_v30 = vld [vmem:[%s6195_s7] sm:$0x3] }
 0xb7d   : > { %v3231_v57 = vmul.f32 %v6017_v10, %v6017_v10 }
 0xb80   : > { %3250 = vadd.xlane.f32.xlu1 %v3231_v57 }
 0xb81   : > { %v3173_v11 = vpop.xlane.xlu0 %3172 }
 0xb82   : > { %v3200_v28 = vmul.f32 0.0078125, %v3173_v11 }
 0xb83   : > { %v3175_v54 = vpop.xlane.xlu1 %3174 }
 0xb84   : > { %v3201_v32 = vmul.f32 0.0078125, %v3175_v54  ;;  %v6024_v3 = vsub.f32 %v5931_v16, %v3200_v28 }
 0xb86   : > { %v6027_v22 = vsub.f32 %v5935_v24, %v3201_v32  ;;  %v3232_v0 = vmul.f32 %v6024_v3, %v6024_v3 }
 0xb88   : > { %3252 = vadd.xlane.f32.xlu0 %v3232_v0  ;;  %v3233_v24 = vmul.f32 %v6027_v22, %v6027_v22 }
 0xb8a   : > { %v3177_v29 = vpop.xlane.xlu0 %3176  ;;  %3254 = vadd.xlane.f32.xlu1 %v3233_v24 }
 0xb8b   : > { %v3202_v14 = vmul.f32 0.0078125, %v3177_v29 }
 0xb8c   : > { %v3179_v56 = vpop.xlane.xlu1 %3178 }
 0xb8d   : > { %v3203_v59 = vmul.f32 0.0078125, %v3179_v56  ;;  %v6034_v55 = vsub.f32 %v5941_v38, %v3202_v14 }
 0xb8f   : > { %v6037_v16 = vsub.f32 %v5945_v43, %v3203_v59  ;;  %v3234_v27 = vmul.f32 %v6034_v55, %v6034_v55  ;;  %v6282_v59 = vld [vmem:[#allocation14_spill] sm:$0xff] }
 0xb90   : > { %v6089_v24 = vrot.slane %v3163_v30, %v6282_v59 }
 0xb91   : > { %3256 = vadd.xlane.f32.xlu0 %v3234_v27  ;;  %v3235_v43 = vmul.f32 %v6037_v16, %v6037_v16 }
 0xb92   : > { %v3181_v51 = vpop.xlane.xlu0 %3180 }
 0xb93   : > { %v3204_v35 = vmul.f32 0.0078125, %v3181_v51  ;;  %3258 = vadd.xlane.f32.xlu1 %v3235_v43 }
 0xb94   : > { %v3183_v41 = vpop.xlane.xlu1 %3182 }
 0xb95   : > { %v3205_v31 = vmul.f32 0.0078125, %v3183_v41  ;;  %v6044_v49 = vsub.f32 %v5951_v40, %v3204_v35 }
 0xb97   : > { %v6047_v38 = vsub.f32 %v5955_v2, %v3205_v31  ;;  %v3236_v26 = vmul.f32 %v6044_v49, %v6044_v49  ;;  %v6283_v31 = vld [vmem:[#allocation15_spill] sm:$0xff] }
 0xb98   : > { %v6093_v43 = vrot.slane %v3163_v30, %v6283_v31 }
 0xb99   : > { %3260 = vadd.xlane.f32.xlu0 %v3236_v26  ;;  %v3237_v2 = vmul.f32 %v6047_v38, %v6047_v38 }
 0xb9a   : > { %v3185_v21 = vpop.xlane.xlu0 %3184 }
 0xb9b   : > { %v3206_v17 = vmul.f32 0.0078125, %v3185_v21  ;;  %3262 = vadd.xlane.f32.xlu1 %v3237_v2 }
 0xb9c   : > { %v3187_v4 = vpop.xlane.xlu1 %3186 }
 0xb9d   : > { %v3207_v6 = vmul.f32 0.0078125, %v3187_v4  ;;  %v6054_v50 = vsub.f32 %v5961_v58, %v3206_v17 }
 0xb9f   : > { %v6057_v40 = vsub.f32 %v5965_v61, %v3207_v6  ;;  %v3238_v13 = vmul.f32 %v6054_v50, %v6054_v50 }
 0xba1   : > { %3264 = vadd.xlane.f32.xlu0 %v3238_v13  ;;  %v3239_v61 = vmul.f32 %v6057_v40, %v6057_v40 }
 0xba2   : > { %v3189_v37 = vpop.xlane.xlu0 %3188 }
 0xba3   : > { %v3208_v53 = vmul.f32 0.0078125, %v3189_v37  ;;  %3266 = vadd.xlane.f32.xlu1 %v3239_v61 }
 0xba4   : > { %v3191_v36 = vpop.xlane.xlu1 %3190 }
 0xba5   : > { %v3209_v25 = vmul.f32 0.0078125, %v3191_v36  ;;  %v6064_v62 = vsub.f32 %v5971_v45, %v3208_v53 }
 0xba7   : > { %v6067_v58 = vsub.f32 %v5975_v15, %v3209_v25  ;;  %v3240_v23 = vmul.f32 %v6064_v62, %v6064_v62 }
 0xba9   : > { %3268 = vadd.xlane.f32.xlu0 %v3240_v23  ;;  %v3241_v15 = vmul.f32 %v6067_v58, %v6067_v58 }
 0xbaa   : > { %v3193_v19 = vpop.xlane.xlu0 %3192 }
 0xbab   : > { %v3210_v60 = vmul.f32 0.0078125, %v3193_v19  ;;  %3270 = vadd.xlane.f32.xlu1 %v3241_v15 }
 0xbac   : > { %v3195_v48 = vpop.xlane.xlu1 %3194 }
 0xbad   : > { %v3211_v8 = vmul.f32 0.0078125, %v3195_v48  ;;  %v6074_v63 = vsub.f32 %v5981_v34, %v3210_v60 }
 0xbaf   : > { %v6077_v45 = vsub.f32 %v5985_v44, %v3211_v8  ;;  %v3242_v47 = vmul.f32 %v6074_v63, %v6074_v63 }
 0xbb1   : > { %3272 = vadd.xlane.f32.xlu0 %v3242_v47  ;;  %v3243_v7 = vmul.f32 %v6077_v45, %v6077_v45 }
 0xbb3   : > { %3274 = vadd.xlane.f32.xlu1 %v3243_v7 }
 0xc05   : > { %v3245_v33 = vpop.xlane.xlu0 %3244 }
 0xc06   : > { %v3276_v34 = vmul.f32 0.0078125, %v3245_v33 }
 0xc08   : > { %v3292_v46 = vadd.f32 1e-05, %v3276_v34 }
 0xc09   : > { %v3247_v39 = vpop.xlane.xlu1 %3246  ;;  %v3249_v12 = vpop.xlane.xlu0 %3248 }
 0xc0a   : > { %4411 = vrsqrt.f32 %v3292_v46  ;;  %v3277_v44 = vmul.f32 0.0078125, %v3247_v39  ;;  %v3278_v9 = vmul.f32 0.0078125, %v3249_v12 }
 0xc0c   : > { %v3293_v1 = vadd.f32 1e-05, %v3277_v44  ;;  %v3294_v20 = vadd.f32 1e-05, %v3278_v9 }
 0xc0d   : > { %v3251_v42 = vpop.xlane.xlu1 %3250 }
 0xc0e   : > { %4413 = vrsqrt.f32 %v3293_v1  ;;  %v3279_v54 = vmul.f32 0.0078125, %v3251_v42 }
 0xc0f   : > { %4415 = vrsqrt.f32 %v3294_v20 }
 0xc10   : > { %v3295_v32 = vadd.f32 1e-05, %v3279_v54 }
 0xc12   : > { %4417 = vrsqrt.f32 %v3295_v32 }
 0xc14   : > { %v4412_v51 = vpop.eup %4411 }
 0xc15   : > { %v3253_v11 = vpop.xlane.xlu0 %3252  ;;  %v3324_v27 = vmul.f32 %v4412_v51, %v6006_v5 }
 0xc16   : > { %v3280_v28 = vmul.f32 0.0078125, %v3253_v11 }
 0xc17   : > { %v3255_v29 = vpop.xlane.xlu1 %3254  ;;  %v3344_v6 = vmul.f32 %v6089_v24, %v3324_v27 }
 0xc18   : > { %v3296_v57 = vadd.f32 1e-05, %v3280_v28  ;;  %v3281_v14 = vmul.f32 0.0078125, %v3255_v29  ;;  %v4414_v2 = vpop.eup %4413 }
 0xc19   : > { %v4416_v53 = vpop.eup %4415  ;;  %v3364_v13 = vadd.f32 %v6093_v43, %v3344_v6  ;;  %v3325_v25 = vmul.f32 %v4414_v2, %v6014_v18 }
 0xc1a   : > { %4419 = vrsqrt.f32 %v3296_v57  ;;  %v3297_v41 = vadd.f32 1e-05, %v3281_v14  ;;  %v3326_v19 = vmul.f32 %v4416_v53, %v6009_v52 }
 0xc1b   : > { %3380 = vst [vmem:[#allocation9] sm:$0xff] %v3364_v13  ;;  %v3345_v23 = vmul.f32 %v6089_v24, %v3325_v25 }
 0xc1c   : > { %4421 = vrsqrt.f32 %v3297_v41  ;;  %v4418_v8 = vpop.eup %4417  ;;  %v3346_v15 = vmul.f32 %v6089_v24, %v3326_v19 }
 0xc1d   : > { %v3365_v34 = vadd.f32 %v6093_v43, %v3345_v23  ;;  %v3327_v18 = vmul.f32 %v4418_v8, %v6017_v10 }
 0xc1e   : > { %v3257_v56 = vpop.xlane.xlu0 %3256  ;;  %v3366_v52 = vadd.f32 %v6093_v43, %v3346_v15 }
 0xc1f   : > { %v3282_v0 = vmul.f32 0.0078125, %v3257_v56  ;;  %3381 = vst [vmem:[#allocation9 + $0x8] sm:$0xff] %v3365_v34  ;;  %v3347_v9 = vmul.f32 %v6089_v24, %v3327_v18 }
 0xc20   : > { %v3259_v21 = vpop.xlane.xlu1 %3258  ;;  %3382 = vst [vmem:[#allocation9 + $0x10] sm:$0xff] %v3366_v52 }
 0xc21   : > { %v3298_v35 = vadd.f32 1e-05, %v3282_v0  ;;  %v3283_v17 = vmul.f32 0.0078125, %v3259_v21  ;;  %v3367_v10 = vadd.f32 %v6093_v43, %v3347_v9 }
 0xc23   : > { %4423 = vrsqrt.f32 %v3298_v35  ;;  %v3299_v37 = vadd.f32 1e-05, %v3283_v17  ;;  %3383 = vst [vmem:[#allocation9 + $0x18] sm:$0xff] %v3367_v10 }
 0xc24   : > { %v4420_v33 = vpop.eup %4419 }
 0xc25   : > { %4425 = vrsqrt.f32 %v3299_v37  ;;  %v3328_v12 = vmul.f32 %v4420_v33, %v6024_v3 }
 0xc26   : > { %v3261_v4 = vpop.xlane.xlu0 %3260  ;;  %v4422_v20 = vpop.eup %4421 }
 0xc27   : > { %v3284_v26 = vmul.f32 0.0078125, %v3261_v4  ;;  %v3348_v42 = vmul.f32 %v6089_v24, %v3328_v12  ;;  %v3329_v28 = vmul.f32 %v4422_v20, %v6027_v22 }
 0xc28   : > { %v3263_v5 = vpop.xlane.xlu1 %3262 }
 0xc29   : > { %v3300_v36 = vadd.f32 1e-05, %v3284_v26  ;;  %v3285_v48 = vmul.f32 0.0078125, %v3263_v5  ;;  %v3368_v57 = vadd.f32 %v6093_v43, %v3348_v42  ;;  %v3349_v14 = vmul.f32 %v6089_v24, %v3329_v28 }
 0xc2b   : > { %4427 = vrsqrt.f32 %v3300_v36  ;;  %v3301_v47 = vadd.f32 1e-05, %v3285_v48  ;;  %3384 = vst [vmem:[#allocation9 + $0x20] sm:$0xff] %v3368_v57  ;;  %v3369_v35 = vadd.f32 %v6093_v43, %v3349_v14 }
 0xc2d   : > { %4429 = vrsqrt.f32 %v3301_v47  ;;  %v4424_v54 = vpop.eup %4423  ;;  %3385 = vst [vmem:[#allocation9 + $0x28] sm:$0xff] %v3369_v35 }
 0xc2e   : > { %v3265_v61 = vpop.xlane.xlu0 %3264  ;;  %v3330_v29 = vmul.f32 %v4424_v54, %v6034_v55 }
 0xc2f   : > { %v3286_v60 = vmul.f32 0.0078125, %v3265_v61  ;;  %v4426_v59 = vpop.eup %4425 }
 0xc30   : > { %v3267_v46 = vpop.xlane.xlu1 %3266  ;;  %v3350_v51 = vmul.f32 %v6089_v24, %v3330_v29  ;;  %v3331_v27 = vmul.f32 %v4426_v59, %v6037_v16 }
 0xc31   : > { %v3302_v7 = vadd.f32 1e-05, %v3286_v60  ;;  %v3287_v44 = vmul.f32 0.0078125, %v3267_v46 }
 0xc32   : > { %v3370_v55 = vadd.f32 %v6093_v43, %v3350_v51  ;;  %v3351_v26 = vmul.f32 %v6089_v24, %v3331_v27 }
 0xc33   : > { %4431 = vrsqrt.f32 %v3302_v7  ;;  %v3303_v11 = vadd.f32 1e-05, %v3287_v44 }
 0xc34   : > { %3386 = vst [vmem:[#allocation9 + $0x30] sm:$0xff] %v3370_v55  ;;  %v3371_v16 = vadd.f32 %v6093_v43, %v3351_v26 }
 0xc35   : > { %4433 = vrsqrt.f32 %v3303_v11  ;;  %v4428_v22 = vpop.eup %4427 }
 0xc36   : > { %v3269_v39 = vpop.xlane.xlu0 %3268  ;;  %v3332_v4 = vmul.f32 %v4428_v22, %v6044_v49  ;;  %3387 = vst [vmem:[#allocation9 + $0x38] sm:$0xff] %v3371_v16 }
 0xc37   : > { %v3288_v1 = vmul.f32 0.0078125, %v3269_v39  ;;  %v4430_v6 = vpop.eup %4429 }
 0xc38   : > { %v3271_v32 = vpop.xlane.xlu1 %3270  ;;  %v3352_v2 = vmul.f32 %v6089_v24, %v3332_v4  ;;  %v3333_v53 = vmul.f32 %v4430_v6, %v6047_v38 }
 0xc39   : > { %v3304_v30 = vadd.f32 1e-05, %v3288_v1  ;;  %v3289_v56 = vmul.f32 0.0078125, %v3271_v32 }
 0xc3a   : > { %v3372_v13 = vadd.f32 %v6093_v43, %v3352_v2  ;;  %v3353_v25 = vmul.f32 %v6089_v24, %v3333_v53 }
 0xc3b   : > { %4435 = vrsqrt.f32 %v3304_v30  ;;  %v3305_v41 = vadd.f32 1e-05, %v3289_v56 }
 0xc3c   : > { %3388 = vst [vmem:[#allocation9 + $0x40] sm:$0xff] %v3372_v13  ;;  %v3373_v48 = vadd.f32 %v6093_v43, %v3353_v25 }
 0xc3d   : > { %4437 = vrsqrt.f32 %v3305_v41  ;;  %v4432_v36 = vpop.eup %4431 }
 0xc3e   : > { %v3273_v3 = vpop.xlane.xlu0 %3272  ;;  %v3334_v49 = vmul.f32 %v4432_v36, %v6054_v50  ;;  %3389 = vst [vmem:[#allocation9 + $0x48] sm:$0xff] %v3373_v48 }
 0xc3f   : > { %v3290_v0 = vmul.f32 0.0078125, %v3273_v3  ;;  %v4434_v5 = vpop.eup %4433 }
 0xc40   : > { %v3275_v21 = vpop.xlane.xlu1 %3274  ;;  %v3354_v61 = vmul.f32 %v6089_v24, %v3334_v49  ;;  %v3335_v60 = vmul.f32 %v4434_v5, %v6057_v40 }
 0xc41   : > { %v3306_v31 = vadd.f32 1e-05, %v3290_v0  ;;  %v3291_v17 = vmul.f32 0.0078125, %v3275_v21 }
 0xc42   : > { %v3374_v23 = vadd.f32 %v6093_v43, %v3354_v61  ;;  %v3355_v50 = vmul.f32 %v6089_v24, %v3335_v60 }
 0xc43   : > { %4439 = vrsqrt.f32 %v3306_v31  ;;  %v3307_v37 = vadd.f32 1e-05, %v3291_v17 }
 0xc44   : > { %3390 = vst [vmem:[#allocation9 + $0x50] sm:$0xff] %v3374_v23  ;;  %v3375_v7 = vadd.f32 %v6093_v43, %v3355_v50 }
 0xc45   : > { %4441 = vrsqrt.f32 %v3307_v37  ;;  %v4436_v19 = vpop.eup %4435 }
 0xc46   : > { %v3336_v38 = vmul.f32 %v4436_v19, %v6064_v62  ;;  %3391 = vst [vmem:[#allocation9 + $0x58] sm:$0xff] %v3375_v7 }
 0xc47   : > { %v4438_v8 = vpop.eup %4437 }
 0xc48   : > { %v3356_v15 = vmul.f32 %v6089_v24, %v3336_v38  ;;  %v3337_v33 = vmul.f32 %v4438_v8, %v6067_v58 }
 0xc4a   : > { %v3376_v34 = vadd.f32 %v6093_v43, %v3356_v15  ;;  %v3357_v18 = vmul.f32 %v6089_v24, %v3337_v33 }
 0xc4c   : > { %3392 = vst [vmem:[#allocation9 + $0x60] sm:$0xff] %v3376_v34  ;;  %v3377_v39 = vadd.f32 %v6093_v43, %v3357_v18 }
 0xc4d   : > { %v4440_v47 = vpop.eup %4439 }
 0xc4e   : > { %v3338_v40 = vmul.f32 %v4440_v47, %v6074_v63  ;;  %3393 = vst [vmem:[#allocation9 + $0x68] sm:$0xff] %v3377_v39 }
 0xc4f   : > { %v4442_v62 = vpop.eup %4441 }
 0xc50   : > { %v3358_v46 = vmul.f32 %v6089_v24, %v3338_v40  ;;  %v3339_v52 = vmul.f32 %v4442_v62, %v6077_v45 }
 0xc52   : > { %v3378_v12 = vadd.f32 %v6093_v43, %v3358_v46  ;;  %v3359_v58 = vmul.f32 %v6089_v24, %v3339_v52 }
 0xc54   : > { %3394 = vst [vmem:[#allocation9 + $0x70] sm:$0xff] %v3378_v12  ;;  %v3379_v44 = vadd.f32 %v6093_v43, %v3359_v58 }
 0xc56   : > { %3395 = vst [vmem:[#allocation9 + $0x78] sm:$0xff] %v3379_v44 }
 0xc57 PF: > { %s6284_s19 = sadd.s32 4294967295, %s4589_s10   ;;  %s4605_s13 = smov [#allocation9]  }
 0xc58   : > { %p6144_p8 = scmp.eq.s32.totalorder %s6284_s19, 2  ;;  %s3406_s25 = sshll.u32 %s4605_s13, 4  ;;  %s3407_s25 = int_to_ptr.vmem [resolvable:$true] %s3406_s25 }
 0xc59   : > { %s4501_s15 = scalar_lea.vmem %s3407_s25, 2048  ;;  %p4508_p13 = scmp.lt.s32.totalorder %s3407_s25, %s3407_s25 }
 0xc5a   : > { %p4502_p9 = scmp.ne.s32.totalorder %s3407_s25, %s4501_s15  ;;  %p4509_p2 = scmp.lt.s32.totalorder %s4501_s15, %s4501_s15 }
 0xc5c   : > { %p4503_p10 = pnand %p4502_p9, %p6144_p8  ;;  %p4510_p3 = por %p4509_p2, %p4508_p13 }
 0xc5e   : > { %p4504_p11 = pneg %p4503_p10 }
 0xc60   : > { %p4511_p0 = pnand %p4510_p3, %p4504_p11 }
 0xc62   : > { %4514 = shalt.err (!%p4511_p0)
}
 0xc63   : > { %s4515_s0 = scalar_lea.hbm %s6196_s8, 2048 }
 0xc64   : > { %p4516_p12 = scmp.ne.s32.totalorder %s6196_s8, %s4515_s0  ;;  %p4521_p4 = scmp.lt.u32.totalorder %s4515_s0, %s6196_s8 }
 0xc66   : > { %p4517_p6 = pnand %p4516_p12, %p6144_p8 }
 0xc68   : > { %p4518_p7 = pneg %p4517_p6 }
 0xc6a   : > { %p4523_p1 = pnand %p4521_p4, %p4518_p7 }
 0xc6c   : > { %4526 = shalt.err (!%p4523_p1)
}
 0xc6d   : > { %s4606_s23 = smov 128   ;;  %s4607_s27 = smov 8  }
 0xc6e   : > { %4031 = dma.vmem_to_hbm [thread:$0]  (%p6144_p8), %s3407_s25, 2048, %s6196_s8, [#allocation6], %s4606_s23, %s4606_s23, %s4607_s27  }
 0xc6f   : > { %4564 = dma.done.wait (%p6144_p8), [#allocation6], 2048  }
 0xc70   : > { %4566 = vsyncadd (%p6144_p8), [#allocation6], 4294965248 }
 0xc71 PF: > { %s23_s10 = sadd.s32 1, %s4589_s10   ;;  %s6286_s17 = sld [smem:[#allocation13_spill]] }
 0xc72   : > { %p20_p5 = scmp.ge.s32.totalorder %s23_s10, 5   ;;  %s6287_s27 = smov %s4573_s28 }
 0xc73   : > { %s6288_s28 = smov %s4577_s29  ;;  %s6289_s29 = smov %s4738_s26 }
 0xc74   : > { %s6290_s30 = smov %s4585_s9  ;;  %22 = sbr.rel (!%p20_p5) target bundleno = 9 (0x9), region = 142 }
 0xc77   : > { %s6291_s9 = smov %s6286_s17 }
 0xc7b   :  { %3422 = vsyncpa [#allocation5], 1 }
 0xc7c   :  { %3424 = vsyncpa [#allocation5 + $0x1], 1 }
 0xc7d   :  { %3425 = vsyncpa [#allocation8], 1 }
 0xc7e   :  { %3427 = vsyncpa [#allocation8 + $0x1], 1 }
 0xc7f   :  { %3428 = vsyncpa [#allocation6], 1 }
 0xc80   :  { %3430 = vsyncpa [#allocation6 + $0x1], 1 }

</bundles_post_ra>
